<compile_context>
chip_gen: v7x
topology: tpu7x:2x2x1
jax: 0.10.0
libtpu: 0.0.40
codegen_flags: <defaults>
</compile_context>

<pallas_src>
import functools

import jax
import jax.numpy as jnp
from jax import lax
from jax.experimental import pallas as pl
from jax.experimental.pallas import tpu as pltpu

# Hyperparameters implied by ModelEmbeddings.__init__ (standard a5 CNN/Highway):
EMB_CHAR = 50          # self.emb_char_size
MAX_WORD_LEN = 21      # self.max_word_len
KERNEL_K = 5           # CNN kernel width (a5 CNN), no padding, ReLU + max-over-time
LANE = 128


def _round_up(x, m):
    return (x + m - 1) // m * m


def model_embeddings_kernel(idx_ref, wbig_ref, bconv_ref, wp_ref, bp_ref,
                            wg_ref, bg_ref, out_ref, spread_ref, *, kernel_k):
    TN, L = idx_ref.shape
    KB, E_pad = wbig_ref.shape          # KB == K * 128
    K = kernel_k
    BLK = LANE
    L_out = L - K + 1

    # Hoisted iota over the per-tap one-hot width (128 lanes).
    iota_v = lax.broadcasted_iota(jnp.int32, (TN, BLK), 1)

    # Precompute per-character-position one-hots once (bool -> bf16, no select).
    # Position j occupies lanes [j*128, (j+1)*128) of the spread scratch, so the
    # conv window for output position t is the contiguous lane slice
    # [t*128, (t+K)*128).  Indices >= 128 match nothing; indices in [V, 128)
    # match a zero row of wbig -> out-of-range chars contribute exactly zero.
    for j in range(L):
        spread_ref[:, j * BLK:(j + 1) * BLK] = (
            iota_v == idx_ref[:, j:j + 1]).astype(jnp.bfloat16)

    wbig = wbig_ref[...]                                         # (K*128, E_pad) bf16
    maxacc = jnp.full((TN, E_pad), -jnp.inf, dtype=jnp.float32)
    for t in range(L_out):
        window = spread_ref[:, t * BLK:(t + K) * BLK]            # (TN, K*128) bf16
        conv_t = jnp.dot(window, wbig, preferred_element_type=jnp.float32)
        maxacc = jnp.maximum(maxacc, conv_t)

    # Bias + ReLU hoisted out of the t loop: max_t relu(c_t + b) == relu(max_t c_t + b).
    x = jnp.maximum(maxacc + bconv_ref[...], 0.0)                # (TN, E_pad) f32

    # Highway: proj = relu(x Wp + bp); gate = sigmoid(x Wg + bg).
    xb = x.astype(jnp.bfloat16)                                  # bf16 only for the MXU
    proj = jnp.maximum(
        jnp.dot(xb, wp_ref[...], preferred_element_type=jnp.float32) + bp_ref[...], 0.0)
    gate = jax.nn.sigmoid(
        jnp.dot(xb, wg_ref[...], preferred_element_type=jnp.float32) + bg_ref[...])
    out_ref[...] = x + gate * (proj - x)
    # TODO(synk): the full a5 ModelEmbeddings applies dropout after the highway;
    # the forward() given in the spec does not, so no dropout is implemented.


def model_embeddings_forward(inp, table, wconv, bconv, wp, bp, wg, bg, *, tn=512):
    """inp: (S, B, L) int char indices. Weights in JAX layout:
       wconv[k, c, e] == W_torch[e, c, k]; wp/wg are (E, E) == W_torch.T; biases (1, E)."""
    S, B, L = inp.shape
    V, _ = table.shape
    K, _, E = wconv.shape
    N = S * B

    E_pad = _round_up(max(E, LANE), LANE)
    BLK = LANE
    KB = K * BLK

    # --- wrapper-side weight prep ---
    # Fold the char-embedding table into the conv weight: Wf[k] = table @ wconv[k];
    # tap k occupies rows [k*128, k*128 + V) of the stacked weight (rest is zero).
    wf = jnp.einsum('vc,kce->kve', table, wconv)                         # (K, V, E)
    wbig = jnp.zeros((K, BLK, E_pad), jnp.float32).at[:, :V, :E].set(wf)
    wbig = wbig.reshape(KB, E_pad).astype(jnp.bfloat16)
    bconv_p = jnp.zeros((1, E_pad), jnp.float32).at[:, :E].set(bconv)
    wp_p = jnp.zeros((E_pad, E_pad), jnp.float32).at[:E, :E].set(wp).astype(jnp.bfloat16)
    wg_p = jnp.zeros((E_pad, E_pad), jnp.float32).at[:E, :E].set(wg).astype(jnp.bfloat16)
    bp_p = jnp.zeros((1, E_pad), jnp.float32).at[:, :E].set(bp)
    bg_p = jnp.zeros((1, E_pad), jnp.float32).at[:, :E].set(bg)

    # --- tile the flattened word axis (no divisibility assert) ---
    # Cap tn so the 'parallel' grid has >= 2 steps when N allows it (keeps both
    # TensorCores busy on v7x even for small batches); keep tn a multiple of 8.
    tn = max(8, min(tn, _round_up(-(-N // 2), 8)))
    n_pad = _round_up(N, tn)
    idx = inp.reshape(N, L).astype(jnp.int32)
    if n_pad != N:
        idx = jnp.pad(idx, ((0, n_pad - N), (0, 0)))   # pad words use char index 0

    kernel = functools.partial(model_embeddings_kernel, kernel_k=K)
    out = pl.pallas_call(
        kernel,
        out_shape=jax.ShapeDtypeStruct((n_pad, E_pad), jnp.float32),
        grid_spec=pltpu.PrefetchScalarGridSpec(
            num_scalar_prefetch=0,
            grid=(n_pad // tn,),
            in_specs=[
                pl.BlockSpec((tn, L), lambda i: (i, 0)),          # char indices
                pl.BlockSpec((KB, E_pad), lambda i: (0, 0)),      # stacked fused conv W (bf16)
                pl.BlockSpec((1, E_pad), lambda i: (0, 0)),       # conv bias
                pl.BlockSpec((E_pad, E_pad), lambda i: (0, 0)),   # highway proj W (bf16)
                pl.BlockSpec((1, E_pad), lambda i: (0, 0)),       # highway proj b
                pl.BlockSpec((E_pad, E_pad), lambda i: (0, 0)),   # highway gate W (bf16)
                pl.BlockSpec((1, E_pad), lambda i: (0, 0)),       # highway gate b
            ],
            out_specs=pl.BlockSpec((tn, E_pad), lambda i: (i, 0)),
            scratch_shapes=[pltpu.VMEM((tn, L * BLK), jnp.bfloat16)],  # one-hot spread
        ),
        compiler_params=pltpu.CompilerParams(
            dimension_semantics=("parallel",)),
    )(idx, wbig, bconv_p, wp_p, bp_p, wg_p, bg_p)
    return out[:N, :E].reshape(S, B, E)


def reference_forward(inp, table, wconv, bconv, wp, bp, wg, bg):
    """Pure-JAX reference mirroring the PyTorch forward semantics."""
    S, B, L = inp.shape
    K, C, E = wconv.shape
    emb = table[inp]                                  # (S, B, L, C)
    x = emb.reshape(S * B, L, C)                      # (N, L, C)
    conv = jnp.stack(
        [sum(x[:, t + k, :] @ wconv[k] for k in range(K)) + bconv[0]
         for t in range(L - K + 1)], axis=1)          # (N, L_out, E)
    xcv = jnp.max(jax.nn.relu(conv), axis=1)          # (N, E)  max-over-time
    proj = jax.nn.relu(xcv @ wp + bp[0])
    gate = jax.nn.sigmoid(xcv @ wg + bg[0])
    out = gate * proj + (1.0 - gate) * xcv
    return out.reshape(S, B, E)


def _make_params(key, V, C, E, K, pad_idx):
    k_tab, k_cw, k_cb, k_wp, k_bp, k_wg, k_bg = jax.random.split(key, 7)
    table = 0.1 * jax.random.normal(k_tab, (V, C), dtype=jnp.float32)
    table = table.at[pad_idx].set(0.0)                           # padding_idx row = 0
    wconv = 0.1 * jax.random.normal(k_cw, (K, C, E), dtype=jnp.float32)
    bconv = 0.1 * jax.random.normal(k_cb, (1, E), dtype=jnp.float32)
    wp = 0.1 * jax.random.normal(k_wp, (E, E), dtype=jnp.float32)
    bp = 0.1 * jax.random.normal(k_bp, (1, E), dtype=jnp.float32)
    wg = 0.1 * jax.random.normal(k_wg, (E, E), dtype=jnp.float32)
    bg = 0.1 * jax.random.normal(k_bg, (1, E), dtype=jnp.float32)
    return table, wconv, bconv, wp, bp, wg, bg


if __name__ == "__main__":
    L = MAX_WORD_LEN            # 21
    C = EMB_CHAR                # 50
    E = 32                      # embed_size
    V = 30                      # len(vocab.char2id)
    PAD_IDX = 0                 # vocab.char2id['<pad>']
    K = KERNEL_K

    key = jax.random.PRNGKey(0)
    k_par, k_in1, k_in2 = jax.random.split(key, 3)
    params = _make_params(k_par, V, C, E, K, PAD_IDX)

    # Case 1: small exact-tile shape (grid of 2 after the adaptive tn cap).
    S, B = 8, 2
    inp = jax.random.randint(k_in1, (S, B, L), 0, V, dtype=jnp.int32)
    out = jax.block_until_ready(model_embeddings_forward(inp, *params))
    ref = reference_forward(inp, *params)
    assert out.shape == (S, B, E)
    assert jnp.allclose(out, ref, rtol=1e-2, atol=1e-2), "mismatch vs JAX reference (case 1)"

    # Case 2: word count not a tile multiple -> exercises wrapper-side padding path.
    S2, B2 = 5, 3
    inp2 = jax.random.randint(k_in2, (S2, B2, L), 0, V, dtype=jnp.int32)
    out2 = jax.block_until_ready(model_embeddings_forward(inp2, *params))
    ref2 = reference_forward(inp2, *params)
    assert out2.shape == (S2, B2, E)
    assert jnp.allclose(out2, ref2, rtol=1e-2, atol=1e-2), "mismatch vs JAX reference (case 2)"

    print("KERNEL_OK")
</pallas_src>

<mosaic_0001>
module attributes {stable_mosaic.version = 11 : i64} {
  func.func @model_embeddings_kernel(%arg0: i32, %arg1: memref<8x21xi32, #tpu.memory_space<vmem>>, %arg2: memref<640x128xbf16, #tpu.memory_space<vmem>>, %arg3: memref<1x128xf32, #tpu.memory_space<vmem>>, %arg4: memref<128x128xbf16, #tpu.memory_space<vmem>>, %arg5: memref<1x128xf32, #tpu.memory_space<vmem>>, %arg6: memref<128x128xbf16, #tpu.memory_space<vmem>>, %arg7: memref<1x128xf32, #tpu.memory_space<vmem>>, %arg8: memref<8x128xf32, #tpu.memory_space<vmem>>, %arg9: memref<8x2688xbf16, #tpu.memory_space<vmem>>) attributes {dimension_semantics = [#tpu.dimension_semantics<parallel>], iteration_bounds = array<i64: 2>, scalar_prefetch = 0 : i64, scratch_operands = 1 : i64, tpu.core_type = #tpu.core_type<tc>, window_params = [{transform_indices = @transform_0, window_bounds = array<i64: 8, 21>}, {pipeline_mode = #tpu.pipeline_mode<synchronous>, transform_indices = @transform_1, window_bounds = array<i64: 640, 128>}, {pipeline_mode = #tpu.pipeline_mode<synchronous>, transform_indices = @transform_2, window_bounds = array<i64: 1, 128>}, {pipeline_mode = #tpu.pipeline_mode<synchronous>, transform_indices = @transform_3, window_bounds = array<i64: 128, 128>}, {pipeline_mode = #tpu.pipeline_mode<synchronous>, transform_indices = @transform_4, window_bounds = array<i64: 1, 128>}, {pipeline_mode = #tpu.pipeline_mode<synchronous>, transform_indices = @transform_5, window_bounds = array<i64: 128, 128>}, {pipeline_mode = #tpu.pipeline_mode<synchronous>, transform_indices = @transform_6, window_bounds = array<i64: 1, 128>}, {transform_indices = @transform_7, window_bounds = array<i64: 8, 128>}]} {
    %0 = tpu.iota {dimensions = array<i32: 1>} : vector<8x128xi32>
    %c0 = arith.constant 0 : index
    %c0_0 = arith.constant 0 : index
    %1 = vector.load %arg1[%c0, %c0_0] : memref<8x21xi32, #tpu.memory_space<vmem>>, vector<8x1xi32>
    %2 = vector.broadcast %1 : vector<8x1xi32> to vector<8x128xi32>
    %3 = arith.cmpi eq, %0, %2 : vector<8x128xi32>
    %4 = arith.extui %3 : vector<8x128xi1> to vector<8x128xi32>
    %5 = arith.sitofp %4 : vector<8x128xi32> to vector<8x128xf32>
    %6 = arith.truncf %5 : vector<8x128xf32> to vector<8x128xbf16>
    %c0_1 = arith.constant 0 : index
    %c0_2 = arith.constant 0 : index
    %7 = vector.load %arg9[%c0_1, %c0_2] : memref<8x2688xbf16, #tpu.memory_space<vmem>>, vector<8x128xbf16>
    tpu.vector_store %arg9[%c0_1, %c0_2], %6 {strides = array<i32>} : memref<8x2688xbf16, #tpu.memory_space<vmem>>, vector<8x128xbf16>,
    %c0_3 = arith.constant 0 : index
    %c1 = arith.constant 1 : index
    %8 = vector.load %arg1[%c0_3, %c1] : memref<8x21xi32, #tpu.memory_space<vmem>>, vector<8x1xi32>
    %9 = vector.broadcast %8 : vector<8x1xi32> to vector<8x128xi32>
    %10 = arith.cmpi eq, %0, %9 : vector<8x128xi32>
    %11 = arith.extui %10 : vector<8x128xi1> to vector<8x128xi32>
    %12 = arith.sitofp %11 : vector<8x128xi32> to vector<8x128xf32>
    %13 = arith.truncf %12 : vector<8x128xf32> to vector<8x128xbf16>
    %c0_4 = arith.constant 0 : index
    %c128 = arith.constant 128 : index
    %14 = vector.load %arg9[%c0_4, %c128] : memref<8x2688xbf16, #tpu.memory_space<vmem>>, vector<8x128xbf16>
    tpu.vector_store %arg9[%c0_4, %c128], %13 {strides = array<i32>} : memref<8x2688xbf16, #tpu.memory_space<vmem>>, vector<8x128xbf16>,
    %c0_5 = arith.constant 0 : index
    %c2 = arith.constant 2 : index
    %15 = vector.load %arg1[%c0_5, %c2] : memref<8x21xi32, #tpu.memory_space<vmem>>, vector<8x1xi32>
    %16 = vector.broadcast %15 : vector<8x1xi32> to vector<8x128xi32>
    %17 = arith.cmpi eq, %0, %16 : vector<8x128xi32>
    %18 = arith.extui %17 : vector<8x128xi1> to vector<8x128xi32>
    %19 = arith.sitofp %18 : vector<8x128xi32> to vector<8x128xf32>
    %20 = arith.truncf %19 : vector<8x128xf32> to vector<8x128xbf16>
    %c0_6 = arith.constant 0 : index
    %c256 = arith.constant 256 : index
    %21 = vector.load %arg9[%c0_6, %c256] : memref<8x2688xbf16, #tpu.memory_space<vmem>>, vector<8x128xbf16>
    tpu.vector_store %arg9[%c0_6, %c256], %20 {strides = array<i32>} : memref<8x2688xbf16, #tpu.memory_space<vmem>>, vector<8x128xbf16>,
    %c0_7 = arith.constant 0 : index
    %c3 = arith.constant 3 : index
    %22 = vector.load %arg1[%c0_7, %c3] : memref<8x21xi32, #tpu.memory_space<vmem>>, vector<8x1xi32>
    %23 = vector.broadcast %22 : vector<8x1xi32> to vector<8x128xi32>
    %24 = arith.cmpi eq, %0, %23 : vector<8x128xi32>
    %25 = arith.extui %24 : vector<8x128xi1> to vector<8x128xi32>
    %26 = arith.sitofp %25 : vector<8x128xi32> to vector<8x128xf32>
    %27 = arith.truncf %26 : vector<8x128xf32> to vector<8x128xbf16>
    %c0_8 = arith.constant 0 : index
    %c384 = arith.constant 384 : index
    %28 = vector.load %arg9[%c0_8, %c384] : memref<8x2688xbf16, #tpu.memory_space<vmem>>, vector<8x128xbf16>
    tpu.vector_store %arg9[%c0_8, %c384], %27 {strides = array<i32>} : memref<8x2688xbf16, #tpu.memory_space<vmem>>, vector<8x128xbf16>,
    %c0_9 = arith.constant 0 : index
    %c4 = arith.constant 4 : index
    %29 = vector.load %arg1[%c0_9, %c4] : memref<8x21xi32, #tpu.memory_space<vmem>>, vector<8x1xi32>
    %30 = vector.broadcast %29 : vector<8x1xi32> to vector<8x128xi32>
    %31 = arith.cmpi eq, %0, %30 : vector<8x128xi32>
    %32 = arith.extui %31 : vector<8x128xi1> to vector<8x128xi32>
    %33 = arith.sitofp %32 : vector<8x128xi32> to vector<8x128xf32>
    %34 = arith.truncf %33 : vector<8x128xf32> to vector<8x128xbf16>
    %c0_10 = arith.constant 0 : index
    %c512 = arith.constant 512 : index
    %35 = vector.load %arg9[%c0_10, %c512] : memref<8x2688xbf16, #tpu.memory_space<vmem>>, vector<8x128xbf16>
    tpu.vector_store %arg9[%c0_10, %c512], %34 {strides = array<i32>} : memref<8x2688xbf16, #tpu.memory_space<vmem>>, vector<8x128xbf16>,
    %c0_11 = arith.constant 0 : index
    %c5 = arith.constant 5 : index
    %36 = vector.load %arg1[%c0_11, %c5] : memref<8x21xi32, #tpu.memory_space<vmem>>, vector<8x1xi32>
    %37 = vector.broadcast %36 : vector<8x1xi32> to vector<8x128xi32>
    %38 = arith.cmpi eq, %0, %37 : vector<8x128xi32>
    %39 = arith.extui %38 : vector<8x128xi1> to vector<8x128xi32>
    %40 = arith.sitofp %39 : vector<8x128xi32> to vector<8x128xf32>
    %41 = arith.truncf %40 : vector<8x128xf32> to vector<8x128xbf16>
    %c0_12 = arith.constant 0 : index
    %c640 = arith.constant 640 : index
    %42 = vector.load %arg9[%c0_12, %c640] : memref<8x2688xbf16, #tpu.memory_space<vmem>>, vector<8x128xbf16>
    tpu.vector_store %arg9[%c0_12, %c640], %41 {strides = array<i32>} : memref<8x2688xbf16, #tpu.memory_space<vmem>>, vector<8x128xbf16>,
    %c0_13 = arith.constant 0 : index
    %c6 = arith.constant 6 : index
    %43 = vector.load %arg1[%c0_13, %c6] : memref<8x21xi32, #tpu.memory_space<vmem>>, vector<8x1xi32>
    %44 = vector.broadcast %43 : vector<8x1xi32> to vector<8x128xi32>
    %45 = arith.cmpi eq, %0, %44 : vector<8x128xi32>
    %46 = arith.extui %45 : vector<8x128xi1> to vector<8x128xi32>
    %47 = arith.sitofp %46 : vector<8x128xi32> to vector<8x128xf32>
    %48 = arith.truncf %47 : vector<8x128xf32> to vector<8x128xbf16>
    %c0_14 = arith.constant 0 : index
    %c768 = arith.constant 768 : index
    %49 = vector.load %arg9[%c0_14, %c768] : memref<8x2688xbf16, #tpu.memory_space<vmem>>, vector<8x128xbf16>
    tpu.vector_store %arg9[%c0_14, %c768], %48 {strides = array<i32>} : memref<8x2688xbf16, #tpu.memory_space<vmem>>, vector<8x128xbf16>,
    %c0_15 = arith.constant 0 : index
    %c7 = arith.constant 7 : index
    %50 = vector.load %arg1[%c0_15, %c7] : memref<8x21xi32, #tpu.memory_space<vmem>>, vector<8x1xi32>
    %51 = vector.broadcast %50 : vector<8x1xi32> to vector<8x128xi32>
    %52 = arith.cmpi eq, %0, %51 : vector<8x128xi32>
    %53 = arith.extui %52 : vector<8x128xi1> to vector<8x128xi32>
    %54 = arith.sitofp %53 : vector<8x128xi32> to vector<8x128xf32>
    %55 = arith.truncf %54 : vector<8x128xf32> to vector<8x128xbf16>
    %c0_16 = arith.constant 0 : index
    %c896 = arith.constant 896 : index
    %56 = vector.load %arg9[%c0_16, %c896] : memref<8x2688xbf16, #tpu.memory_space<vmem>>, vector<8x128xbf16>
    tpu.vector_store %arg9[%c0_16, %c896], %55 {strides = array<i32>} : memref<8x2688xbf16, #tpu.memory_space<vmem>>, vector<8x128xbf16>,
    %c0_17 = arith.constant 0 : index
    %c8 = arith.constant 8 : index
    %57 = vector.load %arg1[%c0_17, %c8] : memref<8x21xi32, #tpu.memory_space<vmem>>, vector<8x1xi32>
    %58 = vector.broadcast %57 : vector<8x1xi32> to vector<8x128xi32>
    %59 = arith.cmpi eq, %0, %58 : vector<8x128xi32>
    %60 = arith.extui %59 : vector<8x128xi1> to vector<8x128xi32>
    %61 = arith.sitofp %60 : vector<8x128xi32> to vector<8x128xf32>
    %62 = arith.truncf %61 : vector<8x128xf32> to vector<8x128xbf16>
    %c0_18 = arith.constant 0 : index
    %c1024 = arith.constant 1024 : index
    %63 = vector.load %arg9[%c0_18, %c1024] : memref<8x2688xbf16, #tpu.memory_space<vmem>>, vector<8x128xbf16>
    tpu.vector_store %arg9[%c0_18, %c1024], %62 {strides = array<i32>} : memref<8x2688xbf16, #tpu.memory_space<vmem>>, vector<8x128xbf16>,
    %c0_19 = arith.constant 0 : index
    %c9 = arith.constant 9 : index
    %64 = vector.load %arg1[%c0_19, %c9] : memref<8x21xi32, #tpu.memory_space<vmem>>, vector<8x1xi32>
    %65 = vector.broadcast %64 : vector<8x1xi32> to vector<8x128xi32>
    %66 = arith.cmpi eq, %0, %65 : vector<8x128xi32>
    %67 = arith.extui %66 : vector<8x128xi1> to vector<8x128xi32>
    %68 = arith.sitofp %67 : vector<8x128xi32> to vector<8x128xf32>
    %69 = arith.truncf %68 : vector<8x128xf32> to vector<8x128xbf16>
    %c0_20 = arith.constant 0 : index
    %c1152 = arith.constant 1152 : index
    %70 = vector.load %arg9[%c0_20, %c1152] : memref<8x2688xbf16, #tpu.memory_space<vmem>>, vector<8x128xbf16>
    tpu.vector_store %arg9[%c0_20, %c1152], %69 {strides = array<i32>} : memref<8x2688xbf16, #tpu.memory_space<vmem>>, vector<8x128xbf16>,
    %c0_21 = arith.constant 0 : index
    %c10 = arith.constant 10 : index
    %71 = vector.load %arg1[%c0_21, %c10] : memref<8x21xi32, #tpu.memory_space<vmem>>, vector<8x1xi32>
    %72 = vector.broadcast %71 : vector<8x1xi32> to vector<8x128xi32>
    %73 = arith.cmpi eq, %0, %72 : vector<8x128xi32>
    %74 = arith.extui %73 : vector<8x128xi1> to vector<8x128xi32>
    %75 = arith.sitofp %74 : vector<8x128xi32> to vector<8x128xf32>
    %76 = arith.truncf %75 : vector<8x128xf32> to vector<8x128xbf16>
    %c0_22 = arith.constant 0 : index
    %c1280 = arith.constant 1280 : index
    %77 = vector.load %arg9[%c0_22, %c1280] : memref<8x2688xbf16, #tpu.memory_space<vmem>>, vector<8x128xbf16>
    tpu.vector_store %arg9[%c0_22, %c1280], %76 {strides = array<i32>} : memref<8x2688xbf16, #tpu.memory_space<vmem>>, vector<8x128xbf16>,
    %c0_23 = arith.constant 0 : index
    %c11 = arith.constant 11 : index
    %78 = vector.load %arg1[%c0_23, %c11] : memref<8x21xi32, #tpu.memory_space<vmem>>, vector<8x1xi32>
    %79 = vector.broadcast %78 : vector<8x1xi32> to vector<8x128xi32>
    %80 = arith.cmpi eq, %0, %79 : vector<8x128xi32>
    %81 = arith.extui %80 : vector<8x128xi1> to vector<8x128xi32>
    %82 = arith.sitofp %81 : vector<8x128xi32> to vector<8x128xf32>
    %83 = arith.truncf %82 : vector<8x128xf32> to vector<8x128xbf16>
    %c0_24 = arith.constant 0 : index
    %c1408 = arith.constant 1408 : index
    %84 = vector.load %arg9[%c0_24, %c1408] : memref<8x2688xbf16, #tpu.memory_space<vmem>>, vector<8x128xbf16>
    tpu.vector_store %arg9[%c0_24, %c1408], %83 {strides = array<i32>} : memref<8x2688xbf16, #tpu.memory_space<vmem>>, vector<8x128xbf16>,
    %c0_25 = arith.constant 0 : index
    %c12 = arith.constant 12 : index
    %85 = vector.load %arg1[%c0_25, %c12] : memref<8x21xi32, #tpu.memory_space<vmem>>, vector<8x1xi32>
    %86 = vector.broadcast %85 : vector<8x1xi32> to vector<8x128xi32>
    %87 = arith.cmpi eq, %0, %86 : vector<8x128xi32>
    %88 = arith.extui %87 : vector<8x128xi1> to vector<8x128xi32>
    %89 = arith.sitofp %88 : vector<8x128xi32> to vector<8x128xf32>
    %90 = arith.truncf %89 : vector<8x128xf32> to vector<8x128xbf16>
    %c0_26 = arith.constant 0 : index
    %c1536 = arith.constant 1536 : index
    %91 = vector.load %arg9[%c0_26, %c1536] : memref<8x2688xbf16, #tpu.memory_space<vmem>>, vector<8x128xbf16>
    tpu.vector_store %arg9[%c0_26, %c1536], %90 {strides = array<i32>} : memref<8x2688xbf16, #tpu.memory_space<vmem>>, vector<8x128xbf16>,
    %c0_27 = arith.constant 0 : index
    %c13 = arith.constant 13 : index
    %92 = vector.load %arg1[%c0_27, %c13] : memref<8x21xi32, #tpu.memory_space<vmem>>, vector<8x1xi32>
    %93 = vector.broadcast %92 : vector<8x1xi32> to vector<8x128xi32>
    %94 = arith.cmpi eq, %0, %93 : vector<8x128xi32>
    %95 = arith.extui %94 : vector<8x128xi1> to vector<8x128xi32>
    %96 = arith.sitofp %95 : vector<8x128xi32> to vector<8x128xf32>
    %97 = arith.truncf %96 : vector<8x128xf32> to vector<8x128xbf16>
    %c0_28 = arith.constant 0 : index
    %c1664 = arith.constant 1664 : index
    %98 = vector.load %arg9[%c0_28, %c1664] : memref<8x2688xbf16, #tpu.memory_space<vmem>>, vector<8x128xbf16>
    tpu.vector_store %arg9[%c0_28, %c1664], %97 {strides = array<i32>} : memref<8x2688xbf16, #tpu.memory_space<vmem>>, vector<8x128xbf16>,
    %c0_29 = arith.constant 0 : index
    %c14 = arith.constant 14 : index
    %99 = vector.load %arg1[%c0_29, %c14] : memref<8x21xi32, #tpu.memory_space<vmem>>, vector<8x1xi32>
    %100 = vector.broadcast %99 : vector<8x1xi32> to vector<8x128xi32>
    %101 = arith.cmpi eq, %0, %100 : vector<8x128xi32>
    %102 = arith.extui %101 : vector<8x128xi1> to vector<8x128xi32>
    %103 = arith.sitofp %102 : vector<8x128xi32> to vector<8x128xf32>
    %104 = arith.truncf %103 : vector<8x128xf32> to vector<8x128xbf16>
    %c0_30 = arith.constant 0 : index
    %c1792 = arith.constant 1792 : index
    %105 = vector.load %arg9[%c0_30, %c1792] : memref<8x2688xbf16, #tpu.memory_space<vmem>>, vector<8x128xbf16>
    tpu.vector_store %arg9[%c0_30, %c1792], %104 {strides = array<i32>} : memref<8x2688xbf16, #tpu.memory_space<vmem>>, vector<8x128xbf16>,
    %c0_31 = arith.constant 0 : index
    %c15 = arith.constant 15 : index
    %106 = vector.load %arg1[%c0_31, %c15] : memref<8x21xi32, #tpu.memory_space<vmem>>, vector<8x1xi32>
    %107 = vector.broadcast %106 : vector<8x1xi32> to vector<8x128xi32>
    %108 = arith.cmpi eq, %0, %107 : vector<8x128xi32>
    %109 = arith.extui %108 : vector<8x128xi1> to vector<8x128xi32>
    %110 = arith.sitofp %109 : vector<8x128xi32> to vector<8x128xf32>
    %111 = arith.truncf %110 : vector<8x128xf32> to vector<8x128xbf16>
    %c0_32 = arith.constant 0 : index
    %c1920 = arith.constant 1920 : index
    %112 = vector.load %arg9[%c0_32, %c1920] : memref<8x2688xbf16, #tpu.memory_space<vmem>>, vector<8x128xbf16>
    tpu.vector_store %arg9[%c0_32, %c1920], %111 {strides = array<i32>} : memref<8x2688xbf16, #tpu.memory_space<vmem>>, vector<8x128xbf16>,
    %c0_33 = arith.constant 0 : index
    %c16 = arith.constant 16 : index
    %113 = vector.load %arg1[%c0_33, %c16] : memref<8x21xi32, #tpu.memory_space<vmem>>, vector<8x1xi32>
    %114 = vector.broadcast %113 : vector<8x1xi32> to vector<8x128xi32>
    %115 = arith.cmpi eq, %0, %114 : vector<8x128xi32>
    %116 = arith.extui %115 : vector<8x128xi1> to vector<8x128xi32>
    %117 = arith.sitofp %116 : vector<8x128xi32> to vector<8x128xf32>
    %118 = arith.truncf %117 : vector<8x128xf32> to vector<8x128xbf16>
    %c0_34 = arith.constant 0 : index
    %c2048 = arith.constant 2048 : index
    %119 = vector.load %arg9[%c0_34, %c2048] : memref<8x2688xbf16, #tpu.memory_space<vmem>>, vector<8x128xbf16>
    tpu.vector_store %arg9[%c0_34, %c2048], %118 {strides = array<i32>} : memref<8x2688xbf16, #tpu.memory_space<vmem>>, vector<8x128xbf16>,
    %c0_35 = arith.constant 0 : index
    %c17 = arith.constant 17 : index
    %120 = vector.load %arg1[%c0_35, %c17] : memref<8x21xi32, #tpu.memory_space<vmem>>, vector<8x1xi32>
    %121 = vector.broadcast %120 : vector<8x1xi32> to vector<8x128xi32>
    %122 = arith.cmpi eq, %0, %121 : vector<8x128xi32>
    %123 = arith.extui %122 : vector<8x128xi1> to vector<8x128xi32>
    %124 = arith.sitofp %123 : vector<8x128xi32> to vector<8x128xf32>
    %125 = arith.truncf %124 : vector<8x128xf32> to vector<8x128xbf16>
    %c0_36 = arith.constant 0 : index
    %c2176 = arith.constant 2176 : index
    %126 = vector.load %arg9[%c0_36, %c2176] : memref<8x2688xbf16, #tpu.memory_space<vmem>>, vector<8x128xbf16>
    tpu.vector_store %arg9[%c0_36, %c2176], %125 {strides = array<i32>} : memref<8x2688xbf16, #tpu.memory_space<vmem>>, vector<8x128xbf16>,
    %c0_37 = arith.constant 0 : index
    %c18 = arith.constant 18 : index
    %127 = vector.load %arg1[%c0_37, %c18] : memref<8x21xi32, #tpu.memory_space<vmem>>, vector<8x1xi32>
    %128 = vector.broadcast %127 : vector<8x1xi32> to vector<8x128xi32>
    %129 = arith.cmpi eq, %0, %128 : vector<8x128xi32>
    %130 = arith.extui %129 : vector<8x128xi1> to vector<8x128xi32>
    %131 = arith.sitofp %130 : vector<8x128xi32> to vector<8x128xf32>
    %132 = arith.truncf %131 : vector<8x128xf32> to vector<8x128xbf16>
    %c0_38 = arith.constant 0 : index
    %c2304 = arith.constant 2304 : index
    %133 = vector.load %arg9[%c0_38, %c2304] : memref<8x2688xbf16, #tpu.memory_space<vmem>>, vector<8x128xbf16>
    tpu.vector_store %arg9[%c0_38, %c2304], %132 {strides = array<i32>} : memref<8x2688xbf16, #tpu.memory_space<vmem>>, vector<8x128xbf16>,
    %c0_39 = arith.constant 0 : index
    %c19 = arith.constant 19 : index
    %134 = vector.load %arg1[%c0_39, %c19] : memref<8x21xi32, #tpu.memory_space<vmem>>, vector<8x1xi32>
    %135 = vector.broadcast %134 : vector<8x1xi32> to vector<8x128xi32>
    %136 = arith.cmpi eq, %0, %135 : vector<8x128xi32>
    %137 = arith.extui %136 : vector<8x128xi1> to vector<8x128xi32>
    %138 = arith.sitofp %137 : vector<8x128xi32> to vector<8x128xf32>
    %139 = arith.truncf %138 : vector<8x128xf32> to vector<8x128xbf16>
    %c0_40 = arith.constant 0 : index
    %c2432 = arith.constant 2432 : index
    %140 = vector.load %arg9[%c0_40, %c2432] : memref<8x2688xbf16, #tpu.memory_space<vmem>>, vector<8x128xbf16>
    tpu.vector_store %arg9[%c0_40, %c2432], %139 {strides = array<i32>} : memref<8x2688xbf16, #tpu.memory_space<vmem>>, vector<8x128xbf16>,
    %c0_41 = arith.constant 0 : index
    %c20 = arith.constant 20 : index
    %141 = vector.load %arg1[%c0_41, %c20] : memref<8x21xi32, #tpu.memory_space<vmem>>, vector<8x1xi32>
    %142 = vector.broadcast %141 : vector<8x1xi32> to vector<8x128xi32>
    %143 = arith.cmpi eq, %0, %142 : vector<8x128xi32>
    %144 = arith.extui %143 : vector<8x128xi1> to vector<8x128xi32>
    %145 = arith.sitofp %144 : vector<8x128xi32> to vector<8x128xf32>
    %146 = arith.truncf %145 : vector<8x128xf32> to vector<8x128xbf16>
    %c0_42 = arith.constant 0 : index
    %c2560 = arith.constant 2560 : index
    %147 = vector.load %arg9[%c0_42, %c2560] : memref<8x2688xbf16, #tpu.memory_space<vmem>>, vector<8x128xbf16>
    tpu.vector_store %arg9[%c0_42, %c2560], %146 {strides = array<i32>} : memref<8x2688xbf16, #tpu.memory_space<vmem>>, vector<8x128xbf16>,
    %c0_43 = arith.constant 0 : index
    %c0_44 = arith.constant 0 : index
    %148 = vector.load %arg2[%c0_43, %c0_44] : memref<640x128xbf16, #tpu.memory_space<vmem>>, vector<640x128xbf16>
    %cst = arith.constant 0xFF800000 : f32
    %149 = vector.broadcast %cst : f32 to vector<8x128xf32>
    %c0_45 = arith.constant 0 : index
    %c0_46 = arith.constant 0 : index
    %150 = vector.load %arg9[%c0_45, %c0_46] : memref<8x2688xbf16, #tpu.memory_space<vmem>>, vector<8x640xbf16>
    %cst_47 = arith.constant dense<0.000000e+00> : vector<8x128xf32>
    %151 = tpu.matmul %150, %148, %cst_47 {dimension_numbers = #tpu.dot_dimension_numbers<[1], [0], [0], [1], [0, 0, 1, 1], [], []>} : vector<8x640xbf16>, vector<640x128xbf16>, vector<8x128xf32> -> vector<8x128xf32>
    %152 = arith.maximumf %149, %151 : vector<8x128xf32>
    %c0_48 = arith.constant 0 : index
    %c128_49 = arith.constant 128 : index
    %153 = vector.load %arg9[%c0_48, %c128_49] : memref<8x2688xbf16, #tpu.memory_space<vmem>>, vector<8x640xbf16>
    %cst_50 = arith.constant dense<0.000000e+00> : vector<8x128xf32>
    %154 = tpu.matmul %153, %148, %cst_50 {dimension_numbers = #tpu.dot_dimension_numbers<[1], [0], [0], [1], [0, 0, 1, 1], [], []>} : vector<8x640xbf16>, vector<640x128xbf16>, vector<8x128xf32> -> vector<8x128xf32>
    %155 = arith.maximumf %152, %154 : vector<8x128xf32>
    %c0_51 = arith.constant 0 : index
    %c256_52 = arith.constant 256 : index
    %156 = vector.load %arg9[%c0_51, %c256_52] : memref<8x2688xbf16, #tpu.memory_space<vmem>>, vector<8x640xbf16>
    %cst_53 = arith.constant dense<0.000000e+00> : vector<8x128xf32>
    %157 = tpu.matmul %156, %148, %cst_53 {dimension_numbers = #tpu.dot_dimension_numbers<[1], [0], [0], [1], [0, 0, 1, 1], [], []>} : vector<8x640xbf16>, vector<640x128xbf16>, vector<8x128xf32> -> vector<8x128xf32>
    %158 = arith.maximumf %155, %157 : vector<8x128xf32>
    %c0_54 = arith.constant 0 : index
    %c384_55 = arith.constant 384 : index
    %159 = vector.load %arg9[%c0_54, %c384_55] : memref<8x2688xbf16, #tpu.memory_space<vmem>>, vector<8x640xbf16>
    %cst_56 = arith.constant dense<0.000000e+00> : vector<8x128xf32>
    %160 = tpu.matmul %159, %148, %cst_56 {dimension_numbers = #tpu.dot_dimension_numbers<[1], [0], [0], [1], [0, 0, 1, 1], [], []>} : vector<8x640xbf16>, vector<640x128xbf16>, vector<8x128xf32> -> vector<8x128xf32>
    %161 = arith.maximumf %158, %160 : vector<8x128xf32>
    %c0_57 = arith.constant 0 : index
    %c512_58 = arith.constant 512 : index
    %162 = vector.load %arg9[%c0_57, %c512_58] : memref<8x2688xbf16, #tpu.memory_space<vmem>>, vector<8x640xbf16>
    %cst_59 = arith.constant dense<0.000000e+00> : vector<8x128xf32>
    %163 = tpu.matmul %162, %148, %cst_59 {dimension_numbers = #tpu.dot_dimension_numbers<[1], [0], [0], [1], [0, 0, 1, 1], [], []>} : vector<8x640xbf16>, vector<640x128xbf16>, vector<8x128xf32> -> vector<8x128xf32>
    %164 = arith.maximumf %161, %163 : vector<8x128xf32>
    %c0_60 = arith.constant 0 : index
    %c640_61 = arith.constant 640 : index
    %165 = vector.load %arg9[%c0_60, %c640_61] : memref<8x2688xbf16, #tpu.memory_space<vmem>>, vector<8x640xbf16>
    %cst_62 = arith.constant dense<0.000000e+00> : vector<8x128xf32>
    %166 = tpu.matmul %165, %148, %cst_62 {dimension_numbers = #tpu.dot_dimension_numbers<[1], [0], [0], [1], [0, 0, 1, 1], [], []>} : vector<8x640xbf16>, vector<640x128xbf16>, vector<8x128xf32> -> vector<8x128xf32>
    %167 = arith.maximumf %164, %166 : vector<8x128xf32>
    %c0_63 = arith.constant 0 : index
    %c768_64 = arith.constant 768 : index
    %168 = vector.load %arg9[%c0_63, %c768_64] : memref<8x2688xbf16, #tpu.memory_space<vmem>>, vector<8x640xbf16>
    %cst_65 = arith.constant dense<0.000000e+00> : vector<8x128xf32>
    %169 = tpu.matmul %168, %148, %cst_65 {dimension_numbers = #tpu.dot_dimension_numbers<[1], [0], [0], [1], [0, 0, 1, 1], [], []>} : vector<8x640xbf16>, vector<640x128xbf16>, vector<8x128xf32> -> vector<8x128xf32>
    %170 = arith.maximumf %167, %169 : vector<8x128xf32>
    %c0_66 = arith.constant 0 : index
    %c896_67 = arith.constant 896 : index
    %171 = vector.load %arg9[%c0_66, %c896_67] : memref<8x2688xbf16, #tpu.memory_space<vmem>>, vector<8x640xbf16>
    %cst_68 = arith.constant dense<0.000000e+00> : vector<8x128xf32>
    %172 = tpu.matmul %171, %148, %cst_68 {dimension_numbers = #tpu.dot_dimension_numbers<[1], [0], [0], [1], [0, 0, 1, 1], [], []>} : vector<8x640xbf16>, vector<640x128xbf16>, vector<8x128xf32> -> vector<8x128xf32>
    %173 = arith.maximumf %170, %172 : vector<8x128xf32>
    %c0_69 = arith.constant 0 : index
    %c1024_70 = arith.constant 1024 : index
    %174 = vector.load %arg9[%c0_69, %c1024_70] : memref<8x2688xbf16, #tpu.memory_space<vmem>>, vector<8x640xbf16>
    %cst_71 = arith.constant dense<0.000000e+00> : vector<8x128xf32>
    %175 = tpu.matmul %174, %148, %cst_71 {dimension_numbers = #tpu.dot_dimension_numbers<[1], [0], [0], [1], [0, 0, 1, 1], [], []>} : vector<8x640xbf16>, vector<640x128xbf16>, vector<8x128xf32> -> vector<8x128xf32>
    %176 = arith.maximumf %173, %175 : vector<8x128xf32>
    %c0_72 = arith.constant 0 : index
    %c1152_73 = arith.constant 1152 : index
    %177 = vector.load %arg9[%c0_72, %c1152_73] : memref<8x2688xbf16, #tpu.memory_space<vmem>>, vector<8x640xbf16>
    %cst_74 = arith.constant dense<0.000000e+00> : vector<8x128xf32>
    %178 = tpu.matmul %177, %148, %cst_74 {dimension_numbers = #tpu.dot_dimension_numbers<[1], [0], [0], [1], [0, 0, 1, 1], [], []>} : vector<8x640xbf16>, vector<640x128xbf16>, vector<8x128xf32> -> vector<8x128xf32>
    %179 = arith.maximumf %176, %178 : vector<8x128xf32>
    %c0_75 = arith.constant 0 : index
    %c1280_76 = arith.constant 1280 : index
    %180 = vector.load %arg9[%c0_75, %c1280_76] : memref<8x2688xbf16, #tpu.memory_space<vmem>>, vector<8x640xbf16>
    %cst_77 = arith.constant dense<0.000000e+00> : vector<8x128xf32>
    %181 = tpu.matmul %180, %148, %cst_77 {dimension_numbers = #tpu.dot_dimension_numbers<[1], [0], [0], [1], [0, 0, 1, 1], [], []>} : vector<8x640xbf16>, vector<640x128xbf16>, vector<8x128xf32> -> vector<8x128xf32>
    %182 = arith.maximumf %179, %181 : vector<8x128xf32>
    %c0_78 = arith.constant 0 : index
    %c1408_79 = arith.constant 1408 : index
    %183 = vector.load %arg9[%c0_78, %c1408_79] : memref<8x2688xbf16, #tpu.memory_space<vmem>>, vector<8x640xbf16>
    %cst_80 = arith.constant dense<0.000000e+00> : vector<8x128xf32>
    %184 = tpu.matmul %183, %148, %cst_80 {dimension_numbers = #tpu.dot_dimension_numbers<[1], [0], [0], [1], [0, 0, 1, 1], [], []>} : vector<8x640xbf16>, vector<640x128xbf16>, vector<8x128xf32> -> vector<8x128xf32>
    %185 = arith.maximumf %182, %184 : vector<8x128xf32>
    %c0_81 = arith.constant 0 : index
    %c1536_82 = arith.constant 1536 : index
    %186 = vector.load %arg9[%c0_81, %c1536_82] : memref<8x2688xbf16, #tpu.memory_space<vmem>>, vector<8x640xbf16>
    %cst_83 = arith.constant dense<0.000000e+00> : vector<8x128xf32>
    %187 = tpu.matmul %186, %148, %cst_83 {dimension_numbers = #tpu.dot_dimension_numbers<[1], [0], [0], [1], [0, 0, 1, 1], [], []>} : vector<8x640xbf16>, vector<640x128xbf16>, vector<8x128xf32> -> vector<8x128xf32>
    %188 = arith.maximumf %185, %187 : vector<8x128xf32>
    %c0_84 = arith.constant 0 : index
    %c1664_85 = arith.constant 1664 : index
    %189 = vector.load %arg9[%c0_84, %c1664_85] : memref<8x2688xbf16, #tpu.memory_space<vmem>>, vector<8x640xbf16>
    %cst_86 = arith.constant dense<0.000000e+00> : vector<8x128xf32>
    %190 = tpu.matmul %189, %148, %cst_86 {dimension_numbers = #tpu.dot_dimension_numbers<[1], [0], [0], [1], [0, 0, 1, 1], [], []>} : vector<8x640xbf16>, vector<640x128xbf16>, vector<8x128xf32> -> vector<8x128xf32>
    %191 = arith.maximumf %188, %190 : vector<8x128xf32>
    %c0_87 = arith.constant 0 : index
    %c1792_88 = arith.constant 1792 : index
    %192 = vector.load %arg9[%c0_87, %c1792_88] : memref<8x2688xbf16, #tpu.memory_space<vmem>>, vector<8x640xbf16>
    %cst_89 = arith.constant dense<0.000000e+00> : vector<8x128xf32>
    %193 = tpu.matmul %192, %148, %cst_89 {dimension_numbers = #tpu.dot_dimension_numbers<[1], [0], [0], [1], [0, 0, 1, 1], [], []>} : vector<8x640xbf16>, vector<640x128xbf16>, vector<8x128xf32> -> vector<8x128xf32>
    %194 = arith.maximumf %191, %193 : vector<8x128xf32>
    %c0_90 = arith.constant 0 : index
    %c1920_91 = arith.constant 1920 : index
    %195 = vector.load %arg9[%c0_90, %c1920_91] : memref<8x2688xbf16, #tpu.memory_space<vmem>>, vector<8x640xbf16>
    %cst_92 = arith.constant dense<0.000000e+00> : vector<8x128xf32>
    %196 = tpu.matmul %195, %148, %cst_92 {dimension_numbers = #tpu.dot_dimension_numbers<[1], [0], [0], [1], [0, 0, 1, 1], [], []>} : vector<8x640xbf16>, vector<640x128xbf16>, vector<8x128xf32> -> vector<8x128xf32>
    %197 = arith.maximumf %194, %196 : vector<8x128xf32>
    %c0_93 = arith.constant 0 : index
    %c2048_94 = arith.constant 2048 : index
    %198 = vector.load %arg9[%c0_93, %c2048_94] : memref<8x2688xbf16, #tpu.memory_space<vmem>>, vector<8x640xbf16>
    %cst_95 = arith.constant dense<0.000000e+00> : vector<8x128xf32>
    %199 = tpu.matmul %198, %148, %cst_95 {dimension_numbers = #tpu.dot_dimension_numbers<[1], [0], [0], [1], [0, 0, 1, 1], [], []>} : vector<8x640xbf16>, vector<640x128xbf16>, vector<8x128xf32> -> vector<8x128xf32>
    %200 = arith.maximumf %197, %199 : vector<8x128xf32>
    %c0_96 = arith.constant 0 : index
    %c0_97 = arith.constant 0 : index
    %201 = vector.load %arg3[%c0_96, %c0_97] : memref<1x128xf32, #tpu.memory_space<vmem>>, vector<1x128xf32>
    %202 = vector.broadcast %201 : vector<1x128xf32> to vector<8x128xf32>
    %203 = arith.addf %200, %202 : vector<8x128xf32>
    %cst_98 = arith.constant 0.000000e+00 : f32
    %204 = vector.broadcast %cst_98 : f32 to vector<8x128xf32>
    %205 = arith.maximumf %203, %204 : vector<8x128xf32>
    %206 = arith.truncf %205 : vector<8x128xf32> to vector<8x128xbf16>
    %c0_99 = arith.constant 0 : index
    %c0_100 = arith.constant 0 : index
    %207 = vector.load %arg4[%c0_99, %c0_100] : memref<128x128xbf16, #tpu.memory_space<vmem>>, vector<128x128xbf16>
    %cst_101 = arith.constant dense<0.000000e+00> : vector<8x128xf32>
    %208 = tpu.matmul %206, %207, %cst_101 {dimension_numbers = #tpu.dot_dimension_numbers<[1], [0], [0], [1], [0, 0, 1, 1], [], []>} : vector<8x128xbf16>, vector<128x128xbf16>, vector<8x128xf32> -> vector<8x128xf32>
    %c0_102 = arith.constant 0 : index
    %c0_103 = arith.constant 0 : index
    %209 = vector.load %arg5[%c0_102, %c0_103] : memref<1x128xf32, #tpu.memory_space<vmem>>, vector<1x128xf32>
    %210 = vector.broadcast %209 : vector<1x128xf32> to vector<8x128xf32>
    %211 = arith.addf %208, %210 : vector<8x128xf32>
    %cst_104 = arith.constant 0.000000e+00 : f32
    %212 = vector.broadcast %cst_104 : f32 to vector<8x128xf32>
    %213 = arith.maximumf %211, %212 : vector<8x128xf32>
    %c0_105 = arith.constant 0 : index
    %c0_106 = arith.constant 0 : index
    %214 = vector.load %arg6[%c0_105, %c0_106] : memref<128x128xbf16, #tpu.memory_space<vmem>>, vector<128x128xbf16>
    %cst_107 = arith.constant dense<0.000000e+00> : vector<8x128xf32>
    %215 = tpu.matmul %206, %214, %cst_107 {dimension_numbers = #tpu.dot_dimension_numbers<[1], [0], [0], [1], [0, 0, 1, 1], [], []>} : vector<8x128xbf16>, vector<128x128xbf16>, vector<8x128xf32> -> vector<8x128xf32>
    %c0_108 = arith.constant 0 : index
    %c0_109 = arith.constant 0 : index
    %216 = vector.load %arg7[%c0_108, %c0_109] : memref<1x128xf32, #tpu.memory_space<vmem>>, vector<1x128xf32>
    %217 = vector.broadcast %216 : vector<1x128xf32> to vector<8x128xf32>
    %218 = arith.addf %215, %217 : vector<8x128xf32>
    %219 = arith.negf %218 : vector<8x128xf32>
    %220 = math.exp %219 : vector<8x128xf32>
    %cst_110 = arith.constant 1.000000e+00 : f32
    %221 = vector.broadcast %cst_110 : f32 to vector<8x128xf32>
    %222 = arith.addf %221, %220 : vector<8x128xf32>
    %223 = arith.divf %221, %222 : vector<8x128xf32>
    %224 = arith.subf %213, %205 : vector<8x128xf32>
    %225 = arith.mulf %223, %224 : vector<8x128xf32>
    %226 = arith.addf %205, %225 : vector<8x128xf32>
    %c0_111 = arith.constant 0 : index
    %c0_112 = arith.constant 0 : index
    %227 = vector.load %arg8[%c0_111, %c0_112] : memref<8x128xf32, #tpu.memory_space<vmem>>, vector<8x128xf32>
    tpu.vector_store %arg8[%c0_111, %c0_112], %226 {strides = array<i32>} : memref<8x128xf32, #tpu.memory_space<vmem>>, vector<8x128xf32>,
    return
  }
  func.func @transform_0(%arg0: i32) -> (i32, i32) {
    %c0_i32 = arith.constant 0 : i32
    %c0_i32_0 = arith.constant 0 : i32
    return %arg0, %c0_i32 : i32, i32
  }
  func.func @transform_1(%arg0: i32) -> (i32, i32) {
    %c0_i32 = arith.constant 0 : i32
    %c0_i32_0 = arith.constant 0 : i32
    %c0_i32_1 = arith.constant 0 : i32
    return %c0_i32, %c0_i32_0 : i32, i32
  }
  func.func @transform_2(%arg0: i32) -> (i32, i32) {
    %c0_i32 = arith.constant 0 : i32
    %c0_i32_0 = arith.constant 0 : i32
    %c0_i32_1 = arith.constant 0 : i32
    return %c0_i32, %c0_i32_0 : i32, i32
  }
  func.func @transform_3(%arg0: i32) -> (i32, i32) {
    %c0_i32 = arith.constant 0 : i32
    %c0_i32_0 = arith.constant 0 : i32
    %c0_i32_1 = arith.constant 0 : i32
    return %c0_i32, %c0_i32_0 : i32, i32
  }
  func.func @transform_4(%arg0: i32) -> (i32, i32) {
    %c0_i32 = arith.constant 0 : i32
    %c0_i32_0 = arith.constant 0 : i32
    %c0_i32_1 = arith.constant 0 : i32
    return %c0_i32, %c0_i32_0 : i32, i32
  }
  func.func @transform_5(%arg0: i32) -> (i32, i32) {
    %c0_i32 = arith.constant 0 : i32
    %c0_i32_0 = arith.constant 0 : i32
    %c0_i32_1 = arith.constant 0 : i32
    return %c0_i32, %c0_i32_0 : i32, i32
  }
  func.func @transform_6(%arg0: i32) -> (i32, i32) {
    %c0_i32 = arith.constant 0 : i32
    %c0_i32_0 = arith.constant 0 : i32
    %c0_i32_1 = arith.constant 0 : i32
    return %c0_i32, %c0_i32_0 : i32, i32
  }
  func.func @transform_7(%arg0: i32) -> (i32, i32) {
    %c0_i32 = arith.constant 0 : i32
    %c0_i32_0 = arith.constant 0 : i32
    return %arg0, %c0_i32 : i32, i32
  }
}

</mosaic_0001>

<bundles_post_ra>
// kernel: tpu_custom_call.1
= control target key start
LH: loop header
LB: loop body
LE: loop exit
PB: predicated region body
PF: predicated region fallthrough
CT: control target
= control target key end

     0   :  { %12 = vsyncpa [#allocation4], 0  ;;  %s7346_s0 = inlined_call_operand.hbm [shape: s32[16,21], index: 0, kind: input, shape index: {}]   ;;  %s7347_s1 = inlined_call_operand.hbm [shape: bf16[640,128], index: 1, kind: input, shape index: {}]   ;;  %s7348_s2 = inlined_call_operand.vmem [shape: f32[1,128], index: 2, kind: input, shape index: {}]   ;;  %s7349_s3 = inlined_call_operand.hbm [shape: bf16[128,128], index: 3, kind: input, shape index: {}]   ;;  %s7350_s4 = inlined_call_operand.vmem [shape: f32[1,128], index: 4, kind: input, shape index: {}]   ;;  %s7351_s5 = inlined_call_operand.hbm [shape: bf16[128,128], index: 5, kind: input, shape index: {}]   ;;  %s7352_s6 = inlined_call_operand.vmem [shape: f32[1,128], index: 6, kind: input, shape index: {}]   ;;  %s7353_s7 = inlined_call_operand.hbm [shape: f32[16,128], index: 7, kind: output, shape index: {}]  }
   0x1   :  { %14 = vsyncpa [#allocation4 + $0x1], 0 }
   0x2   :  { %15 = vsyncpa [#allocation7], 0 }
   0x3   :  { %16 = vsyncpa [#allocation10], 0 }
   0x4   :  { %17 = vsyncpa [#allocation5], 0 }
   0x5   :  { %19 = vsyncpa [#allocation5 + $0x1], 0  ;;  %s5680_s24 = smov 0   ;;  %s5682_s25 = smov 0  }
   0x6   :  { %s5684_s26 = smov 0   ;;  %s5686_s27 = smov 0  }
   0x7 LB: > { %s5701_s28 = sadd.s32 4294967295, %s5608_s27   ;;  %s3619_s29 = sadd.s32 4294967294, %s5608_s27   ;;  %s5608_s27 = sphi %s5686_s27, %s7379_s27   ;;  %s5604_s26 = sphi %s5684_s26, %s7378_s26   ;;  %s5600_s25 = sphi %s5682_s25, %s7377_s25   ;;  %s5596_s24 = sphi %s5680_s24, %s7376_s24  }
   0x8   : > { %p45_p0 = scmp.ne.s32.totalorder %s5600_s25, %s5596_s24  ;;  %p7354_p1 = scmp.eq.s32.totalorder %s5701_s28, 0 }
   0x9   : > { %p201_p3 = scmp.eq.s32.totalorder %s3619_s29, 1  ;;  %p3620_p5 = scmp.ge.s32.totalorder %s5608_s27, 1 }
   0xa   : > { %p5710_p4 = por %p7354_p1, %p45_p0  ;;  %p208_p7 = scmp.lt.s32.totalorder %s5608_s27, 3 }
   0xb   : > { %p5715_p6 = por %p201_p3, %p45_p0  ;;  %s5610_s10 = smov [#allocation6]  }
   0xc   : > { %s7358_s30 = scalar_select %p5710_p4, 1, 0 }
   0xd   : > { %s7359_s8 = scalar_select %p5715_p6, 1, 0 }
   0xe   : > { %p5720_p8 = pnand %p3620_p5, %p208_p7  ;;  %s220_s11 = sshll.u32 %s5610_s10, 4  ;;  %s5724_s11 = int_to_ptr.vmem [resolvable:$true] %s220_s11 }
   0xf   : > { %7360 = sst [smem:[#allocation16_spill]] %s7359_s8  ;;  %s5611_s13 = smov [#allocation8]  }
  0x10   : > { %s7361_s9 = scalar_select %p5720_p8, 1, 0 }
  0x11   : > { %p5118_p9 = pneg %p5720_p8  ;;  %s236_s14 = sshll.u32 %s5611_s13, 4  ;;  %s5735_s14 = int_to_ptr.vmem [resolvable:$true] %s236_s14 }
  0x12   : > { %s5612_s15 = smov [#allocation9]   ;;  %s5420_s19 = scalar_lea.hbm %s7347_s1, 5120 }
  0x13   : > { %p5731_p11 = pnand %p5118_p9, %p7354_p1  ;;  %s5737_s16 = sshll.u32 %s5612_s15, 4  ;;  %s253_s16 = int_to_ptr.vmem [resolvable:$true] %s5737_s16 }
  0x14   : > { %p5421_p12 = scmp.ne.s32.totalorder %s7347_s1, %s5420_s19  ;;  %p5427_p5 = scmp.lt.u32.totalorder %s5420_s19, %s7347_s1 }
  0x15   : > { %p5747_p13 = pneg %p5731_p11 }
  0x17   : > { %p5423_p0 = pnand %p5747_p13, %p5421_p12 }
  0x19   : > { %p5424_p3 = pneg %p5423_p0 }
  0x1b   : > { %p5429_p7 = pnand %p5427_p5, %p5424_p3 }
  0x1d   : > { %5432 = shalt.err (!%p5429_p7)
}
  0x1e   : > { %s5433_s10 = scalar_lea.vmem %s5724_s11, 5120  ;;  %p5441_p2 = scmp.lt.s32.totalorder %s5724_s11, %s5724_s11 }
  0x1f   : > { %p5434_p9 = scmp.ne.s32.totalorder %s5724_s11, %s5433_s10  ;;  %p5442_p6 = scmp.lt.s32.totalorder %s5433_s10, %s5433_s10 }
  0x21   : > { %p5436_p10 = pnand %p5434_p9, %p5747_p13  ;;  %p5443_p12 = por %p5442_p6, %p5441_p2 }
  0x23   : > { %p5437_p1 = pneg %p5436_p10 }
  0x25   : > { %p5444_p0 = pnand %p5443_p12, %p5437_p1 }
  0x27   : > { %5447 = shalt.err (!%p5444_p0)
}
  0x28   : > { %s5613_s13 = smov 64   ;;  %s5614_s15 = smov 4  }
  0x29   : > { %5121 = dma.hbm_to_vmem [thread:$0]  (!%p5731_p11), %s7347_s1, 5120, %s5724_s11, [#allocation7], %s5613_s13, %s5613_s13, %s5614_s15  }
  0x2a   : > { %s5448_s21 = scalar_lea.hbm %s7349_s3, 1024 }
  0x2b   : > { %p5449_p1 = scmp.ne.s32.totalorder %s7349_s3, %s5448_s21  ;;  %p5455_p10 = scmp.lt.u32.totalorder %s5448_s21, %s7349_s3 }
  0x2d   : > { %p5451_p2 = pnand %p5449_p1, %p5747_p13 }
  0x2f   : > { %p5452_p6 = pneg %p5451_p2 }
  0x31   : > { %p5457_p3 = pnand %p5455_p10, %p5452_p6 }
  0x33   : > { %5460 = shalt.err (!%p5457_p3)
}
  0x34   : > { %s5461_s11 = scalar_lea.vmem %s5735_s14, 1024  ;;  %p5469_p12 = scmp.lt.s32.totalorder %s5735_s14, %s5735_s14 }
  0x35   : > { %p5462_p5 = scmp.ne.s32.totalorder %s5735_s14, %s5461_s11  ;;  %p5470_p0 = scmp.lt.s32.totalorder %s5461_s11, %s5461_s11 }
  0x37   : > { %p5464_p7 = pnand %p5462_p5, %p5747_p13  ;;  %p5471_p1 = por %p5470_p0, %p5469_p12 }
  0x39   : > { %p5465_p9 = pneg %p5464_p7 }
  0x3b   : > { %p5472_p2 = pnand %p5471_p1, %p5465_p9 }
  0x3d   : > { %5475 = shalt.err (!%p5472_p2)
}
  0x3e   : > { %5124 = dma.hbm_to_vmem [thread:$0]  (!%p5731_p11), %s7349_s3, 1024, %s5735_s14, [#allocation7], %s5613_s13, %s5613_s13, %s5614_s15  }
  0x3f   : > { %s5476_s20 = scalar_lea.hbm %s7351_s5, 1024 }
  0x40   : > { %p5477_p6 = scmp.ne.s32.totalorder %s7351_s5, %s5476_s20  ;;  %p5483_p5 = scmp.lt.u32.totalorder %s5476_s20, %s7351_s5 }
  0x42   : > { %p5479_p10 = pnand %p5477_p6, %p5747_p13 }
  0x44   : > { %p5480_p3 = pneg %p5479_p10 }
  0x46   : > { %p5485_p7 = pnand %p5483_p5, %p5480_p3 }
  0x48   : > { %5488 = shalt.err (!%p5485_p7)
}
  0x49   : > { %s5489_s11 = scalar_lea.vmem %s253_s16, 1024  ;;  %p5497_p1 = scmp.lt.s32.totalorder %s253_s16, %s253_s16 }
  0x4a   : > { %p5490_p9 = scmp.ne.s32.totalorder %s253_s16, %s5489_s11  ;;  %p5498_p2 = scmp.lt.s32.totalorder %s5489_s11, %s5489_s11 }
  0x4c   : > { %p5492_p12 = pnand %p5490_p9, %p5747_p13  ;;  %p5499_p4 = por %p5498_p2, %p5497_p1 }
  0x4e   : > { %p5493_p0 = pneg %p5492_p12 }
  0x50   : > { %p5500_p8 = pnand %p5499_p4, %p5493_p0 }
  0x52   : > { %5503 = shalt.err (!%p5500_p8)
}
  0x53   : > { %5127 = dma.hbm_to_vmem [thread:$0]  (!%p5731_p11), %s7351_s5, 1024, %s253_s16, [#allocation10], %s5613_s13, %s5613_s13, %s5614_s15  }
  0x54   : > { %s5820_s22 = sadd.s32 1, %s5608_s27   ;;  %s32_s17 = sadd.s32 1, %s5604_s26 }
  0x55   : > { %s29_s12 = ssub.s32 %s5608_s27, %s5820_s22  ;;  %p39_p8 = scmp.ne.s32.totalorder %s5604_s26, %s5600_s25 }
  0x56   : > { %p30_p4 = scmp.eq.s32.totalorder %s29_s12, 0  ;;  %p40_p13 = scmp.eq.s32.totalorder %s5608_s27, 0 }
  0x57   : > { %p5139_p6 = scmp.lt.s32.totalorder %s5608_s27, 2  ;;  %p7364_p3 = scmp.eq.s32.totalorder %s5701_s28, 1 }
  0x58   : > { %s5830_s18 = scalar_select %p30_p4, %s5604_s26, %s32_s17  }
  0x59   : > { %p41_p10 = por %p40_p13, %p39_p8  ;;  %p5834_p5 = por %p7364_p3, %p39_p8 }
  0x5a   : > { %s269_s20 = sand.u32 1, %s5604_s26   ;;  %s3626_s21 = sshll.u32 %s5608_s27, 7 }
  0x5b   : > { %s3625_s16 = sshll.u32 %s269_s20, 3  ;;  %s5843_s23 = scalar_lea.hbm %s7346_s0, %s3626_s21 }
  0x5c   : > { %s273_s29 = scalar_lea.vmem [#allocation3], %s3625_s16  ;;  %p5845_p11 = pnand %p5139_p6, %p41_p10 }
  0x5d   : > { %s280_s10 = sshll.u32 %s273_s29, 4  ;;  %s270_s14 = scalar_lea.sflag [#allocation4], %s269_s20  ;;  %s5849_s10 = int_to_ptr.vmem [resolvable:$true] %s280_s10 }
  0x5e   : > { %s5504_s8 = scalar_lea.hbm %s5843_s23, 128  ;;  %p5506_p9 = pneg %p5845_p11 }
  0x5f   : > { %p5505_p7 = scmp.ne.s32.totalorder %s5843_s23, %s5504_s8  ;;  %s5509_s21 = scalar_lea.hbm %s7346_s0, 256 }
  0x60   : > { %p5510_p1 = scmp.lt.u32.totalorder %s5843_s23, %s7346_s0  ;;  %p5511_p2 = scmp.lt.u32.totalorder %s5509_s21, %s5504_s8 }
  0x61   : > { %p5507_p12 = pnand %p5506_p9, %p5505_p7  ;;  %p5513_p8 = scmp.lt.u32.totalorder %s5504_s8, %s5843_s23 }
  0x62   : > { %p5512_p4 = por %p5511_p2, %p5510_p1 }
  0x63   : > { %p5508_p0 = pneg %p5507_p12 }
  0x64   : > { %p5514_p13 = por %p5513_p8, %p5512_p4 }
  0x66   : > { %p5515_p6 = pnand %p5514_p13, %p5508_p0 }
  0x68   : > { %5518 = shalt.err (!%p5515_p6)
}
  0x69   : > { %s5519_s20 = scalar_lea.vmem %s5849_s10, 128  ;;  %s5615_s15 = smov [#allocation3]  }
  0x6a   : > { %p5520_p10 = scmp.ne.s32.totalorder %s5849_s10, %s5519_s20  ;;  %s5524_s29 = sshll.u32 %s5615_s15, 4  ;;  %s5525_s29 = int_to_ptr.vmem [resolvable:$false] %s5524_s29 }
  0x6b   : > { %s5526_s12 = scalar_lea.vmem %s5525_s29, 256  ;;  %p5527_p12 = scmp.lt.s32.totalorder %s5849_s10, %s5525_s29 }
  0x6c   : > { %p5522_p3 = pnand %p5520_p10, %p5506_p9  ;;  %p5528_p1 = scmp.lt.s32.totalorder %s5526_s12, %s5519_s20 }
  0x6e   : > { %p5523_p7 = pneg %p5522_p3  ;;  %p5529_p2 = por %p5528_p1, %p5527_p12 }
  0x70   : > { %p5530_p4 = pnand %p5529_p2, %p5523_p7 }
  0x72   : > { %5533 = shalt.err (!%p5530_p4)
}
  0x73   : > { %5131 = dma.hbm_to_vmem [thread:$0]  (!%p5845_p11), %s5843_s23, 128, %s5849_s10, %s270_s14  }
  0x74   : > { %p7367_p0 = scmp.ne.s32.totalorder %s7361_s9, 0 }
  0x75   : > { %s5879_s8 = sand.u32 (!%p7367_p0), 1, %s5600_s25   ;;  %p7368_p9 = scmp.ne.s32.totalorder (!%p7367_p0), %s7358_s30, 0 }
  0x76   : > { %289 = sbr.rel (%p7367_p0) target bundleno = 1563 (0x61b), region = 48  ;;  %s3628_s17 = sshll.u32 (!%p7367_p0), %s5879_s8, 3 }
  0x77   : > { %s292_s21 = scalar_lea.sflag (!%p7367_p0), [#allocation4], %s5879_s8  ;;  %s5885_s16 = scalar_lea.vmem (!%p7367_p0), [#allocation3], %s3628_s17 }
  0x7d   : > { %5579 = dma.done.wait (%p7368_p9), %s292_s21, 128  }
  0x7e   : > { %5581 = vsyncadd (%p7368_p9), %s292_s21, 4294967168  ;;  %p7369_p11 = scmp.eq.s32.totalorder %s5701_s28, 0 }
  0x80   : > { %5583 = dma.done.wait (%p7369_p11), [#allocation7], 6144   ;;  %p7370_p8 = pmov %p7369_p11 }
  0x82   : > { %5585 = vsyncadd (%p7370_p8), [#allocation7], 4294961152  ;;  %p7371_p13 = pmov %p7370_p8 }
  0x83   : > { %p7372_p6 = pmov %p7370_p8 }
  0x84   : > { %5587 = dma.done.wait (%p7371_p13), [#allocation10], 1024  }
  0x85   : > { %5589 = vsyncadd (%p7372_p6), [#allocation10], 4294966272  ;;  %v5616_v0 = vmov 2   ;;  %v5617_v1 = vmov 0   ;;  %v5900_v2 = vld [vmem:[%s5885_s16] sm:$0xff]  ;;  %v5904_v3 = vld [vmem:[#allocation6 + $0x40] sm:$0xff]   ;;  %v339_v44 = vlaneseq }
  0x86   : > { %5206 = vset.pattern.permute.xlu1 %v5616_v0  ;;  %5204 = vset.pattern.permute.xlu0 %v5617_v1  ;;  %v5906_v4 = vld [vmem:[#allocation6 + $0xc0] sm:$0xff]   ;;  %v5618_v7 = vmov 3   ;;  %v5619_v8 = vmov 1   ;;  %v5914_v9 = vld [vmem:[#allocation6 + $0x48] sm:$0xff]   ;;  %v5928_v13 = vld [vmem:[#allocation6 + $0x50] sm:$0xff]   ;;  %v5620_v14 = vmov 4  }
  0x87   : > { %361 = vperm.xlu1 %5206, %v5900_v2   ;;  %343 = vperm.xlu0 %5204, %v5900_v2   ;;  %v5909_v5 = vld [vmem:[#allocation6] sm:$0xff]   ;;  %v5918_v10 = vld [vmem:[#allocation6 + $0xc8] sm:$0xff]   ;;  %v5621_v15 = vmov 5   ;;  %v5930_v16 = vld [vmem:[#allocation6 + $0xd0] sm:$0xff]   ;;  %v5622_v21 = vmov 6   ;;  %v5623_v28 = vmov 7  }
  0x88   : > { %3803 = vmatprep.subr.bf16.mxu0 %v5904_v3  ;;  %3825 = vmatprep.subr.bf16.mxu1 %v5906_v4  ;;  %v5912_v6 = vld [vmem:[#allocation6 + $0x80] sm:$0xff]   ;;  %v5922_v11 = vld [vmem:[#allocation6 + $0x8] sm:$0xff]   ;;  %v5934_v17 = vld [vmem:[#allocation6 + $0x10] sm:$0xff]   ;;  %v5624_v41 = vmov 0.0   ;;  %v5625_v42 = vmov 8   ;;  %v5626_v43 = vmov 9  }
  0x89   : > { %3804 = vmatpush3.bf16.msra.mxu0 %v5909_v5  ;;  %3826 = vmatpush3.bf16.msra.mxu1 %v5912_v6  ;;  %v5926_v12 = vld [vmem:[#allocation6 + $0x88] sm:$0xff]   ;;  %v5938_v18 = vld [vmem:[#allocation6 + $0x90] sm:$0xff]   ;;  %v5942_v19 = vld [vmem:[#allocation6 + $0x58] sm:$0xff]   ;;  %v6010_v45 = vand.u32 127, %v339_v44  ;;  %vm5627_vm8 = vmmov 0   ;;  %s3800_s13 = sshll.u32 %s5701_s28, 7 }
  0x8a   : > { %3805 = vmatprep.subr.bf16.mxu0 %v5914_v9  ;;  %3827 = vmatprep.subr.bf16.mxu1 %v5918_v10  ;;  %v5944_v20 = vld [vmem:[#allocation6 + $0xd8] sm:$0xff]   ;;  %v5954_v24 = vld [vmem:[#allocation6 + $0x60] sm:$0xff]   ;;  %v5966_v29 = vld [vmem:[#allocation6 + $0x68] sm:$0xff]   ;;  %s337_s20 = scalar_lea.vmem [#allocation11], %s3628_s17  ;;  %s7302_s21 = scalar_lea.hbm %s7353_s7, %s3800_s13 }
  0x8b   : > { %5207 = vset.pattern.permute.xlu1 %v5618_v7  ;;  %5205 = vset.pattern.permute.xlu0 %v5619_v8  ;;  %v5946_v22 = vld [vmem:[#allocation6 + $0x18] sm:$0xff]   ;;  %v5957_v25 = vld [vmem:[#allocation6 + $0xe0] sm:$0xff]   ;;  %v5970_v30 = vld [vmem:[#allocation6 + $0xe8] sm:$0xff]   ;;  %s3520_s15 = sshll.u32 %s337_s20, 4  ;;  %s5639_s28 = smov [#allocation11]   ;;  %s7304_s15 = int_to_ptr.vmem [resolvable:$true] %s3520_s15 }
  0x8c   : > { %370 = vperm.xlu1 %5207, %v5900_v2   ;;  %352 = vperm.xlu0 %5205, %v5900_v2   ;;  %v5950_v23 = vld [vmem:[#allocation6 + $0x98] sm:$0xff]   ;;  %v5959_v26 = vld [vmem:[#allocation6 + $0x20] sm:$0xff]   ;;  %v5972_v31 = vld [vmem:[#allocation6 + $0x28] sm:$0xff]   ;;  %s5534_s30 = scalar_lea.vmem %s7304_s15, 128  ;;  %s5538_s17 = sshll.u32 %s5639_s28, 4  ;;  %s5539_s17 = int_to_ptr.vmem [resolvable:$false] %s5538_s17 }
  0x8d   : > { %3806 = vmatpush3.bf16.msra.mxu0 %v5922_v11  ;;  %3828 = vmatpush3.bf16.msra.mxu1 %v5926_v12  ;;  %v5962_v27 = vld [vmem:[#allocation6 + $0xa0] sm:$0xff]   ;;  %v5975_v32 = vld [vmem:[#allocation6 + $0xa8] sm:$0xff]   ;;  %v5979_v33 = vld [vmem:[#allocation6 + $0x70] sm:$0xff]   ;;  %p5535_p10 = scmp.ne.s32.totalorder %s7304_s15, %s5534_s30  ;;  %s5540_s9 = scalar_lea.vmem %s5539_s17, 256 }
  0x8e   : > { %3807 = vmatprep.subr.bf16.mxu0 %v5928_v13  ;;  %3829 = vmatprep.subr.bf16.mxu1 %v5930_v16  ;;  %v5982_v34 = vld [vmem:[#allocation6 + $0xf0] sm:$0xff]   ;;  %v5991_v37 = vld [vmem:[#allocation6 + $0x78] sm:$0xff]   ;;  %p5541_p12 = scmp.lt.s32.totalorder %s7304_s15, %s5539_s17  ;;  %p5542_p1 = scmp.lt.s32.totalorder %s5540_s9, %s5534_s30 }
  0x8f   : > { %v5984_v35 = vld [vmem:[#allocation6 + $0x30] sm:$0xff]   ;;  %v5994_v38 = vld [vmem:[#allocation6 + $0xf8] sm:$0xff]   ;;  %p5536_p3 = pnand %p5535_p10, %p5834_p5 }
  0x90   : > { %5208 = vset.pattern.permute.xlu1 %v5620_v14  ;;  %5209 = vset.pattern.permute.xlu0 %v5621_v15  ;;  %v5987_v36 = vld [vmem:[#allocation6 + $0xb0] sm:$0xff]   ;;  %v5997_v39 = vld [vmem:[#allocation6 + $0x38] sm:$0xff]   ;;  %p5543_p2 = por %p5542_p1, %p5541_p12 }
  0x91   : > { %379 = vperm.xlu1 %5208, %v5900_v2   ;;  %388 = vperm.xlu0 %5209, %v5900_v2   ;;  %v6001_v40 = vld [vmem:[#allocation6 + $0xb8] sm:$0xff]   ;;  %p5537_p7 = pneg %p5536_p3 }
  0x92   : > { %3808 = vmatpush3.bf16.msra.mxu0 %v5934_v17  ;;  %3830 = vmatpush3.bf16.msra.mxu1 %v5938_v18 }
  0x93   : > { %3809 = vmatprep.subr.bf16.mxu0 %v5942_v19  ;;  %3831 = vmatprep.subr.bf16.mxu1 %v5944_v20  ;;  %p5544_p4 = pnand %p5543_p2, %p5537_p7 }
  0x95   : > { %5210 = vset.pattern.permute.xlu1 %v5622_v21  ;;  %5212 = vset.pattern.permute.xlu0 %v5625_v42  ;;  %v6030_v42 = vld [vmem:[#allocation6 + $0x100] sm:$0xff]  }
  0x96   : > { %397 = vperm.xlu1 %5210, %v5900_v2   ;;  %3810 = vmatpush3.bf16.msra.mxu0 %v5946_v22 }
  0x97   : > { %3832 = vmatpush3.bf16.msra.mxu1 %v5950_v23  ;;  %3811 = vmatprep.subr.bf16.mxu0 %v5954_v24 }
  0x98   : > { %3833 = vmatprep.subr.bf16.mxu1 %v5957_v25  ;;  %415 = vperm.xlu0 %5212, %v5900_v2  }
  0x9a   : > { %5211 = vset.pattern.permute.xlu1 %v5623_v28  ;;  %3812 = vmatpush3.bf16.msra.mxu0 %v5959_v26 }
  0x9b   : > { %406 = vperm.xlu1 %5211, %v5900_v2   ;;  %3834 = vmatpush3.bf16.msra.mxu1 %v5962_v27 }
  0x9c   : > { %3813 = vmatprep.subr.bf16.mxu0 %v5966_v29  ;;  %3835 = vmatprep.subr.bf16.mxu1 %v5970_v30 }
  0x9e   : > { %3814 = vmatpush3.bf16.msra.mxu0 %v5972_v31 }
  0x9f   : > { %3836 = vmatpush3.bf16.msra.mxu1 %v5975_v32  ;;  %3815 = vmatprep.subr.bf16.mxu0 %v5979_v33 }
  0xa0   : > { %3837 = vmatprep.subr.bf16.mxu1 %v5982_v34  ;;  %5213 = vset.pattern.permute.xlu1 %v5626_v43 }
  0xa1   : > { %424 = vperm.xlu1 %5213, %v5900_v2  }
  0xa2   : > { %3816 = vmatpush3.bf16.msra.mxu0 %v5984_v35 }
  0xa3   : > { %3838 = vmatpush3.bf16.msra.mxu1 %v5987_v36  ;;  %3817 = vmatprep.subr.bf16.mxu0 %v5991_v37 }
  0xa4   : > { %3839 = vmatprep.subr.bf16.mxu1 %v5994_v38 }
  0xa6   : > { %3818 = vmatpush3.bf16.msra.mxu0 %v5997_v39 }
  0xa7   : > { %3840 = vmatpush3.bf16.msra.mxu1 %v6001_v40  ;;  %4722 = vmatprep.subr.bf16.mxu0 %v5624_v41 }
  0xa8   : > { %3856 = vmatprep.subr.bf16.mxu1 %v5904_v3 }
 0x106   : > { %v344_v46 = vpop.permute.xlu0 %343  ;;  %v362_v47 = vpop.permute.xlu1 %361 }
 0x107   : > { %vm345_vm0 = vcmp.eq.s32.totalorder %v6010_v45, %v344_v46  ;;  %vm363_vm1 = vcmp.eq.s32.totalorder %v6010_v45, %v362_v47 }
 0x108   : > { %v3633_v48 = vsel %vm345_vm0, 1.0, %v5624_v41  ;;  %v3635_v49 = vsel %vm363_vm1, 1.0, %v5624_v41 }
 0x109   : > { %v348_v50 = vpack.c.bf16 %v3633_v48, %v3633_v48  ;;  %v366_v51 = vpack.c.bf16 %v3635_v49, %v3635_v49  ;;  %v6040_v48 = vld [vmem:[#allocation6 + $0x108] sm:$0xff]  }
 0x10b   : > { %349 = vst [vmem:[#allocation2] sm:$0xf] %v348_v50  ;;  %367 = vst [vmem:[#allocation2 + $0x8] sm:$0xf] %v366_v51  ;;  %v371_v52 = vpop.permute.xlu1 %370  ;;  %v353_v53 = vpop.permute.xlu0 %352  ;;  %v6050_v51 = vld [vmem:[#allocation6 + $0x110] sm:$0xff]  }
 0x10c   : > { %vm372_vm2 = vcmp.eq.s32.totalorder %v6010_v45, %v371_v52  ;;  %vm354_vm3 = vcmp.eq.s32.totalorder %v6010_v45, %v353_v53  ;;  %v6056_v52 = vld [vmem:[#allocation6 + $0x118] sm:$0xff]   ;;  %v5628_v53 = vmov 10  }
 0x10d   : > { %v3636_v54 = vsel %vm372_vm2, 1.0, %v5624_v41  ;;  %v3634_v55 = vsel %vm354_vm3, 1.0, %v5624_v41  ;;  %5214 = vset.pattern.permute.xlu1 %v5628_v53 }
 0x10e   : > { %v375_v56 = vpack.c.bf16 %v3636_v54, %v3636_v54  ;;  %v357_v57 = vpack.c.bf16 %v3634_v55, %v3634_v55  ;;  %v6062_v54 = vld [vmem:[#allocation6 + $0x120] sm:$0xff]   ;;  %433 = vperm.xlu1 %5214, %v5900_v2   ;;  %v6069_v55 = vld [vmem:[#allocation6 + $0x128] sm:$0xff]  }
 0x110   : > { %376 = vst [vmem:[#allocation2 + $0xc] sm:$0xf] %v375_v56  ;;  %358 = vst [vmem:[#allocation2 + $0x4] sm:$0xf] %v357_v57  ;;  %v380_v58 = vpop.permute.xlu1 %379  ;;  %v389_v59 = vpop.permute.xlu0 %388  ;;  %v6075_v56 = vld [vmem:[#allocation6 + $0x130] sm:$0xff]   ;;  %v6081_v57 = vld [vmem:[#allocation6 + $0x138] sm:$0xff]  }
 0x111   : > { %vm381_vm4 = vcmp.eq.s32.totalorder %v6010_v45, %v380_v58  ;;  %vm390_vm5 = vcmp.eq.s32.totalorder %v6010_v45, %v389_v59 }
 0x112   : > { %v3637_v60 = vsel %vm381_vm4, 1.0, %v5624_v41  ;;  %v3638_v61 = vsel %vm390_vm5, 1.0, %v5624_v41 }
 0x113   : > { %v384_v62 = vpack.c.bf16 %v3637_v60, %v3637_v60  ;;  %v393_v63 = vpack.c.bf16 %v3638_v61, %v3638_v61 }
 0x115   : > { %385 = vst [vmem:[#allocation2 + $0x10] sm:$0xf] %v384_v62  ;;  %394 = vst [vmem:[#allocation2 + $0x14] sm:$0xf] %v393_v63  ;;  %v398_v0 = vpop.permute.xlu1 %397 }
 0x116   : > { %vm399_vm6 = vcmp.eq.s32.totalorder %v6010_v45, %v398_v0 }
 0x117   : > { %v610_v1 = vld [vmem:[#allocation2] sm:$0xff]  ;;  %v611_v7 = vld [vmem:[#allocation2 + $0x8] sm:$0xff]  ;;  %v3639_v8 = vsel %vm399_vm6, 1.0, %v5624_v41  ;;  %v416_v62 = vpop.permute.xlu0 %415 }
 0x118   : > { %v3654_v14 = vcombine.low %v610_v1, %v610_v1  ;;  %v3655_v15 = vcombine.high %v610_v1, %v610_v1  ;;  %v6026_v21 = vcombine.low %v611_v7, %v611_v7  ;;  %v6028_v28 = vcombine.high %v611_v7, %v611_v7  ;;  %v6032_v43 = vld [vmem:[#allocation2 + $0x4] sm:$0xff] }
 0x119   : > { %v402_v44 = vpack.c.bf16 %v3639_v8, %v3639_v8  ;;  %v3700_v46 = vcombine.high %v6032_v43, %v6032_v43  ;;  %v3699_v60 = vcombine.low %v6032_v43, %v6032_v43  ;;  %vm417_vm9 = vcmp.eq.s32.totalorder %v6010_v45, %v416_v62 }
 0x11a   : > { %903 = vmatprep.mubr.bf16.mxu0 %v3655_v15  ;;  %943 = vmatprep.mubr.bf16.mxu1 %v6028_v28  ;;  %v407_v47 = vpop.permute.xlu1 %406  ;;  %v3641_v63 = vsel %vm417_vm9, 1.0, %v5624_v41  ;;  %v5629_v1 = vmov 11  }
 0x11b   : > { %904 = vmatmul.mubr.bf16.vlgmr.msra.gmra.mrb[0].mxu0 %v3654_v14  ;;  %944 = vmatmul.mubr.bf16.vlgmr.msra.gmra.mrb[0].mxu1 %v6026_v21  ;;  %403 = vst [vmem:[#allocation2 + $0x18] sm:$0xf] %v402_v44  ;;  %vm408_vm7 = vcmp.eq.s32.totalorder %v6010_v45, %v407_v47  ;;  %v420_v0 = vpack.c.bf16 %v3641_v63, %v3641_v63 }
 0x11c   : > { %4723 = vmatpush3.bf16.msra.mxu0 %v6030_v42  ;;  %3857 = vmatpush3.bf16.msra.mxu1 %v5909_v5  ;;  %v3640_v49 = vsel %vm408_vm7, 1.0, %v5624_v41  ;;  %v5271_v58 = vld [vmem:[#allocation2 + $0x10] ss:$0 sps:$4 sm:$0xff]   ;;  %v5274_v7 = vld [vmem:[#allocation2 + $0x14] ss:$0 sps:$4 sm:$0xff]  }
 0x11d   : > { %1044 = vmatprep.mubr.bf16.mxu1 %v3700_v46  ;;  %4724 = vmatprep.subr.bf16.mxu0 %v5624_v41  ;;  %v411_v50 = vpack.c.bf16 %v3640_v49, %v3640_v49  ;;  %v992_v59 = vld [vmem:[#allocation2 + $0xc] sm:$0xff]  ;;  %421 = vst [vmem:[#allocation2 + $0x20] sm:$0xf] %v420_v0  ;;  %v6195_v46 = vld [vmem:[%s5885_s16] sm:$0xff] }
 0x11e   : > { %3858 = vmatprep.subr.bf16.mxu1 %v5914_v9  ;;  %4738 = vmatprep.mubr.msk.bf16.mxu0 %vm5627_vm8, %v5624_v41  ;;  %v6091_v61 = vcombine.high %v992_v59, %v992_v59  ;;  %v1134_v8 = vld [vmem:[#allocation2 + $0x10] sm:$0xff] }
 0x11f   : > { %412 = vst [vmem:[#allocation2 + $0x1c] sm:$0xf] %v411_v50  ;;  %5215 = vset.pattern.permute.xlu0 %v5629_v1  ;;  %v6135_v14 = vcombine.high %v1134_v8, %v1134_v8  ;;  %v6171_v44 = vcombine.low %v1134_v8, %v1134_v8  ;;  %v6381_v1 = vld [vmem:[#allocation6 + $0x98] sm:$0xff]  }
 0x120   : > { %4725 = vmatpush3.bf16.msra.mxu0 %v6040_v48  ;;  %3859 = vmatpush3.bf16.msra.mxu1 %v5922_v11  ;;  %v425_v15 = vpop.permute.xlu1 %424 }
 0x121   : > { %4726 = vmatprep.subr.bf16.mxu0 %v5624_v41  ;;  %3860 = vmatprep.subr.bf16.mxu1 %v5928_v13  ;;  %vm426_vm10 = vcmp.eq.s32.totalorder %v6010_v45, %v425_v15 }
 0x122   : > { %442 = vperm.xlu0 %5215, %v5900_v2   ;;  %v6128_v2 = vcombine.low %v992_v59, %v992_v59  ;;  %v5277_v47 = vld [vmem:[#allocation2 + $0x18] ss:$0 sps:$4 sm:$0xff]  }
 0x123   : > { %v1276_v49 = vld [vmem:[#allocation2 + $0x14] sm:$0xff] }
 0x124   : > { %4727 = vmatpush3.bf16.msra.mxu0 %v6050_v51  ;;  %3861 = vmatpush3.bf16.msra.mxu1 %v5934_v17  ;;  %v6215_v50 = vcombine.high %v1276_v49, %v1276_v49  ;;  %v6253_v62 = vcombine.low %v1276_v49, %v1276_v49 }
 0x125   : > { %3862 = vmatprep.subr.bf16.mxu1 %v5942_v19  ;;  %4728 = vmatprep.subr.bf16.mxu0 %v5624_v41 }
 0x126   : > { %v1418_v63 = vld [vmem:[#allocation2 + $0x18] sm:$0xff] }
 0x127   : > { %v6260_v0 = vcombine.high %v1418_v63, %v1418_v63 }
 0x128   : > { %4729 = vmatpush3.bf16.msra.mxu0 %v6056_v52  ;;  %3863 = vmatpush3.bf16.msra.mxu1 %v5946_v22 }
 0x129   : > { %4730 = vmatprep.subr.bf16.mxu0 %v5624_v41  ;;  %3864 = vmatprep.subr.bf16.mxu1 %v5954_v24 }
 0x12c   : > { %4731 = vmatpush3.bf16.msra.mxu0 %v6062_v54  ;;  %3865 = vmatpush3.bf16.msra.mxu1 %v5959_v26 }
 0x12d   : > { %4732 = vmatprep.subr.bf16.mxu0 %v5624_v41  ;;  %3866 = vmatprep.subr.bf16.mxu1 %v5966_v29 }
 0x130   : > { %4733 = vmatpush3.bf16.msra.mxu0 %v6069_v55  ;;  %3867 = vmatpush3.bf16.msra.mxu1 %v5972_v31 }
 0x131   : > { %4734 = vmatprep.subr.bf16.mxu0 %v5624_v41  ;;  %3868 = vmatprep.subr.bf16.mxu1 %v5979_v33 }
 0x134   : > { %4735 = vmatpush3.bf16.msra.mxu0 %v6075_v56  ;;  %3869 = vmatpush3.bf16.msra.mxu1 %v5984_v35 }
 0x135   : > { %4736 = vmatprep.subr.bf16.mxu0 %v5624_v41  ;;  %3870 = vmatprep.subr.bf16.mxu1 %v5991_v37 }
 0x138   : > { %4737 = vmatpush3.bf16.msra.mxu0 %v6081_v57  ;;  %3871 = vmatpush3.bf16.msra.mxu1 %v5997_v39 }
 0x139   : > { %3878 = vmatprep.subr.bf16.mxu0 %v5906_v4  ;;  %4742 = vmatprep.subr.bf16.mxu1 %v5624_v41 }
 0x13b   : > { %4739 = vmatmul.mubr.bf16.vlgmr.msra.gmra.mrb[4].mxu0 %v5271_v58  ;;  %1045 = vmatmul.mubr.bf16.vlgmr.msra.gmra.mrb[4].mxu1 %v3699_v60  ;;  %v5631_v60 = vmov 13  }
 0x13c   : > { %3879 = vmatpush3.bf16.msra.mxu0 %v5912_v6  ;;  %1084 = vmatprep.mubr.bf16.mxu0 %v6091_v61 }
 0x13d   : > { %4743 = vmatpush3.bf16.msra.mxu1 %v6030_v42  ;;  %3880 = vmatprep.subr.bf16.mxu0 %v5918_v10 }
 0x13e   : > { %4744 = vmatprep.subr.bf16.mxu1 %v5624_v41  ;;  %4758 = vmatprep.mubr.msk.bf16.mxu1 %vm5627_vm8, %v5624_v41 }
 0x140   : > { %3881 = vmatpush3.bf16.msra.mxu0 %v5926_v12 }
 0x141   : > { %4745 = vmatpush3.bf16.msra.mxu1 %v6040_v48  ;;  %3882 = vmatprep.subr.bf16.mxu0 %v5930_v16 }
 0x142   : > { %4746 = vmatprep.subr.bf16.mxu1 %v5624_v41 }
 0x144   : > { %3883 = vmatpush3.bf16.msra.mxu0 %v5938_v18 }
 0x145   : > { %4747 = vmatpush3.bf16.msra.mxu1 %v6050_v51  ;;  %3884 = vmatprep.subr.bf16.mxu0 %v5944_v20 }
 0x146   : > { %4748 = vmatprep.subr.bf16.mxu1 %v5624_v41 }
 0x148   : > { %3885 = vmatpush3.bf16.msra.mxu0 %v5950_v23 }
 0x149   : > { %4749 = vmatpush3.bf16.msra.mxu1 %v6056_v52  ;;  %3886 = vmatprep.subr.bf16.mxu0 %v5957_v25 }
 0x14a   : > { %4750 = vmatprep.subr.bf16.mxu1 %v5624_v41 }
 0x14c   : > { %3887 = vmatpush3.bf16.msra.mxu0 %v5962_v27 }
 0x14d   : > { %4751 = vmatpush3.bf16.msra.mxu1 %v6062_v54  ;;  %3888 = vmatprep.subr.bf16.mxu0 %v5970_v30 }
 0x14e   : > { %4752 = vmatprep.subr.bf16.mxu1 %v5624_v41 }
 0x150   : > { %3889 = vmatpush3.bf16.msra.mxu0 %v5975_v32 }
 0x151   : > { %4753 = vmatpush3.bf16.msra.mxu1 %v6069_v55  ;;  %3890 = vmatprep.subr.bf16.mxu0 %v5982_v34 }
 0x152   : > { %4754 = vmatprep.subr.bf16.mxu1 %v5624_v41 }
 0x154   : > { %3891 = vmatpush3.bf16.msra.mxu0 %v5987_v36 }
 0x155   : > { %4755 = vmatpush3.bf16.msra.mxu1 %v6075_v56  ;;  %3892 = vmatprep.subr.bf16.mxu0 %v5994_v38 }
 0x156   : > { %4756 = vmatprep.subr.bf16.mxu1 %v5624_v41 }
 0x158   : > { %3893 = vmatpush3.bf16.msra.mxu0 %v6001_v40 }
 0x159   : > { %4757 = vmatpush3.bf16.msra.mxu1 %v6081_v57  ;;  %3909 = vmatprep.subr.bf16.mxu0 %v5904_v3 }
 0x15a   : > { %3931 = vmatprep.subr.bf16.mxu1 %v5906_v4 }
 0x15b   : > { %1085 = vmatmul.mubr.bf16.vlgmr.msra.gmra.mrb[8].mxu0 %v6128_v2 }
 0x15c   : > { %4759 = vmatmul.mubr.bf16.vlgmr.msra.gmra.mrb[8].mxu1 %v5274_v7  ;;  %3910 = vmatpush3.bf16.msra.mxu0 %v5909_v5  ;;  %v6385_v7 = vld [vmem:[#allocation6 + $0xe0] sm:$0xff]  }
 0x15d   : > { %1186 = vmatprep.mubr.bf16.mxu0 %v6028_v28  ;;  %3932 = vmatpush3.bf16.msra.mxu1 %v5912_v6  ;;  %v3642_v28 = vsel %vm426_vm10, 1.0, %v5624_v41 }
 0x15e   : > { %1226 = vmatprep.mubr.bf16.mxu1 %v6135_v14  ;;  %3911 = vmatprep.subr.bf16.mxu0 %v5914_v9  ;;  %v429_v43 = vpack.c.bf16 %v3642_v28, %v3642_v28  ;;  %v6395_v28 = vld [vmem:[#allocation6 + $0xe8] sm:$0xff]  }
 0x15f   : > { %3933 = vmatprep.subr.bf16.mxu1 %v5918_v10 }
 0x160   : > { %3912 = vmatpush3.bf16.msra.mxu0 %v5922_v11  ;;  %430 = vst [vmem:[#allocation2 + $0x24] sm:$0xf] %v429_v43 }
 0x161   : > { %3934 = vmatpush3.bf16.msra.mxu1 %v5926_v12  ;;  %3913 = vmatprep.subr.bf16.mxu0 %v5928_v13 }
 0x162   : > { %3935 = vmatprep.subr.bf16.mxu1 %v5930_v16 }
 0x164   : > { %3914 = vmatpush3.bf16.msra.mxu0 %v5934_v17 }
 0x165   : > { %3936 = vmatpush3.bf16.msra.mxu1 %v5938_v18  ;;  %3915 = vmatprep.subr.bf16.mxu0 %v5942_v19 }
 0x166   : > { %3937 = vmatprep.subr.bf16.mxu1 %v5944_v20 }
 0x168   : > { %3916 = vmatpush3.bf16.msra.mxu0 %v5946_v22 }
 0x169   : > { %3938 = vmatpush3.bf16.msra.mxu1 %v5950_v23  ;;  %3917 = vmatprep.subr.bf16.mxu0 %v5954_v24 }
 0x16a   : > { %3939 = vmatprep.subr.bf16.mxu1 %v5957_v25 }
 0x16c   : > { %3918 = vmatpush3.bf16.msra.mxu0 %v5959_v26 }
 0x16d   : > { %3940 = vmatpush3.bf16.msra.mxu1 %v5962_v27  ;;  %3919 = vmatprep.subr.bf16.mxu0 %v5966_v29 }
 0x16e   : > { %3941 = vmatprep.subr.bf16.mxu1 %v5970_v30 }
 0x170   : > { %3920 = vmatpush3.bf16.msra.mxu0 %v5972_v31 }
 0x171   : > { %3942 = vmatpush3.bf16.msra.mxu1 %v5975_v32  ;;  %3921 = vmatprep.subr.bf16.mxu0 %v5979_v33 }
 0x172   : > { %3943 = vmatprep.subr.bf16.mxu1 %v5982_v34 }
 0x174   : > { %3922 = vmatpush3.bf16.msra.mxu0 %v5984_v35 }
 0x175   : > { %3944 = vmatpush3.bf16.msra.mxu1 %v5987_v36  ;;  %3923 = vmatprep.subr.bf16.mxu0 %v5991_v37 }
 0x176   : > { %3945 = vmatprep.subr.bf16.mxu1 %v5994_v38 }
 0x178   : > { %3924 = vmatpush3.bf16.msra.mxu0 %v5997_v39 }
 0x179   : > { %3946 = vmatpush3.bf16.msra.mxu1 %v6001_v40  ;;  %4762 = vmatprep.subr.bf16.mxu0 %v5624_v41 }
 0x17a   : > { %3962 = vmatprep.subr.bf16.mxu1 %v5904_v3 }
 0x17b   : > { %1187 = vmatmul.mubr.bf16.vlgmr.msra.gmra.mrb[12].mxu0 %v6026_v21  ;;  %v5630_v21 = vmov 12  }
 0x17c   : > { %1227 = vmatmul.mubr.bf16.vlgmr.msra.gmra.mrb[12].mxu1 %v6171_v44  ;;  %4763 = vmatpush3.bf16.msra.mxu0 %v6030_v42 }
 0x17d   : > { %3963 = vmatpush3.bf16.msra.mxu1 %v5909_v5  ;;  %1328 = vmatprep.mubr.bf16.mxu1 %v6091_v61  ;;  %v5280_v61 = vld [vmem:[#allocation2 + $0x1c] ss:$0 sps:$4 sm:$0xff]  }
 0x17e   : > { %4764 = vmatprep.subr.bf16.mxu0 %v5624_v41  ;;  %3964 = vmatprep.subr.bf16.mxu1 %v5914_v9 }
 0x17f   : > { %4778 = vmatprep.mubr.msk.bf16.mxu0 %vm5627_vm8, %v5624_v41  ;;  %5216 = vset.pattern.permute.xlu1 %v5630_v21  ;;  %v5633_v21 = vmov 15  }
 0x180   : > { %4765 = vmatpush3.bf16.msra.mxu0 %v6040_v48  ;;  %451 = vperm.xlu1 %5216, %v6195_v46  }
 0x181   : > { %3965 = vmatpush3.bf16.msra.mxu1 %v5922_v11  ;;  %4766 = vmatprep.subr.bf16.mxu0 %v5624_v41 }
 0x182   : > { %3966 = vmatprep.subr.bf16.mxu1 %v5928_v13 }
 0x184   : > { %4767 = vmatpush3.bf16.msra.mxu0 %v6050_v51  ;;  %5217 = vset.pattern.permute.xlu1 %v5631_v60  ;;  %v6404_v60 = vld [vmem:[#allocation6 + $0xa8] sm:$0xff]  }
 0x185   : > { %3967 = vmatpush3.bf16.msra.mxu1 %v5934_v17  ;;  %4768 = vmatprep.subr.bf16.mxu0 %v5624_v41 }
 0x186   : > { %3968 = vmatprep.subr.bf16.mxu1 %v5942_v19  ;;  %460 = vperm.xlu1 %5217, %v6195_v46  }
 0x188   : > { %4769 = vmatpush3.bf16.msra.mxu0 %v6056_v52 }
 0x189   : > { %3969 = vmatpush3.bf16.msra.mxu1 %v5946_v22  ;;  %4770 = vmatprep.subr.bf16.mxu0 %v5624_v41 }
 0x18a   : > { %3970 = vmatprep.subr.bf16.mxu1 %v5954_v24  ;;  %5219 = vset.pattern.permute.xlu1 %v5633_v21 }
 0x18b   : > { %478 = vperm.xlu1 %5219, %v6195_v46  }
 0x18c   : > { %4771 = vmatpush3.bf16.msra.mxu0 %v6062_v54 }
 0x18d   : > { %3971 = vmatpush3.bf16.msra.mxu1 %v5959_v26  ;;  %4772 = vmatprep.subr.bf16.mxu0 %v5624_v41  ;;  %v434_v53 = vpop.permute.xlu1 %433 }
 0x18e   : > { %3972 = vmatprep.subr.bf16.mxu1 %v5966_v29  ;;  %vm435_vm11 = vcmp.eq.s32.totalorder %v6010_v45, %v434_v53 }
 0x18f   : > { %v3643_v58 = vsel %vm435_vm11, 1.0, %v5624_v41 }
 0x190   : > { %4773 = vmatpush3.bf16.msra.mxu0 %v6069_v55  ;;  %v438_v59 = vpack.c.bf16 %v3643_v58, %v3643_v58 }
 0x191   : > { %3973 = vmatpush3.bf16.msra.mxu1 %v5972_v31  ;;  %4774 = vmatprep.subr.bf16.mxu0 %v5624_v41 }
 0x192   : > { %3974 = vmatprep.subr.bf16.mxu1 %v5979_v33  ;;  %439 = vst [vmem:[#allocation2 + $0x28] sm:$0xf] %v438_v59 }
 0x194   : > { %4775 = vmatpush3.bf16.msra.mxu0 %v6075_v56 }
 0x195   : > { %3975 = vmatpush3.bf16.msra.mxu1 %v5984_v35  ;;  %4776 = vmatprep.subr.bf16.mxu0 %v5624_v41 }
 0x196   : > { %3976 = vmatprep.subr.bf16.mxu1 %v5991_v37 }
 0x198   : > { %4777 = vmatpush3.bf16.msra.mxu0 %v6081_v57 }
 0x199   : > { %3977 = vmatpush3.bf16.msra.mxu1 %v5997_v39  ;;  %3984 = vmatprep.subr.bf16.mxu0 %v5906_v4 }
 0x19a   : > { %4782 = vmatprep.subr.bf16.mxu1 %v5624_v41 }
 0x19b   : > { %4779 = vmatmul.mubr.bf16.vlgmr.msra.gmra.mrb[16].mxu0 %v5277_v47 }
 0x19c   : > { %1329 = vmatmul.mubr.bf16.vlgmr.msra.gmra.mrb[16].mxu1 %v6128_v2  ;;  %3985 = vmatpush3.bf16.msra.mxu0 %v5912_v6 }
 0x19d   : > { %1368 = vmatprep.mubr.bf16.mxu0 %v6215_v50  ;;  %4783 = vmatpush3.bf16.msra.mxu1 %v6030_v42 }
 0x19e   : > { %3986 = vmatprep.subr.bf16.mxu0 %v5918_v10  ;;  %4784 = vmatprep.subr.bf16.mxu1 %v5624_v41 }
 0x19f   : > { %4798 = vmatprep.mubr.msk.bf16.mxu1 %vm5627_vm8, %v5624_v41 }
 0x1a0   : > { %3987 = vmatpush3.bf16.msra.mxu0 %v5926_v12 }
 0x1a1   : > { %4785 = vmatpush3.bf16.msra.mxu1 %v6040_v48  ;;  %3988 = vmatprep.subr.bf16.mxu0 %v5930_v16 }
 0x1a2   : > { %4786 = vmatprep.subr.bf16.mxu1 %v5624_v41 }
 0x1a4   : > { %3989 = vmatpush3.bf16.msra.mxu0 %v5938_v18 }
 0x1a5   : > { %4787 = vmatpush3.bf16.msra.mxu1 %v6050_v51  ;;  %3990 = vmatprep.subr.bf16.mxu0 %v5944_v20 }
 0x1a6   : > { %4788 = vmatprep.subr.bf16.mxu1 %v5624_v41 }
 0x1a8   : > { %3991 = vmatpush3.bf16.msra.mxu0 %v5950_v23 }
 0x1a9   : > { %4789 = vmatpush3.bf16.msra.mxu1 %v6056_v52  ;;  %3992 = vmatprep.subr.bf16.mxu0 %v5957_v25 }
 0x1aa   : > { %4790 = vmatprep.subr.bf16.mxu1 %v5624_v41 }
 0x1ac   : > { %3993 = vmatpush3.bf16.msra.mxu0 %v5962_v27 }
 0x1ad   : > { %4791 = vmatpush3.bf16.msra.mxu1 %v6062_v54  ;;  %3994 = vmatprep.subr.bf16.mxu0 %v5970_v30 }
 0x1ae   : > { %4792 = vmatprep.subr.bf16.mxu1 %v5624_v41 }
 0x1b0   : > { %3995 = vmatpush3.bf16.msra.mxu0 %v5975_v32 }
 0x1b1   : > { %4793 = vmatpush3.bf16.msra.mxu1 %v6069_v55  ;;  %3996 = vmatprep.subr.bf16.mxu0 %v5982_v34 }
 0x1b2   : > { %4794 = vmatprep.subr.bf16.mxu1 %v5624_v41 }
 0x1b4   : > { %3997 = vmatpush3.bf16.msra.mxu0 %v5987_v36 }
 0x1b5   : > { %4795 = vmatpush3.bf16.msra.mxu1 %v6075_v56  ;;  %3998 = vmatprep.subr.bf16.mxu0 %v5994_v38 }
 0x1b6   : > { %4796 = vmatprep.subr.bf16.mxu1 %v5624_v41 }
 0x1b8   : > { %3999 = vmatpush3.bf16.msra.mxu0 %v6001_v40 }
 0x1b9   : > { %4797 = vmatpush3.bf16.msra.mxu1 %v6081_v57  ;;  %4015 = vmatprep.subr.bf16.mxu0 %v5904_v3  ;;  %v443_v3 = vpop.permute.xlu0 %442 }
 0x1ba   : > { %4037 = vmatprep.subr.bf16.mxu1 %v5906_v4  ;;  %vm444_vm12 = vcmp.eq.s32.totalorder %v6010_v45, %v443_v3  ;;  %v6412_v3 = vld [vmem:[#allocation6 + $0xb0] sm:$0xff]  }
 0x1bb   : > { %1369 = vmatmul.mubr.bf16.vlgmr.msra.gmra.mrb[20].mxu0 %v6253_v62  ;;  %v3644_v4 = vsel %vm444_vm12, 1.0, %v5624_v41 }
 0x1bc   : > { %4799 = vmatmul.mubr.bf16.vlgmr.msra.gmra.mrb[20].mxu1 %v5280_v61  ;;  %4016 = vmatpush3.bf16.msra.mxu0 %v5909_v5  ;;  %v447_v5 = vpack.c.bf16 %v3644_v4, %v3644_v4  ;;  %v5286_v4 = vld [vmem:[#allocation2 + $0x24] ss:$0 sps:$4 sm:$0xff]  }
 0x1bd   : > { %1470 = vmatprep.mubr.bf16.mxu0 %v6135_v14  ;;  %4038 = vmatpush3.bf16.msra.mxu1 %v5912_v6  ;;  %v6296_v6 = vcombine.low %v1418_v63, %v1418_v63  ;;  %v6391_v14 = vld [vmem:[#allocation6 + $0xa0] sm:$0xff]   ;;  %v6408_v63 = vld [vmem:[#allocation6 + $0xf0] sm:$0xff]  }
 0x1be   : > { %1510 = vmatprep.mubr.bf16.mxu1 %v6260_v0  ;;  %4017 = vmatprep.subr.bf16.mxu0 %v5914_v9  ;;  %448 = vst [vmem:[#allocation2 + $0x2c] sm:$0xf] %v447_v5  ;;  %v6298_v9 = vld [vmem:[#allocation6 + $0x40] sm:$0xff]  }
 0x1bf   : > { %4039 = vmatprep.subr.bf16.mxu1 %v5918_v10  ;;  %v6304_v10 = vld [vmem:[#allocation6] sm:$0xff]  }
 0x1c0   : > { %4018 = vmatpush3.bf16.msra.mxu0 %v5922_v11  ;;  %v6309_v11 = vld [vmem:[#allocation6 + $0x48] sm:$0xff]  }
 0x1c1   : > { %4040 = vmatpush3.bf16.msra.mxu1 %v5926_v12  ;;  %4019 = vmatprep.subr.bf16.mxu0 %v5928_v13  ;;  %v6315_v12 = vld [vmem:[#allocation6 + $0x8] sm:$0xff]  }
 0x1c2   : > { %4041 = vmatprep.subr.bf16.mxu1 %v5930_v16  ;;  %v5632_v16 = vmov 14  }
 0x1c3   : > { %5218 = vset.pattern.permute.xlu0 %v5632_v16  ;;  %v6425_v16 = vld [vmem:[#allocation2 + $0x20] sm:$0xff] }
 0x1c4   : > { %4020 = vmatpush3.bf16.msra.mxu0 %v5934_v17  ;;  %469 = vperm.xlu0 %5218, %v6195_v46  }
 0x1c5   : > { %4042 = vmatpush3.bf16.msra.mxu1 %v5938_v18  ;;  %4021 = vmatprep.subr.bf16.mxu0 %v5942_v19 }
 0x1c6   : > { %4043 = vmatprep.subr.bf16.mxu1 %v5944_v20 }
 0x1c8   : > { %4022 = vmatpush3.bf16.msra.mxu0 %v5946_v22 }
 0x1c9   : > { %4044 = vmatpush3.bf16.msra.mxu1 %v5950_v23  ;;  %4023 = vmatprep.subr.bf16.mxu0 %v5954_v24 }
 0x1ca   : > { %4045 = vmatprep.subr.bf16.mxu1 %v5957_v25 }
 0x1cc   : > { %4024 = vmatpush3.bf16.msra.mxu0 %v5959_v26 }
 0x1cd   : > { %4046 = vmatpush3.bf16.msra.mxu1 %v5962_v27  ;;  %4025 = vmatprep.subr.bf16.mxu0 %v5966_v29 }
 0x1ce   : > { %4047 = vmatprep.subr.bf16.mxu1 %v5970_v30  ;;  %v6342_v30 = vld [vmem:[#allocation2 + $0x1c] sm:$0xff] }
 0x1cf   : > { %v6421_v5 = vcombine.low %v6342_v30, %v6342_v30 }
 0x1d0   : > { %4026 = vmatpush3.bf16.msra.mxu0 %v5972_v31 }
 0x1d1   : > { %4048 = vmatpush3.bf16.msra.mxu1 %v5975_v32  ;;  %4027 = vmatprep.subr.bf16.mxu0 %v5979_v33  ;;  %v6351_v32 = vcombine.high %v6342_v30, %v6342_v30 }
 0x1d2   : > { %4049 = vmatprep.subr.bf16.mxu1 %v5982_v34  ;;  %v6359_v34 = vld [vmem:[#allocation6 + $0xc8] sm:$0xff]  }
 0x1d4   : > { %4028 = vmatpush3.bf16.msra.mxu0 %v5984_v35 }
 0x1d5   : > { %4050 = vmatpush3.bf16.msra.mxu1 %v5987_v36  ;;  %4029 = vmatprep.subr.bf16.mxu0 %v5991_v37  ;;  %v6369_v36 = vld [vmem:[#allocation6 + $0xd0] sm:$0xff]  }
 0x1d6   : > { %4051 = vmatprep.subr.bf16.mxu1 %v5994_v38 }
 0x1d8   : > { %4030 = vmatpush3.bf16.msra.mxu0 %v5997_v39 }
 0x1d9   : > { %4052 = vmatpush3.bf16.msra.mxu1 %v6001_v40  ;;  %4802 = vmatprep.subr.bf16.mxu0 %v5624_v41 }
 0x1da   : > { %4068 = vmatprep.subr.bf16.mxu1 %v6298_v9 }
 0x1db   : > { %1471 = vmatmul.mubr.bf16.vlgmr.msra.gmra.mrb[24].mxu0 %v6171_v44 }
 0x1dc   : > { %1511 = vmatmul.mubr.bf16.vlgmr.msra.gmra.mrb[24].mxu1 %v6296_v6  ;;  %4803 = vmatpush3.bf16.msra.mxu0 %v6030_v42 }
 0x1dd   : > { %4069 = vmatpush3.bf16.msra.mxu1 %v6304_v10  ;;  %1612 = vmatprep.mubr.bf16.mxu1 %v6215_v50 }
 0x1de   : > { %4804 = vmatprep.subr.bf16.mxu0 %v5624_v41  ;;  %4070 = vmatprep.subr.bf16.mxu1 %v6309_v11 }
 0x1df   : > { %4818 = vmatprep.mubr.msk.bf16.mxu0 %vm5627_vm8, %v5624_v41 }
 0x1e0   : > { %4805 = vmatpush3.bf16.msra.mxu0 %v6040_v48 }
 0x1e1   : > { %4071 = vmatpush3.bf16.msra.mxu1 %v6315_v12  ;;  %4806 = vmatprep.subr.bf16.mxu0 %v5624_v41 }
 0x1e2   : > { %4072 = vmatprep.subr.bf16.mxu1 %v5928_v13 }
 0x1e4   : > { %4807 = vmatpush3.bf16.msra.mxu0 %v6050_v51 }
 0x1e5   : > { %4073 = vmatpush3.bf16.msra.mxu1 %v5934_v17  ;;  %4808 = vmatprep.subr.bf16.mxu0 %v5624_v41 }
 0x1e6   : > { %4074 = vmatprep.subr.bf16.mxu1 %v5942_v19 }
 0x1e8   : > { %4809 = vmatpush3.bf16.msra.mxu0 %v6056_v52 }
 0x1e9   : > { %4075 = vmatpush3.bf16.msra.mxu1 %v5946_v22  ;;  %4810 = vmatprep.subr.bf16.mxu0 %v5624_v41 }
 0x1ea   : > { %4076 = vmatprep.subr.bf16.mxu1 %v5954_v24 }
 0x1ec   : > { %4811 = vmatpush3.bf16.msra.mxu0 %v6062_v54 }
 0x1ed   : > { %4077 = vmatpush3.bf16.msra.mxu1 %v5959_v26  ;;  %4812 = vmatprep.subr.bf16.mxu0 %v5624_v41 }
 0x1ee   : > { %v3819_v13 = vpop.f32.mrb[0].mxu0  ;;  %v3841_v17 = vpop.f32.mrb[0].mxu1  ;;  %4078 = vmatprep.subr.bf16.mxu1 %v5966_v29  ;;  %v5283_v29 = vld [vmem:[#allocation2 + $0x20] ss:$0 sps:$4 sm:$0xff]  }
 0x1ef   : > { %v3820_v18 = vpop.f32.mrb[1].mxu0  ;;  %v3842_v19 = vpop.f32.mrb[1].mxu1 }
 0x1f0   : > { %v3821_v20 = vadd.f32 %v3820_v18, %v3819_v13  ;;  %v3843_v23 = vadd.f32 %v3842_v19, %v3841_v17  ;;  %4813 = vmatpush3.bf16.msra.mxu0 %v6069_v55  ;;  %v3822_v22 = vpop.f32.mrb[2].mxu0  ;;  %v3844_v25 = vpop.f32.mrb[2].mxu1  ;;  %v6445_v13 = vld [vmem:[#allocation6 + $0x10] sm:$0xff]   ;;  %v6453_v17 = vld [vmem:[#allocation6 + $0x18] sm:$0xff]   ;;  %v6457_v18 = vld [vmem:[#allocation6 + $0x60] sm:$0xff]  }
 0x1f1   : > { %4079 = vmatpush3.bf16.msra.mxu1 %v5972_v31  ;;  %v3823_v24 = vpop.f32.mrb[3].mxu0  ;;  %4814 = vmatprep.subr.bf16.mxu0 %v5624_v41  ;;  %v3845_v26 = vpop.f32.mrb[3].mxu1  ;;  %v6345_v31 = vld [vmem:[#allocation6 + $0xc0] sm:$0xff]  }
 0x1f2   : > { %4080 = vmatprep.subr.bf16.mxu1 %v5979_v33  ;;  %v946_v27 = vadd.f32 %v3843_v23, %v3821_v20  ;;  %v6354_v33 = vld [vmem:[#allocation6 + $0x80] sm:$0xff]   ;;  %v6465_v20 = vld [vmem:[#allocation6 + $0x68] sm:$0xff]  }
 0x1f3   : > { %v6461_v19 = vld [vmem:[#allocation6 + $0x20] sm:$0xff]  }
 0x1f4   : > { %4815 = vmatpush3.bf16.msra.mxu0 %v6075_v56 }
 0x1f5   : > { %4081 = vmatpush3.bf16.msra.mxu1 %v5984_v35  ;;  %4816 = vmatprep.subr.bf16.mxu0 %v5624_v41  ;;  %v6365_v35 = vld [vmem:[#allocation6 + $0x88] sm:$0xff]  }
 0x1f6   : > { %4082 = vmatprep.subr.bf16.mxu1 %v5991_v37  ;;  %v6373_v37 = vld [vmem:[#allocation6 + $0x90] sm:$0xff]  }
 0x1f8   : > { %4817 = vmatpush3.bf16.msra.mxu0 %v6081_v57 }
 0x1f9   : > { %4083 = vmatpush3.bf16.msra.mxu1 %v5997_v39  ;;  %4090 = vmatprep.subr.bf16.mxu0 %v6345_v31  ;;  %v6377_v39 = vld [vmem:[#allocation6 + $0xd8] sm:$0xff]  }
 0x1fa   : > { %4822 = vmatprep.subr.bf16.mxu1 %v5624_v41 }
 0x1fb   : > { %4819 = vmatmul.mubr.bf16.vlgmr.msra.gmra.mrb[28].mxu0 %v5283_v29  ;;  %v6470_v29 = vld [vmem:[#allocation6 + $0x28] sm:$0xff]  }
 0x1fc   : > { %1613 = vmatmul.mubr.bf16.vlgmr.msra.gmra.mrb[28].mxu1 %v6253_v62  ;;  %4091 = vmatpush3.bf16.msra.mxu0 %v6354_v33 }
 0x1fd   : > { %1652 = vmatprep.mubr.bf16.mxu0 %v6351_v32  ;;  %4823 = vmatpush3.bf16.msra.mxu1 %v6030_v42 }
 0x1fe   : > { %4092 = vmatprep.subr.bf16.mxu0 %v6359_v34  ;;  %4824 = vmatprep.subr.bf16.mxu1 %v5624_v41 }
 0x1ff   : > { %4838 = vmatprep.mubr.msk.bf16.mxu1 %vm5627_vm8, %v5624_v41  ;;  %v452_v2 = vpop.permute.xlu1 %451 }
 0x200   : > { %4093 = vmatpush3.bf16.msra.mxu0 %v6365_v35  ;;  %vm453_vm13 = vcmp.eq.s32.totalorder %v6010_v45, %v452_v2 }
 0x201   : > { %4825 = vmatpush3.bf16.msra.mxu1 %v6040_v48  ;;  %4094 = vmatprep.subr.bf16.mxu0 %v6369_v36  ;;  %v3645_v8 = vsel %vm453_vm13, 1.0, %v5624_v41 }
 0x202   : > { %4826 = vmatprep.subr.bf16.mxu1 %v5624_v41  ;;  %v456_v15 = vpack.c.bf16 %v3645_v8, %v3645_v8 }
 0x204   : > { %4095 = vmatpush3.bf16.msra.mxu0 %v6373_v37  ;;  %457 = vst [vmem:[#allocation2 + $0x30] sm:$0xf] %v456_v15  ;;  %v6475_v15 = vld [vmem:[#allocation6 + $0x70] sm:$0xff]  }
 0x205   : > { %4827 = vmatpush3.bf16.msra.mxu1 %v6050_v51  ;;  %4096 = vmatprep.subr.bf16.mxu0 %v6377_v39  ;;  %v461_v22 = vpop.permute.xlu1 %460 }
 0x206   : > { %4828 = vmatprep.subr.bf16.mxu1 %v5624_v41  ;;  %vm462_vm14 = vcmp.eq.s32.totalorder %v6010_v45, %v461_v22 }
 0x207   : > { %v3646_v2 = vsel %vm462_vm14, 1.0, %v5624_v41 }
 0x208   : > { %4097 = vmatpush3.bf16.msra.mxu0 %v6381_v1 }
 0x209   : > { %4829 = vmatpush3.bf16.msra.mxu1 %v6056_v52  ;;  %4098 = vmatprep.subr.bf16.mxu0 %v6385_v7 }
 0x20a   : > { %4830 = vmatprep.subr.bf16.mxu1 %v5624_v41 }
 0x20c   : > { %4099 = vmatpush3.bf16.msra.mxu0 %v6391_v14 }
 0x20d   : > { %4831 = vmatpush3.bf16.msra.mxu1 %v6062_v54  ;;  %4100 = vmatprep.subr.bf16.mxu0 %v6395_v28 }
 0x20e   : > { %v985_v43 = vpop.f32.mrb[4].mxu0  ;;  %v3872_v44 = vpop.f32.mrb[4].mxu1  ;;  %4832 = vmatprep.subr.bf16.mxu1 %v5624_v41 }
 0x20f   : > { %v6399_v47 = vadd.f32 %v985_v43, %v946_v27  ;;  %v4740_v49 = vpop.f32.mrb[5].mxu0  ;;  %v3873_v50 = vpop.f32.mrb[5].mxu1 }
 0x210   : > { %v6402_v53 = vadd.f32 %v3873_v50, %v3872_v44  ;;  %v988_v58 = vpop.f32.mrb[6].mxu0  ;;  %v3875_v59 = vpop.f32.mrb[6].mxu1  ;;  %4101 = vmatpush3.bf16.msra.mxu0 %v6404_v60  ;;  %v465_v44 = vpack.c.bf16 %v3646_v2, %v3646_v2 }
 0x211   : > { %4833 = vmatpush3.bf16.msra.mxu1 %v6069_v55  ;;  %v4741_v61 = vpop.f32.mrb[7].mxu0  ;;  %v3876_v62 = vpop.f32.mrb[7].mxu1  ;;  %4102 = vmatprep.subr.bf16.mxu0 %v6408_v63  ;;  %v6482_v58 = vld [vmem:[#allocation6 + $0x30] sm:$0xff]   ;;  %v6486_v59 = vld [vmem:[#allocation6 + $0x78] sm:$0xff]  }
 0x212   : > { %4834 = vmatprep.subr.bf16.mxu1 %v5624_v41  ;;  %466 = vst [vmem:[#allocation2 + $0x34] sm:$0xf] %v465_v44  ;;  %v6494_v62 = vld [vmem:[#allocation6 + $0x38] sm:$0xff]   ;;  %v1844_v44 = vld [vmem:[#allocation2 + $0x24] sm:$0xff] }
 0x214   : > { %4103 = vmatpush3.bf16.msra.mxu0 %v6412_v3 }
 0x215   : > { %4835 = vmatpush3.bf16.msra.mxu1 %v6075_v56  ;;  %4104 = vmatprep.subr.bf16.mxu0 %v5994_v38  ;;  %v6432_v38 = vcombine.high %v6425_v16, %v6425_v16 }
 0x216   : > { %4836 = vmatprep.subr.bf16.mxu1 %v5624_v41 }
 0x218   : > { %4105 = vmatpush3.bf16.msra.mxu0 %v6001_v40  ;;  %v6441_v40 = vld [vmem:[#allocation6 + $0x50] sm:$0xff]  }
 0x219   : > { %4837 = vmatpush3.bf16.msra.mxu1 %v6081_v57  ;;  %4121 = vmatprep.subr.bf16.mxu0 %v6298_v9 }
 0x21a   : > { %4143 = vmatprep.subr.bf16.mxu1 %v6345_v31 }
 0x21b   : > { %1653 = vmatmul.mubr.bf16.vlgmr.msra.gmra.mrb[32].mxu0 %v6421_v5 }
 0x21c   : > { %4839 = vmatmul.mubr.bf16.vlgmr.msra.gmra.mrb[32].mxu1 %v5286_v4  ;;  %4122 = vmatpush3.bf16.msra.mxu0 %v6304_v10  ;;  %v6497_v4 = vld [vmem:[#allocation6 + $0xb8] sm:$0xff]  }
 0x21d   : > { %1754 = vmatprep.mubr.bf16.mxu0 %v6260_v0  ;;  %4144 = vmatpush3.bf16.msra.mxu1 %v6354_v33  ;;  %v6449_v0 = vld [vmem:[#allocation6 + $0x58] sm:$0xff]  }
 0x21e   : > { %1794 = vmatprep.mubr.bf16.mxu1 %v6432_v38  ;;  %4123 = vmatprep.subr.bf16.mxu0 %v6309_v11 }
 0x21f   : > { %4145 = vmatprep.subr.bf16.mxu1 %v6359_v34 }
 0x220   : > { %4124 = vmatpush3.bf16.msra.mxu0 %v6315_v12 }
 0x221   : > { %4146 = vmatpush3.bf16.msra.mxu1 %v6365_v35  ;;  %4125 = vmatprep.subr.bf16.mxu0 %v6441_v40 }
 0x222   : > { %4147 = vmatprep.subr.bf16.mxu1 %v6369_v36 }
 0x224   : > { %4126 = vmatpush3.bf16.msra.mxu0 %v6445_v13 }
 0x225   : > { %4148 = vmatpush3.bf16.msra.mxu1 %v6373_v37  ;;  %4127 = vmatprep.subr.bf16.mxu0 %v6449_v0 }
 0x226   : > { %4149 = vmatprep.subr.bf16.mxu1 %v6377_v39 }
 0x228   : > { %4128 = vmatpush3.bf16.msra.mxu0 %v6453_v17 }
 0x229   : > { %4150 = vmatpush3.bf16.msra.mxu1 %v6381_v1  ;;  %4129 = vmatprep.subr.bf16.mxu0 %v6457_v18 }
 0x22a   : > { %4151 = vmatprep.subr.bf16.mxu1 %v6385_v7 }
 0x22c   : > { %4130 = vmatpush3.bf16.msra.mxu0 %v6461_v19 }
 0x22d   : > { %4152 = vmatpush3.bf16.msra.mxu1 %v6391_v14  ;;  %4131 = vmatprep.subr.bf16.mxu0 %v6465_v20 }
 0x22e   : > { %v3894_v23 = vpop.f32.mrb[8].mxu0  ;;  %4153 = vmatprep.subr.bf16.mxu1 %v6395_v28 }
 0x22f   : > { %v3895_v25 = vpop.f32.mrb[9].mxu0  ;;  %v1126_v24 = vpop.f32.mrb[8].mxu1 }
 0x230   : > { %v3896_v26 = vadd.f32 %v3895_v25, %v3894_v23  ;;  %v3897_v27 = vpop.f32.mrb[10].mxu0  ;;  %4132 = vmatpush3.bf16.msra.mxu0 %v6470_v29  ;;  %v4760_v30 = vpop.f32.mrb[9].mxu1  ;;  %v6503_v23 = vcombine.low %v6425_v16, %v6425_v16 }
 0x231   : > { %4154 = vmatpush3.bf16.msra.mxu1 %v6404_v60  ;;  %v3898_v8 = vpop.f32.mrb[11].mxu0  ;;  %4133 = vmatprep.subr.bf16.mxu0 %v6475_v15  ;;  %v1129_v43 = vpop.f32.mrb[10].mxu1 }
 0x232   : > { %v1087_v21 = vadd.f32 %v3896_v26, %v6402_v53  ;;  %4155 = vmatprep.subr.bf16.mxu1 %v6408_v63  ;;  %v4761_v49 = vpop.f32.mrb[11].mxu1  ;;  %v6491_v53 = vld [vmem:[#allocation6 + $0xf8] sm:$0xff]   ;;  %v5289_v43 = vld [vmem:[#allocation2 + $0x28] ss:$0 sps:$4 sm:$0xff]  }
 0x233   : > { %v6549_v49 = vld [vmem:[#allocation6 + $0x100] sm:$0xff]  }
 0x234   : > { %v6480_v50 = vadd.f32 %v1126_v24, %v1087_v21  ;;  %4134 = vmatpush3.bf16.msra.mxu0 %v6482_v58  ;;  %v6544_v21 = vcombine.high %v1844_v44, %v1844_v44 }
 0x235   : > { %4156 = vmatpush3.bf16.msra.mxu1 %v6412_v3  ;;  %4135 = vmatprep.subr.bf16.mxu0 %v6486_v59 }
 0x236   : > { %v1132_v61 = vmax.f32 %v6399_v47, %v6480_v50  ;;  %4157 = vmatprep.subr.bf16.mxu1 %v6491_v53  ;;  %v6589_v47 = vcombine.low %v1844_v44, %v1844_v44  ;;  %v1986_v50 = vld [vmem:[#allocation2 + $0x28] sm:$0xff] }
 0x238   : > { %4136 = vmatpush3.bf16.msra.mxu0 %v6494_v62 }
 0x239   : > { %4158 = vmatpush3.bf16.msra.mxu1 %v6497_v4  ;;  %4842 = vmatprep.subr.bf16.mxu0 %v5624_v41 }
 0x23a   : > { %4174 = vmatprep.subr.bf16.mxu1 %v6298_v9 }
 0x23b   : > { %1755 = vmatmul.mubr.bf16.vlgmr.msra.gmra.mrb[36].mxu0 %v6296_v6 }
 0x23c   : > { %1795 = vmatmul.mubr.bf16.vlgmr.msra.gmra.mrb[36].mxu1 %v6503_v23  ;;  %4843 = vmatpush3.bf16.msra.mxu0 %v6030_v42  ;;  %v5634_v42 = vmov 16  }
 0x23d   : > { %4175 = vmatpush3.bf16.msra.mxu1 %v6304_v10  ;;  %1896 = vmatprep.mubr.bf16.mxu1 %v6351_v32 }
 0x23e   : > { %4844 = vmatprep.subr.bf16.mxu0 %v5624_v41  ;;  %4176 = vmatprep.subr.bf16.mxu1 %v6309_v11 }
 0x23f   : > { %4858 = vmatprep.mubr.msk.bf16.mxu0 %vm5627_vm8, %v5624_v41  ;;  %5220 = vset.pattern.permute.xlu1 %v5634_v42 }
 0x240   : > { %4845 = vmatpush3.bf16.msra.mxu0 %v6040_v48  ;;  %487 = vperm.xlu1 %5220, %v6195_v46  }
 0x241   : > { %4177 = vmatpush3.bf16.msra.mxu1 %v6315_v12  ;;  %4846 = vmatprep.subr.bf16.mxu0 %v5624_v41 }
 0x242   : > { %4178 = vmatprep.subr.bf16.mxu1 %v6441_v40 }
 0x244   : > { %4847 = vmatpush3.bf16.msra.mxu0 %v6050_v51 }
 0x245   : > { %4179 = vmatpush3.bf16.msra.mxu1 %v6445_v13  ;;  %4848 = vmatprep.subr.bf16.mxu0 %v5624_v41 }
 0x246   : > { %4180 = vmatprep.subr.bf16.mxu1 %v6449_v0 }
 0x248   : > { %4849 = vmatpush3.bf16.msra.mxu0 %v6056_v52 }
 0x249   : > { %4181 = vmatpush3.bf16.msra.mxu1 %v6453_v17  ;;  %4850 = vmatprep.subr.bf16.mxu0 %v5624_v41 }
 0x24a   : > { %4182 = vmatprep.subr.bf16.mxu1 %v6457_v18 }
 0x24c   : > { %4851 = vmatpush3.bf16.msra.mxu0 %v6062_v54 }
 0x24d   : > { %4183 = vmatpush3.bf16.msra.mxu1 %v6461_v19  ;;  %4852 = vmatprep.subr.bf16.mxu0 %v5624_v41 }
 0x24e   : > { %v3925_v6 = vpop.f32.mrb[12].mxu0  ;;  %4184 = vmatprep.subr.bf16.mxu1 %v6465_v20 }
 0x24f   : > { %v3947_v32 = vpop.f32.mrb[12].mxu1  ;;  %v3926_v16 = vpop.f32.mrb[13].mxu0 }
 0x250   : > { %v3927_v22 = vadd.f32 %v3926_v16, %v3925_v6  ;;  %v3948_v25 = vpop.f32.mrb[13].mxu1  ;;  %v3928_v24 = vpop.f32.mrb[14].mxu0  ;;  %4853 = vmatpush3.bf16.msra.mxu0 %v6069_v55 }
 0x251   : > { %v3949_v26 = vadd.f32 %v3948_v25, %v3947_v32  ;;  %v3950_v27 = vpop.f32.mrb[14].mxu1  ;;  %4185 = vmatpush3.bf16.msra.mxu1 %v6470_v29  ;;  %v3929_v30 = vpop.f32.mrb[15].mxu0  ;;  %4854 = vmatprep.subr.bf16.mxu0 %v5624_v41 }
 0x252   : > { %v3951_v2 = vpop.f32.mrb[15].mxu1  ;;  %4186 = vmatprep.subr.bf16.mxu1 %v6475_v15 }
 0x253   : > { %v1229_v8 = vadd.f32 %v3949_v26, %v3927_v22 }
 0x254   : > { %4855 = vmatpush3.bf16.msra.mxu0 %v6075_v56 }
 0x255   : > { %4187 = vmatpush3.bf16.msra.mxu1 %v6482_v58  ;;  %4856 = vmatprep.subr.bf16.mxu0 %v5624_v41 }
 0x256   : > { %4188 = vmatprep.subr.bf16.mxu1 %v6486_v59 }
 0x258   : > { %4857 = vmatpush3.bf16.msra.mxu0 %v6081_v57  ;;  %v470_v57 = vpop.permute.xlu0 %469 }
 0x259   : > { %4189 = vmatpush3.bf16.msra.mxu1 %v6494_v62  ;;  %4196 = vmatprep.subr.bf16.mxu0 %v6345_v31  ;;  %vm471_vm15 = vcmp.eq.s32.totalorder %v6010_v45, %v470_v57 }
 0x25a   : > { %4862 = vmatprep.subr.bf16.mxu1 %v5624_v41 }
 0x25b   : > { %4859 = vmatmul.mubr.bf16.vlgmr.msra.gmra.mrb[40].mxu0 %v5289_v43 }
 0x25c   : > { %1897 = vmatmul.mubr.bf16.vlgmr.msra.gmra.mrb[40].mxu1 %v6421_v5  ;;  %4197 = vmatpush3.bf16.msra.mxu0 %v6354_v33 }
 0x25d   : > { %1936 = vmatprep.mubr.bf16.mxu0 %v6544_v21  ;;  %4863 = vmatpush3.bf16.msra.mxu1 %v6549_v49 }
 0x25e   : > { %4198 = vmatprep.subr.bf16.mxu0 %v6359_v34  ;;  %4864 = vmatprep.subr.bf16.mxu1 %v5624_v41 }
 0x25f   : > { %4878 = vmatprep.mubr.msk.bf16.mxu1 %vm5627_vm8, %v5624_v41 }
 0x260   : > { %4199 = vmatpush3.bf16.msra.mxu0 %v6365_v35 }
 0x261   : > { %4865 = vmatpush3.bf16.msra.mxu1 %v6040_v48  ;;  %4200 = vmatprep.subr.bf16.mxu0 %v6369_v36  ;;  %v3647_v48 = vsel %vm471_vm15, 1.0, %v5624_v41 }
 0x262   : > { %4866 = vmatprep.subr.bf16.mxu1 %v5624_v41 }
 0x264   : > { %4201 = vmatpush3.bf16.msra.mxu0 %v6373_v37 }
 0x265   : > { %4867 = vmatpush3.bf16.msra.mxu1 %v6050_v51  ;;  %4202 = vmatprep.subr.bf16.mxu0 %v6377_v39  ;;  %v474_v51 = vpack.c.bf16 %v3647_v48, %v3647_v48 }
 0x266   : > { %4868 = vmatprep.subr.bf16.mxu1 %v5624_v41 }
 0x267   : > { %475 = vst [vmem:[#allocation2 + $0x38] sm:$0xf] %v474_v51 }
 0x268   : > { %4203 = vmatpush3.bf16.msra.mxu0 %v6381_v1 }
 0x269   : > { %4869 = vmatpush3.bf16.msra.mxu1 %v6056_v52  ;;  %4204 = vmatprep.subr.bf16.mxu0 %v6385_v7  ;;  %v5635_v52 = vmov 17  }
 0x26a   : > { %4870 = vmatprep.subr.bf16.mxu1 %v5624_v41  ;;  %5221 = vset.pattern.permute.xlu0 %v5635_v52 }
 0x26b   : > { %496 = vperm.xlu0 %5221, %v6195_v46   ;;  %v5292_v46 = vld [vmem:[#allocation2 + $0x2c] ss:$0 sps:$4 sm:$0xff]  }
 0x26c   : > { %4205 = vmatpush3.bf16.msra.mxu0 %v6391_v14 }
 0x26d   : > { %4871 = vmatpush3.bf16.msra.mxu1 %v6062_v54  ;;  %4206 = vmatprep.subr.bf16.mxu0 %v6395_v28 }
 0x26e   : > { %v1268_v5 = vpop.f32.mrb[16].mxu0  ;;  %4872 = vmatprep.subr.bf16.mxu1 %v5624_v41 }
 0x26f   : > { %v1269_v42 = vadd.f32 %v1268_v5, %v1229_v8  ;;  %v3978_v6 = vpop.f32.mrb[16].mxu1  ;;  %v4780_v32 = vpop.f32.mrb[17].mxu0 }
 0x270   : > { %v3979_v16 = vpop.f32.mrb[17].mxu1  ;;  %v1271_v22 = vpop.f32.mrb[18].mxu0  ;;  %4207 = vmatpush3.bf16.msra.mxu0 %v6404_v60 }
 0x271   : > { %v6579_v54 = vmax.f32 %v1132_v61, %v1269_v42  ;;  %v3980_v25 = vadd.f32 %v3979_v16, %v3978_v6  ;;  %v3981_v24 = vpop.f32.mrb[18].mxu1  ;;  %4873 = vmatpush3.bf16.msra.mxu1 %v6069_v55  ;;  %v4781_v26 = vpop.f32.mrb[19].mxu0  ;;  %4208 = vmatprep.subr.bf16.mxu0 %v6408_v63  ;;  %v6591_v55 = vld [vmem:[#allocation6 + $0x138] sm:$0xff]   ;;  %v6638_v16 = vcombine.low %v1986_v50, %v1986_v50  ;;  %v6650_v22 = vld [vmem:[#allocation6 + $0x108] sm:$0xff]  }
 0x272   : > { %v3982_v27 = vpop.f32.mrb[19].mxu1  ;;  %4874 = vmatprep.subr.bf16.mxu1 %v5624_v41  ;;  %v479_v61 = vpop.permute.xlu1 %478  ;;  %v6668_v24 = vld [vmem:[%s5885_s16] sm:$0xff]  ;;  %v6672_v26 = vld [vmem:[#allocation6 + $0x120] sm:$0xff]   ;;  %s3507_s16 = scalar_lea.sflag [#allocation5], %s5879_s8 }
 0x273   : > { %vm480_vm0 = vcmp.eq.s32.totalorder %v6010_v45, %v479_v61 }
 0x274   : > { %4209 = vmatpush3.bf16.msra.mxu0 %v6412_v3  ;;  %v3648_v57 = vsel %vm480_vm0, 1.0, %v5624_v41 }
 0x275   : > { %4875 = vmatpush3.bf16.msra.mxu1 %v6075_v56  ;;  %4210 = vmatprep.subr.bf16.mxu0 %v6491_v53  ;;  %v6598_v56 = vcombine.high %v1986_v50, %v1986_v50  ;;  %v483_v5 = vpack.c.bf16 %v3648_v57, %v3648_v57 }
 0x276   : > { %4876 = vmatprep.subr.bf16.mxu1 %v5624_v41 }
 0x277   : > { %484 = vst [vmem:[#allocation2 + $0x3c] sm:$0xf] %v483_v5  ;;  %v5295_v5 = vld [vmem:[#allocation2 + $0x30] ss:$0 sps:$4 sm:$0xff]  }
 0x278   : > { %4211 = vmatpush3.bf16.msra.mxu0 %v6497_v4 }
 0x279   : > { %4877 = vmatpush3.bf16.msra.mxu1 %v6591_v55  ;;  %4227 = vmatprep.subr.bf16.mxu0 %v6298_v9 }
 0x27a   : > { %4249 = vmatprep.subr.bf16.mxu1 %v6345_v31 }
 0x27b   : > { %1937 = vmatmul.mubr.bf16.vlgmr.msra.gmra.mrb[44].mxu0 %v6589_v47 }
 0x27c   : > { %4879 = vmatmul.mubr.bf16.vlgmr.msra.gmra.mrb[44].mxu1 %v5292_v46  ;;  %4228 = vmatpush3.bf16.msra.mxu0 %v6304_v10 }
 0x27d   : > { %2038 = vmatprep.mubr.bf16.mxu0 %v6432_v38  ;;  %4250 = vmatpush3.bf16.msra.mxu1 %v6354_v33 }
 0x27e   : > { %2078 = vmatprep.mubr.bf16.mxu1 %v6598_v56  ;;  %4229 = vmatprep.subr.bf16.mxu0 %v6309_v11 }
 0x27f   : > { %4251 = vmatprep.subr.bf16.mxu1 %v6359_v34 }
 0x280   : > { %4230 = vmatpush3.bf16.msra.mxu0 %v6315_v12 }
 0x281   : > { %4252 = vmatpush3.bf16.msra.mxu1 %v6365_v35  ;;  %4231 = vmatprep.subr.bf16.mxu0 %v6441_v40 }
 0x282   : > { %4253 = vmatprep.subr.bf16.mxu1 %v6369_v36 }
 0x284   : > { %4232 = vmatpush3.bf16.msra.mxu0 %v6445_v13 }
 0x285   : > { %4254 = vmatpush3.bf16.msra.mxu1 %v6373_v37  ;;  %4233 = vmatprep.subr.bf16.mxu0 %v6449_v0 }
 0x286   : > { %4255 = vmatprep.subr.bf16.mxu1 %v6377_v39 }
 0x288   : > { %4234 = vmatpush3.bf16.msra.mxu0 %v6453_v17 }
 0x289   : > { %4256 = vmatpush3.bf16.msra.mxu1 %v6381_v1  ;;  %4235 = vmatprep.subr.bf16.mxu0 %v6457_v18 }
 0x28a   : > { %4257 = vmatprep.subr.bf16.mxu1 %v6385_v7 }
 0x28c   : > { %4236 = vmatpush3.bf16.msra.mxu0 %v6461_v19 }
 0x28d   : > { %4258 = vmatpush3.bf16.msra.mxu1 %v6391_v14  ;;  %4237 = vmatprep.subr.bf16.mxu0 %v6465_v20 }
 0x28e   : > { %v4000_v38 = vpop.f32.mrb[20].mxu0  ;;  %4259 = vmatprep.subr.bf16.mxu1 %v6395_v28 }
 0x28f   : > { %v4001_v30 = vpop.f32.mrb[21].mxu0  ;;  %v1410_v2 = vpop.f32.mrb[20].mxu1 }
 0x290   : > { %v4002_v8 = vadd.f32 %v4001_v30, %v4000_v38  ;;  %v4003_v43 = vpop.f32.mrb[22].mxu0  ;;  %4238 = vmatpush3.bf16.msra.mxu0 %v6470_v29  ;;  %v4800_v44 = vpop.f32.mrb[21].mxu1 }
 0x291   : > { %4260 = vmatpush3.bf16.msra.mxu1 %v6404_v60  ;;  %v4004_v48 = vpop.f32.mrb[23].mxu0  ;;  %4239 = vmatprep.subr.bf16.mxu0 %v6475_v15  ;;  %v1413_v51 = vpop.f32.mrb[22].mxu1 }
 0x292   : > { %v1371_v52 = vadd.f32 %v4002_v8, %v3980_v25  ;;  %4261 = vmatprep.subr.bf16.mxu1 %v6408_v63  ;;  %v4801_v42 = vpop.f32.mrb[23].mxu1  ;;  %v6662_v25 = vld [vmem:[#allocation6 + $0x118] sm:$0xff]   ;;  %v6684_v51 = vld [vmem:[#allocation6 + $0x130] sm:$0xff]  }
 0x294   : > { %v6627_v6 = vadd.f32 %v1410_v2, %v1371_v52  ;;  %4240 = vmatpush3.bf16.msra.mxu0 %v6482_v58  ;;  %v6678_v2 = vld [vmem:[#allocation6 + $0x128] sm:$0xff]  }
 0x295   : > { %4262 = vmatpush3.bf16.msra.mxu1 %v6412_v3  ;;  %4241 = vmatprep.subr.bf16.mxu0 %v6486_v59  ;;  %v2128_v52 = vld [vmem:[#allocation2 + $0x2c] sm:$0xff] }
 0x296   : > { %v1416_v32 = vmax.f32 %v6579_v54, %v6627_v6  ;;  %4263 = vmatprep.subr.bf16.mxu1 %v6491_v53  ;;  %v6694_v42 = vcombine.high %v2128_v52, %v2128_v52  ;;  %v5298_v54 = vld [vmem:[#allocation2 + $0x34] ss:$0 sps:$4 sm:$0xff]   ;;  %v6737_v6 = vcombine.low %v2128_v52, %v2128_v52 }
 0x298   : > { %4242 = vmatpush3.bf16.msra.mxu0 %v6494_v62 }
 0x299   : > { %4264 = vmatpush3.bf16.msra.mxu1 %v6497_v4  ;;  %4882 = vmatprep.subr.bf16.mxu0 %v5624_v41 }
 0x29a   : > { %4280 = vmatprep.subr.bf16.mxu1 %v6298_v9 }
 0x29b   : > { %2039 = vmatmul.mubr.bf16.vlgmr.msra.gmra.mrb[48].mxu0 %v6503_v23  ;;  %v6656_v23 = vld [vmem:[#allocation6 + $0x110] sm:$0xff]  }
 0x29c   : > { %2079 = vmatmul.mubr.bf16.vlgmr.msra.gmra.mrb[48].mxu1 %v6638_v16  ;;  %4883 = vmatpush3.bf16.msra.mxu0 %v6549_v49 }
 0x29d   : > { %4281 = vmatpush3.bf16.msra.mxu1 %v6304_v10  ;;  %2180 = vmatprep.mubr.bf16.mxu1 %v6544_v21  ;;  %v5636_v21 = vmov 18  }
 0x29e   : > { %4884 = vmatprep.subr.bf16.mxu0 %v5624_v41  ;;  %4282 = vmatprep.subr.bf16.mxu1 %v6309_v11 }
 0x29f   : > { %4898 = vmatprep.mubr.msk.bf16.mxu0 %vm5627_vm8, %v5624_v41  ;;  %5222 = vset.pattern.permute.xlu1 %v5636_v21 }
 0x2a0   : > { %4885 = vmatpush3.bf16.msra.mxu0 %v6650_v22  ;;  %505 = vperm.xlu1 %5222, %v6668_v24  }
 0x2a1   : > { %4283 = vmatpush3.bf16.msra.mxu1 %v6315_v12  ;;  %4886 = vmatprep.subr.bf16.mxu0 %v5624_v41 }
 0x2a2   : > { %4284 = vmatprep.subr.bf16.mxu1 %v6441_v40 }
 0x2a4   : > { %4887 = vmatpush3.bf16.msra.mxu0 %v6656_v23 }
 0x2a5   : > { %4285 = vmatpush3.bf16.msra.mxu1 %v6445_v13  ;;  %4888 = vmatprep.subr.bf16.mxu0 %v5624_v41 }
 0x2a6   : > { %4286 = vmatprep.subr.bf16.mxu1 %v6449_v0 }
 0x2a8   : > { %4889 = vmatpush3.bf16.msra.mxu0 %v6662_v25 }
 0x2a9   : > { %4287 = vmatpush3.bf16.msra.mxu1 %v6453_v17  ;;  %4890 = vmatprep.subr.bf16.mxu0 %v5624_v41 }
 0x2aa   : > { %4288 = vmatprep.subr.bf16.mxu1 %v6457_v18 }
 0x2ac   : > { %4891 = vmatpush3.bf16.msra.mxu0 %v6672_v26 }
 0x2ad   : > { %4289 = vmatpush3.bf16.msra.mxu1 %v6461_v19  ;;  %4892 = vmatprep.subr.bf16.mxu0 %v5624_v41 }
 0x2ae   : > { %v4031_v27 = vpop.f32.mrb[24].mxu0  ;;  %4290 = vmatprep.subr.bf16.mxu1 %v6465_v20 }
 0x2af   : > { %v4053_v46 = vpop.f32.mrb[24].mxu1  ;;  %v4032_v50 = vpop.f32.mrb[25].mxu0 }
 0x2b0   : > { %v4033_v38 = vadd.f32 %v4032_v50, %v4031_v27  ;;  %v4054_v61 = vpop.f32.mrb[25].mxu1  ;;  %v4034_v30 = vpop.f32.mrb[26].mxu0  ;;  %4893 = vmatpush3.bf16.msra.mxu0 %v6678_v2  ;;  %v5637_v50 = vmov 19  }
 0x2b1   : > { %v4055_v8 = vadd.f32 %v4054_v61, %v4053_v46  ;;  %v4056_v43 = vpop.f32.mrb[26].mxu1  ;;  %4291 = vmatpush3.bf16.msra.mxu1 %v6470_v29  ;;  %v4035_v44 = vpop.f32.mrb[27].mxu0  ;;  %4894 = vmatprep.subr.bf16.mxu0 %v5624_v41 }
 0x2b2   : > { %v4057_v57 = vpop.f32.mrb[27].mxu1  ;;  %4292 = vmatprep.subr.bf16.mxu1 %v6475_v15  ;;  %5223 = vset.pattern.permute.xlu1 %v5637_v50 }
 0x2b3   : > { %v1513_v48 = vadd.f32 %v4055_v8, %v4033_v38  ;;  %514 = vperm.xlu1 %5223, %v6668_v24  }
 0x2b4   : > { %4895 = vmatpush3.bf16.msra.mxu0 %v6684_v51 }
 0x2b5   : > { %4293 = vmatpush3.bf16.msra.mxu1 %v6482_v58  ;;  %4896 = vmatprep.subr.bf16.mxu0 %v5624_v41 }
 0x2b6   : > { %4294 = vmatprep.subr.bf16.mxu1 %v6486_v59 }
 0x2b8   : > { %4897 = vmatpush3.bf16.msra.mxu0 %v6591_v55 }
 0x2b9   : > { %4295 = vmatpush3.bf16.msra.mxu1 %v6494_v62  ;;  %4302 = vmatprep.subr.bf16.mxu0 %v6345_v31 }
 0x2ba   : > { %4902 = vmatprep.subr.bf16.mxu1 %v5624_v41 }
 0x2bb   : > { %4899 = vmatmul.mubr.bf16.vlgmr.msra.gmra.mrb[52].mxu0 %v5295_v5 }
 0x2bc   : > { %2181 = vmatmul.mubr.bf16.vlgmr.msra.gmra.mrb[52].mxu1 %v6589_v47  ;;  %4303 = vmatpush3.bf16.msra.mxu0 %v6354_v33 }
 0x2bd   : > { %2220 = vmatprep.mubr.bf16.mxu0 %v6694_v42  ;;  %4903 = vmatpush3.bf16.msra.mxu1 %v6549_v49 }
 0x2be   : > { %4304 = vmatprep.subr.bf16.mxu0 %v6359_v34  ;;  %4904 = vmatprep.subr.bf16.mxu1 %v5624_v41 }
 0x2bf   : > { %4918 = vmatprep.mubr.msk.bf16.mxu1 %vm5627_vm8, %v5624_v41  ;;  %v488_v47 = vpop.permute.xlu1 %487 }
 0x2c0   : > { %4305 = vmatpush3.bf16.msra.mxu0 %v6365_v35  ;;  %vm489_vm1 = vcmp.eq.s32.totalorder %v6010_v45, %v488_v47 }
 0x2c1   : > { %4905 = vmatpush3.bf16.msra.mxu1 %v6650_v22  ;;  %4306 = vmatprep.subr.bf16.mxu0 %v6369_v36  ;;  %v3649_v21 = vsel %vm489_vm1, 1.0, %v5624_v41 }
 0x2c2   : > { %4906 = vmatprep.subr.bf16.mxu1 %v5624_v41  ;;  %v492_v27 = vpack.c.bf16 %v3649_v21, %v3649_v21 }
 0x2c4   : > { %4307 = vmatpush3.bf16.msra.mxu0 %v6373_v37  ;;  %493 = vst [vmem:[#allocation2 + $0x40] sm:$0xf] %v492_v27 }
 0x2c5   : > { %4907 = vmatpush3.bf16.msra.mxu1 %v6656_v23  ;;  %4308 = vmatprep.subr.bf16.mxu0 %v6377_v39 }
 0x2c6   : > { %4908 = vmatprep.subr.bf16.mxu1 %v5624_v41 }
 0x2c8   : > { %4309 = vmatpush3.bf16.msra.mxu0 %v6381_v1 }
 0x2c9   : > { %4909 = vmatpush3.bf16.msra.mxu1 %v6662_v25  ;;  %4310 = vmatprep.subr.bf16.mxu0 %v6385_v7 }
 0x2ca   : > { %4910 = vmatprep.subr.bf16.mxu1 %v5624_v41 }
 0x2cc   : > { %4311 = vmatpush3.bf16.msra.mxu0 %v6391_v14 }
 0x2cd   : > { %4911 = vmatpush3.bf16.msra.mxu1 %v6672_v26  ;;  %4312 = vmatprep.subr.bf16.mxu0 %v6395_v28 }
 0x2ce   : > { %v1552_v46 = vpop.f32.mrb[28].mxu0  ;;  %4912 = vmatprep.subr.bf16.mxu1 %v5624_v41 }
 0x2cf   : > { %v1553_v38 = vadd.f32 %v1552_v46, %v1513_v48  ;;  %v4084_v61 = vpop.f32.mrb[28].mxu1  ;;  %v4820_v30 = vpop.f32.mrb[29].mxu0 }
 0x2d0   : > { %v4085_v8 = vpop.f32.mrb[29].mxu1  ;;  %v1555_v43 = vpop.f32.mrb[30].mxu0  ;;  %4313 = vmatpush3.bf16.msra.mxu0 %v6404_v60 }
 0x2d1   : > { %v6727_v44 = vmax.f32 %v1416_v32, %v1553_v38  ;;  %v4086_v57 = vadd.f32 %v4085_v8, %v4084_v61  ;;  %v4087_v5 = vpop.f32.mrb[30].mxu1  ;;  %4913 = vmatpush3.bf16.msra.mxu1 %v6678_v2  ;;  %v4821_v47 = vpop.f32.mrb[31].mxu0  ;;  %4314 = vmatprep.subr.bf16.mxu0 %v6408_v63  ;;  %v2270_v32 = vld [vmem:[#allocation2 + $0x30] sm:$0xff] }
 0x2d2   : > { %v4088_v48 = vpop.f32.mrb[31].mxu1  ;;  %4914 = vmatprep.subr.bf16.mxu1 %v5624_v41  ;;  %v6744_v21 = vcombine.high %v2270_v32, %v2270_v32 }
 0x2d4   : > { %4315 = vmatpush3.bf16.msra.mxu0 %v6412_v3 }
 0x2d5   : > { %4915 = vmatpush3.bf16.msra.mxu1 %v6684_v51  ;;  %4316 = vmatprep.subr.bf16.mxu0 %v6491_v53 }
 0x2d6   : > { %4916 = vmatprep.subr.bf16.mxu1 %v5624_v41 }
 0x2d8   : > { %4317 = vmatpush3.bf16.msra.mxu0 %v6497_v4 }
 0x2d9   : > { %4917 = vmatpush3.bf16.msra.mxu1 %v6591_v55  ;;  %4333 = vmatprep.subr.bf16.mxu0 %v6298_v9 }
 0x2da   : > { %4355 = vmatprep.subr.bf16.mxu1 %v6345_v31 }
 0x2db   : > { %2221 = vmatmul.mubr.bf16.vlgmr.msra.gmra.mrb[56].mxu0 %v6737_v6 }
 0x2dc   : > { %4919 = vmatmul.mubr.bf16.vlgmr.msra.gmra.mrb[56].mxu1 %v5298_v54  ;;  %4334 = vmatpush3.bf16.msra.mxu0 %v6304_v10 }
 0x2dd   : > { %2322 = vmatprep.mubr.bf16.mxu0 %v6598_v56  ;;  %4356 = vmatpush3.bf16.msra.mxu1 %v6354_v33 }
 0x2de   : > { %2362 = vmatprep.mubr.bf16.mxu1 %v6744_v21  ;;  %4335 = vmatprep.subr.bf16.mxu0 %v6309_v11 }
 0x2df   : > { %4357 = vmatprep.subr.bf16.mxu1 %v6359_v34 }
 0x2e0   : > { %4336 = vmatpush3.bf16.msra.mxu0 %v6315_v12 }
 0x2e1   : > { %4358 = vmatpush3.bf16.msra.mxu1 %v6365_v35  ;;  %4337 = vmatprep.subr.bf16.mxu0 %v6441_v40 }
 0x2e2   : > { %4359 = vmatprep.subr.bf16.mxu1 %v6369_v36 }
 0x2e4   : > { %4338 = vmatpush3.bf16.msra.mxu0 %v6445_v13 }
 0x2e5   : > { %4360 = vmatpush3.bf16.msra.mxu1 %v6373_v37  ;;  %4339 = vmatprep.subr.bf16.mxu0 %v6449_v0 }
 0x2e6   : > { %4361 = vmatprep.subr.bf16.mxu1 %v6377_v39 }
 0x2e8   : > { %4340 = vmatpush3.bf16.msra.mxu0 %v6453_v17 }
 0x2e9   : > { %4362 = vmatpush3.bf16.msra.mxu1 %v6381_v1  ;;  %4341 = vmatprep.subr.bf16.mxu0 %v6457_v18 }
 0x2ea   : > { %4363 = vmatprep.subr.bf16.mxu1 %v6385_v7  ;;  %v497_v52 = vpop.permute.xlu0 %496 }
 0x2eb   : > { %vm498_vm2 = vcmp.eq.s32.totalorder %v6010_v45, %v497_v52 }
 0x2ec   : > { %4342 = vmatpush3.bf16.msra.mxu0 %v6461_v19  ;;  %v3650_v30 = vsel %vm498_vm2, 1.0, %v5624_v41 }
 0x2ed   : > { %4364 = vmatpush3.bf16.msra.mxu1 %v6391_v14  ;;  %4343 = vmatprep.subr.bf16.mxu0 %v6465_v20  ;;  %v501_v5 = vpack.c.bf16 %v3650_v30, %v3650_v30 }
 0x2ee   : > { %v4106_v56 = vpop.f32.mrb[32].mxu0  ;;  %4365 = vmatprep.subr.bf16.mxu1 %v6395_v28 }
 0x2ef   : > { %v4107_v27 = vpop.f32.mrb[33].mxu0  ;;  %v1694_v46 = vpop.f32.mrb[32].mxu1  ;;  %502 = vst [vmem:[#allocation2 + $0x44] sm:$0xf] %v501_v5  ;;  %v6872_v5 = vld [vmem:[#allocation6 + $0x40] sm:$0xff]  }
 0x2f0   : > { %v4108_v50 = vadd.f32 %v4107_v27, %v4106_v56  ;;  %v4109_v38 = vpop.f32.mrb[34].mxu0  ;;  %4344 = vmatpush3.bf16.msra.mxu0 %v6470_v29  ;;  %v4840_v61 = vpop.f32.mrb[33].mxu1 }
 0x2f1   : > { %4366 = vmatpush3.bf16.msra.mxu1 %v6404_v60  ;;  %v4110_v8 = vpop.f32.mrb[35].mxu0  ;;  %4345 = vmatprep.subr.bf16.mxu0 %v6475_v15  ;;  %v1697_v43 = vpop.f32.mrb[34].mxu1  ;;  %v5301_v38 = vld [vmem:[#allocation2 + $0x38] ss:$0 sps:$4 sm:$0xff]  }
 0x2f2   : > { %v1655_v47 = vadd.f32 %v4108_v50, %v4086_v57  ;;  %4367 = vmatprep.subr.bf16.mxu1 %v6408_v63  ;;  %v4841_v48 = vpop.f32.mrb[35].mxu1  ;;  %v6784_v57 = vcombine.low %v2270_v32, %v2270_v32  ;;  %v2412_v61 = vld [vmem:[#allocation2 + $0x34] sm:$0xff] }
 0x2f3   : > { %v6824_v30 = vcombine.high %v2412_v61, %v2412_v61 }
 0x2f4   : > { %v6773_v54 = vadd.f32 %v1694_v46, %v1655_v47  ;;  %4346 = vmatpush3.bf16.msra.mxu0 %v6482_v58  ;;  %v6881_v47 = vld [vmem:[#allocation6] sm:$0xff]  }
 0x2f5   : > { %4368 = vmatpush3.bf16.msra.mxu1 %v6412_v3  ;;  %4347 = vmatprep.subr.bf16.mxu0 %v6486_v59 }
 0x2f6   : > { %v1700_v56 = vmax.f32 %v6727_v44, %v6773_v54  ;;  %4369 = vmatprep.subr.bf16.mxu1 %v6491_v53  ;;  %v6869_v44 = vcombine.low %v2412_v61, %v2412_v61  ;;  %v6889_v54 = vld [vmem:[#allocation6 + $0x80] sm:$0xff]  }
 0x2f8   : > { %4348 = vmatpush3.bf16.msra.mxu0 %v6494_v62 }
 0x2f9   : > { %4370 = vmatpush3.bf16.msra.mxu1 %v6497_v4  ;;  %4922 = vmatprep.subr.bf16.mxu0 %v5624_v41 }
 0x2fa   : > { %4386 = vmatprep.subr.bf16.mxu1 %v6298_v9 }
 0x2fb   : > { %2323 = vmatmul.mubr.bf16.vlgmr.msra.gmra.mrb[60].mxu0 %v6638_v16 }
 0x2fc   : > { %2363 = vmatmul.mubr.bf16.vlgmr.msra.gmra.mrb[60].mxu1 %v6784_v57  ;;  %4923 = vmatpush3.bf16.msra.mxu0 %v6549_v49 }
 0x2fd   : > { %4387 = vmatpush3.bf16.msra.mxu1 %v6304_v10  ;;  %2464 = vmatprep.mubr.bf16.mxu1 %v6694_v42 }
 0x2fe   : > { %4924 = vmatprep.subr.bf16.mxu0 %v5624_v41  ;;  %4388 = vmatprep.subr.bf16.mxu1 %v6309_v11 }
 0x2ff   : > { %4938 = vmatprep.mubr.msk.bf16.mxu0 %vm5627_vm8, %v5624_v41 }
 0x300   : > { %4925 = vmatpush3.bf16.msra.mxu0 %v6650_v22 }
 0x301   : > { %4389 = vmatpush3.bf16.msra.mxu1 %v6315_v12  ;;  %4926 = vmatprep.subr.bf16.mxu0 %v5624_v41 }
 0x302   : > { %4390 = vmatprep.subr.bf16.mxu1 %v6441_v40 }
 0x304   : > { %4927 = vmatpush3.bf16.msra.mxu0 %v6656_v23 }
 0x305   : > { %4391 = vmatpush3.bf16.msra.mxu1 %v6445_v13  ;;  %4928 = vmatprep.subr.bf16.mxu0 %v5624_v41 }
 0x306   : > { %4392 = vmatprep.subr.bf16.mxu1 %v6449_v0 }
 0x308   : > { %4929 = vmatpush3.bf16.msra.mxu0 %v6662_v25 }
 0x309   : > { %4393 = vmatpush3.bf16.msra.mxu1 %v6453_v17  ;;  %4930 = vmatprep.subr.bf16.mxu0 %v5624_v41 }
 0x30a   : > { %4394 = vmatprep.subr.bf16.mxu1 %v6457_v18 }
 0x30c   : > { %4931 = vmatpush3.bf16.msra.mxu0 %v6672_v26 }
 0x30d   : > { %4395 = vmatpush3.bf16.msra.mxu1 %v6461_v19  ;;  %4932 = vmatprep.subr.bf16.mxu0 %v5624_v41 }
 0x30e   : > { %v4137_v9 = vpop.f32.mrb[36].mxu0  ;;  %4396 = vmatprep.subr.bf16.mxu1 %v6465_v20 }
 0x30f   : > { %v4159_v10 = vpop.f32.mrb[36].mxu1  ;;  %v4138_v11 = vpop.f32.mrb[37].mxu0 }
 0x310   : > { %v4139_v12 = vadd.f32 %v4138_v11, %v4137_v9  ;;  %v4160_v16 = vpop.f32.mrb[37].mxu1  ;;  %v4140_v42 = vpop.f32.mrb[38].mxu0  ;;  %4933 = vmatpush3.bf16.msra.mxu0 %v6678_v2  ;;  %v6896_v9 = vld [vmem:[#allocation6 + $0xc8] sm:$0xff]  }
 0x311   : > { %v4161_v32 = vadd.f32 %v4160_v16, %v4159_v10  ;;  %v4162_v52 = vpop.f32.mrb[38].mxu1  ;;  %4397 = vmatpush3.bf16.msra.mxu1 %v6470_v29  ;;  %v4141_v27 = vpop.f32.mrb[39].mxu0  ;;  %4934 = vmatprep.subr.bf16.mxu0 %v5624_v41  ;;  %v6899_v10 = vld [vmem:[#allocation6 + $0x8] sm:$0xff]   ;;  %v6914_v16 = vld [vmem:[#allocation6 + $0xd8] sm:$0xff]  }
 0x312   : > { %v4163_v46 = vpop.f32.mrb[39].mxu1  ;;  %4398 = vmatprep.subr.bf16.mxu1 %v6475_v15  ;;  %v6902_v11 = vld [vmem:[#allocation6 + $0x88] sm:$0xff]   ;;  %v6918_v42 = vld [vmem:[#allocation6 + $0x98] sm:$0xff]  }
 0x313   : > { %v1797_v50 = vadd.f32 %v4161_v32, %v4139_v12  ;;  %v6910_v12 = vld [vmem:[#allocation6 + $0x90] sm:$0xff]  }
 0x314   : > { %4935 = vmatpush3.bf16.msra.mxu0 %v6684_v51 }
 0x315   : > { %4399 = vmatpush3.bf16.msra.mxu1 %v6482_v58  ;;  %4936 = vmatprep.subr.bf16.mxu0 %v5624_v41 }
 0x316   : > { %4400 = vmatprep.subr.bf16.mxu1 %v6486_v59 }
 0x318   : > { %4937 = vmatpush3.bf16.msra.mxu0 %v6591_v55 }
 0x319   : > { %4401 = vmatpush3.bf16.msra.mxu1 %v6494_v62  ;;  %4408 = vmatprep.subr.bf16.mxu0 %v6345_v31 }
 0x31a   : > { %4942 = vmatprep.subr.bf16.mxu1 %v5624_v41 }
 0x31b   : > { %4939 = vmatmul.mubr.bf16.vlgmr.msra.gmra.mrb[64].mxu0 %v5301_v38  ;;  %v6936_v38 = vld [vmem:[#allocation6 + $0xa8] sm:$0xff]  }
 0x31c   : > { %2465 = vmatmul.mubr.bf16.vlgmr.msra.gmra.mrb[64].mxu1 %v6737_v6  ;;  %4409 = vmatpush3.bf16.msra.mxu0 %v6354_v33 }
 0x31d   : > { %2504 = vmatprep.mubr.bf16.mxu0 %v6824_v30  ;;  %4943 = vmatpush3.bf16.msra.mxu1 %v6549_v49 }
 0x31e   : > { %4410 = vmatprep.subr.bf16.mxu0 %v6359_v34  ;;  %4944 = vmatprep.subr.bf16.mxu1 %v5624_v41  ;;  %v5638_v34 = vmov 20  }
 0x31f   : > { %4958 = vmatprep.mubr.msk.bf16.mxu1 %vm5627_vm8, %v5624_v41  ;;  %v506_v31 = vpop.permute.xlu1 %505  ;;  %5224 = vset.pattern.permute.xlu0 %v5638_v34  ;;  %v6941_v34 = vld [vmem:[#allocation6 + $0xf0] sm:$0xff]  }
 0x320   : > { %4411 = vmatpush3.bf16.msra.mxu0 %v6365_v35  ;;  %vm507_vm3 = vcmp.eq.s32.totalorder %v6010_v45, %v506_v31  ;;  %523 = vperm.xlu0 %5224, %v6668_v24  }
 0x321   : > { %4945 = vmatpush3.bf16.msra.mxu1 %v6650_v22  ;;  %4412 = vmatprep.subr.bf16.mxu0 %v6369_v36  ;;  %v3651_v33 = vsel %vm507_vm3, 1.0, %v5624_v41 }
 0x322   : > { %4946 = vmatprep.subr.bf16.mxu1 %v5624_v41  ;;  %v510_v35 = vpack.c.bf16 %v3651_v33, %v3651_v33 }
 0x324   : > { %4413 = vmatpush3.bf16.msra.mxu0 %v6373_v37  ;;  %511 = vst [vmem:[#allocation2 + $0x48] sm:$0xf] %v510_v35 }
 0x325   : > { %4947 = vmatpush3.bf16.msra.mxu1 %v6656_v23  ;;  %4414 = vmatprep.subr.bf16.mxu0 %v6377_v39 }
 0x326   : > { %4948 = vmatprep.subr.bf16.mxu1 %v5624_v41 }
 0x328   : > { %4415 = vmatpush3.bf16.msra.mxu0 %v6381_v1 }
 0x329   : > { %4949 = vmatpush3.bf16.msra.mxu1 %v6662_v25  ;;  %4416 = vmatprep.subr.bf16.mxu0 %v6385_v7 }
 0x32a   : > { %4950 = vmatprep.subr.bf16.mxu1 %v5624_v41 }
 0x32c   : > { %4417 = vmatpush3.bf16.msra.mxu0 %v6391_v14 }
 0x32d   : > { %4951 = vmatpush3.bf16.msra.mxu1 %v6672_v26  ;;  %4418 = vmatprep.subr.bf16.mxu0 %v6395_v28 }
 0x32e   : > { %v1836_v36 = vpop.f32.mrb[40].mxu0  ;;  %4952 = vmatprep.subr.bf16.mxu1 %v5624_v41 }
 0x32f   : > { %v1837_v37 = vadd.f32 %v1836_v36, %v1797_v50  ;;  %v4190_v39 = vpop.f32.mrb[40].mxu1  ;;  %v4860_v1 = vpop.f32.mrb[41].mxu0  ;;  %v6947_v36 = vld [vmem:[#allocation6 + $0xb0] sm:$0xff]  }
 0x330   : > { %v4191_v7 = vpop.f32.mrb[41].mxu1  ;;  %v1839_v6 = vpop.f32.mrb[42].mxu0  ;;  %4419 = vmatpush3.bf16.msra.mxu0 %v6404_v60  ;;  %v5304_v60 = vld [vmem:[#allocation2 + $0x3c] ss:$0 sps:$4 sm:$0xff]  }
 0x331   : > { %v6857_v14 = vmax.f32 %v1700_v56, %v1837_v37  ;;  %v6859_v24 = vadd.f32 %v4191_v7, %v4190_v39  ;;  %v4193_v8 = vpop.f32.mrb[42].mxu1  ;;  %4953 = vmatpush3.bf16.msra.mxu1 %v6678_v2  ;;  %v4861_v28 = vpop.f32.mrb[43].mxu0  ;;  %4420 = vmatprep.subr.bf16.mxu0 %v6408_v63  ;;  %v6875_v63 = vld [vmem:[#allocation2 + $0x38] sm:$0xff]  ;;  %v6893_v56 = vld [vmem:[#allocation6 + $0x48] sm:$0xff]  }
 0x332   : > { %v4194_v43 = vpop.f32.mrb[43].mxu1  ;;  %4954 = vmatprep.subr.bf16.mxu1 %v5624_v41  ;;  %v6886_v48 = vcombine.high %v6875_v63, %v6875_v63  ;;  %v515_v32 = vpop.permute.xlu1 %514  ;;  %v6998_v39 = vld [vmem:[#allocation6 + $0x68] sm:$0xff]  }
 0x333   : > { %vm516_vm4 = vcmp.eq.s32.totalorder %v6010_v45, %v515_v32  ;;  %v7006_v32 = vld [vmem:[#allocation6 + $0x70] sm:$0xff]  }
 0x334   : > { %4421 = vmatpush3.bf16.msra.mxu0 %v6412_v3  ;;  %v6877_v3 = vld [vmem:[#allocation6 + $0xc0] sm:$0xff]   ;;  %v3652_v50 = vsel %vm516_vm4, 1.0, %v5624_v41 }
 0x335   : > { %4955 = vmatpush3.bf16.msra.mxu1 %v6684_v51  ;;  %4422 = vmatprep.subr.bf16.mxu0 %v6491_v53  ;;  %v519_v31 = vpack.c.bf16 %v3652_v50, %v3652_v50  ;;  %v7018_v50 = vld [vmem:[#allocation6 + $0x38] sm:$0xff]  }
 0x336   : > { %4956 = vmatprep.subr.bf16.mxu1 %v5624_v41 }
 0x337   : > { %520 = vst [vmem:[#allocation2 + $0x4c] sm:$0xf] %v519_v31 }
 0x338   : > { %4423 = vmatpush3.bf16.msra.mxu0 %v6497_v4 }
 0x339   : > { %4957 = vmatpush3.bf16.msra.mxu1 %v6591_v55  ;;  %4439 = vmatprep.subr.bf16.mxu0 %v6872_v5 }
 0x33a   : > { %4461 = vmatprep.subr.bf16.mxu1 %v6877_v3 }
 0x33b   : > { %2505 = vmatmul.mubr.bf16.vlgmr.msra.gmra.mrb[68].mxu0 %v6869_v44 }
 0x33c   : > { %4959 = vmatmul.mubr.bf16.vlgmr.msra.gmra.mrb[68].mxu1 %v5304_v60  ;;  %4440 = vmatpush3.bf16.msra.mxu0 %v6881_v47  ;;  %v7002_v60 = vld [vmem:[#allocation6 + $0x28] sm:$0xff]  }
 0x33d   : > { %2606 = vmatprep.mubr.bf16.mxu0 %v6744_v21  ;;  %4462 = vmatpush3.bf16.msra.mxu1 %v6889_v54  ;;  %v6906_v21 = vld [vmem:[#allocation6 + $0xd0] sm:$0xff]  }
 0x33e   : > { %2646 = vmatprep.mubr.bf16.mxu1 %v6886_v48  ;;  %4441 = vmatprep.subr.bf16.mxu0 %v6893_v56 }
 0x33f   : > { %4463 = vmatprep.subr.bf16.mxu1 %v6896_v9 }
 0x340   : > { %4442 = vmatpush3.bf16.msra.mxu0 %v6899_v10 }
 0x341   : > { %4464 = vmatpush3.bf16.msra.mxu1 %v6902_v11  ;;  %4443 = vmatprep.subr.bf16.mxu0 %v6441_v40  ;;  %v6922_v40 = vld [vmem:[#allocation6 + $0xe0] sm:$0xff]  }
 0x342   : > { %4465 = vmatprep.subr.bf16.mxu1 %v6906_v21 }
 0x344   : > { %4444 = vmatpush3.bf16.msra.mxu0 %v6445_v13  ;;  %v6926_v13 = vld [vmem:[#allocation6 + $0xa0] sm:$0xff]  }
 0x345   : > { %4466 = vmatpush3.bf16.msra.mxu1 %v6910_v12  ;;  %4445 = vmatprep.subr.bf16.mxu0 %v6449_v0 }
 0x346   : > { %4467 = vmatprep.subr.bf16.mxu1 %v6914_v16 }
 0x348   : > { %4446 = vmatpush3.bf16.msra.mxu0 %v6453_v17  ;;  %v6930_v17 = vld [vmem:[#allocation6 + $0xe8] sm:$0xff]  }
 0x349   : > { %4468 = vmatpush3.bf16.msra.mxu1 %v6918_v42  ;;  %4447 = vmatprep.subr.bf16.mxu0 %v6457_v18 }
 0x34a   : > { %4469 = vmatprep.subr.bf16.mxu1 %v6922_v40 }
 0x34c   : > { %4448 = vmatpush3.bf16.msra.mxu0 %v6461_v19 }
 0x34d   : > { %4470 = vmatpush3.bf16.msra.mxu1 %v6926_v13  ;;  %4449 = vmatprep.subr.bf16.mxu0 %v6465_v20 }
 0x34e   : > { %v4212_v0 = vpop.f32.mrb[44].mxu0  ;;  %4471 = vmatprep.subr.bf16.mxu1 %v6930_v17 }
 0x34f   : > { %v4213_v52 = vpop.f32.mrb[45].mxu0  ;;  %v1978_v18 = vpop.f32.mrb[44].mxu1 }
 0x350   : > { %v4214_v27 = vadd.f32 %v4213_v52, %v4212_v0  ;;  %v4215_v46 = vpop.f32.mrb[46].mxu0  ;;  %4450 = vmatpush3.bf16.msra.mxu0 %v6470_v29  ;;  %v4880_v19 = vpop.f32.mrb[45].mxu1 }
 0x351   : > { %4472 = vmatpush3.bf16.msra.mxu1 %v6936_v38  ;;  %v4216_v20 = vpop.f32.mrb[47].mxu0  ;;  %4451 = vmatprep.subr.bf16.mxu0 %v6475_v15  ;;  %v1981_v61 = vpop.f32.mrb[46].mxu1  ;;  %v5307_v46 = vld [vmem:[#allocation2 + $0x40] ss:$0 sps:$4 sm:$0xff]  }
 0x352   : > { %v1939_v33 = vadd.f32 %v4214_v27, %v6859_v24  ;;  %4473 = vmatprep.subr.bf16.mxu1 %v6941_v34  ;;  %v4881_v35 = vpop.f32.mrb[47].mxu1  ;;  %v7014_v27 = vld [vmem:[#allocation6 + $0x78] sm:$0xff]  }
 0x353   : > { %v2696_v19 = vld [vmem:[#allocation2 + $0x3c] sm:$0xff] }
 0x354   : > { %v6944_v29 = vadd.f32 %v1978_v18, %v1939_v33  ;;  %4452 = vmatpush3.bf16.msra.mxu0 %v6482_v58  ;;  %v6959_v58 = vcombine.low %v6875_v63, %v6875_v63  ;;  %v7010_v18 = vld [vmem:[#allocation6 + $0x30] sm:$0xff]   ;;  %v7023_v20 = vcombine.high %v2696_v19, %v2696_v19 }
 0x355   : > { %4474 = vmatpush3.bf16.msra.mxu1 %v6947_v36  ;;  %4453 = vmatprep.subr.bf16.mxu0 %v6486_v59  ;;  %v6974_v59 = vld [vmem:[#allocation6 + $0x50] sm:$0xff]  }
 0x356   : > { %v1984_v15 = vmax.f32 %v6857_v14, %v6944_v29  ;;  %4475 = vmatprep.subr.bf16.mxu1 %v6491_v53  ;;  %v6978_v53 = vld [vmem:[#allocation6 + $0x10] sm:$0xff]   ;;  %v7064_v14 = vld [vmem:[#allocation6 + $0xb8] sm:$0xff]   ;;  %v5310_v29 = vld [vmem:[#allocation2 + $0x44] ss:$0 sps:$4 sm:$0xff]  }
 0x358   : > { %4454 = vmatpush3.bf16.msra.mxu0 %v6494_v62  ;;  %v6982_v62 = vld [vmem:[#allocation6 + $0x58] sm:$0xff]  }
 0x359   : > { %4476 = vmatpush3.bf16.msra.mxu1 %v6497_v4  ;;  %4962 = vmatprep.subr.bf16.mxu0 %v5624_v41  ;;  %v6986_v4 = vld [vmem:[#allocation6 + $0x18] sm:$0xff]  }
 0x35a   : > { %4492 = vmatprep.subr.bf16.mxu1 %v6872_v5 }
 0x35b   : > { %2607 = vmatmul.mubr.bf16.vlgmr.msra.gmra.mrb[72].mxu0 %v6784_v57  ;;  %v6990_v57 = vld [vmem:[#allocation6 + $0x60] sm:$0xff]  }
 0x35c   : > { %2647 = vmatmul.mubr.bf16.vlgmr.msra.gmra.mrb[72].mxu1 %v6959_v58  ;;  %4963 = vmatpush3.bf16.msra.mxu0 %v6549_v49 }
 0x35d   : > { %4493 = vmatpush3.bf16.msra.mxu1 %v6881_v47  ;;  %2748 = vmatprep.mubr.bf16.mxu1 %v6824_v30  ;;  %v6994_v30 = vld [vmem:[#allocation6 + $0x20] sm:$0xff]  }
 0x35e   : > { %4964 = vmatprep.subr.bf16.mxu0 %v5624_v41  ;;  %4494 = vmatprep.subr.bf16.mxu1 %v6893_v56 }
 0x35f   : > { %4978 = vmatprep.mubr.msk.bf16.mxu0 %vm5627_vm8, %v5624_v41 }
 0x360   : > { %4965 = vmatpush3.bf16.msra.mxu0 %v6650_v22 }
 0x361   : > { %4495 = vmatpush3.bf16.msra.mxu1 %v6899_v10  ;;  %4966 = vmatprep.subr.bf16.mxu0 %v5624_v41 }
 0x362   : > { %4496 = vmatprep.subr.bf16.mxu1 %v6974_v59 }
 0x364   : > { %4967 = vmatpush3.bf16.msra.mxu0 %v6656_v23 }
 0x365   : > { %4497 = vmatpush3.bf16.msra.mxu1 %v6978_v53  ;;  %4968 = vmatprep.subr.bf16.mxu0 %v5624_v41 }
 0x366   : > { %4498 = vmatprep.subr.bf16.mxu1 %v6982_v62 }
 0x368   : > { %4969 = vmatpush3.bf16.msra.mxu0 %v6662_v25 }
 0x369   : > { %4499 = vmatpush3.bf16.msra.mxu1 %v6986_v4  ;;  %4970 = vmatprep.subr.bf16.mxu0 %v5624_v41 }
 0x36a   : > { %4500 = vmatprep.subr.bf16.mxu1 %v6990_v57 }
 0x36c   : > { %4971 = vmatpush3.bf16.msra.mxu0 %v6672_v26 }
 0x36d   : > { %4501 = vmatpush3.bf16.msra.mxu1 %v6994_v30  ;;  %4972 = vmatprep.subr.bf16.mxu0 %v5624_v41 }
 0x36e   : > { %v4243_v37 = vpop.f32.mrb[48].mxu0  ;;  %4502 = vmatprep.subr.bf16.mxu1 %v6998_v39 }
 0x36f   : > { %v4265_v1 = vpop.f32.mrb[48].mxu1  ;;  %v4244_v7 = vpop.f32.mrb[49].mxu0 }
 0x370   : > { %v4245_v6 = vadd.f32 %v4244_v7, %v4243_v37  ;;  %v4266_v24 = vpop.f32.mrb[49].mxu1  ;;  %v4246_v8 = vpop.f32.mrb[50].mxu0  ;;  %4973 = vmatpush3.bf16.msra.mxu0 %v6678_v2 }
 0x371   : > { %v4267_v28 = vadd.f32 %v4266_v24, %v4265_v1  ;;  %v4268_v43 = vpop.f32.mrb[50].mxu1  ;;  %4503 = vmatpush3.bf16.msra.mxu1 %v7002_v60  ;;  %v4247_v63 = vpop.f32.mrb[51].mxu0  ;;  %4974 = vmatprep.subr.bf16.mxu0 %v5624_v41  ;;  %v7060_v8 = vld [vmem:[#allocation6 + $0xf8] sm:$0xff]  }
 0x372   : > { %v4269_v0 = vpop.f32.mrb[51].mxu1  ;;  %4504 = vmatprep.subr.bf16.mxu1 %v7006_v32 }
 0x373   : > { %v2081_v52 = vadd.f32 %v4267_v28, %v4245_v6  ;;  %v2838_v28 = vld [vmem:[#allocation2 + $0x40] sm:$0xff] }
 0x374   : > { %4975 = vmatpush3.bf16.msra.mxu0 %v6684_v51  ;;  %v7074_v43 = vcombine.high %v2838_v28, %v2838_v28 }
 0x375   : > { %4505 = vmatpush3.bf16.msra.mxu1 %v7010_v18  ;;  %4976 = vmatprep.subr.bf16.mxu0 %v5624_v41 }
 0x376   : > { %4506 = vmatprep.subr.bf16.mxu1 %v7014_v27 }
 0x378   : > { %4977 = vmatpush3.bf16.msra.mxu0 %v6591_v55 }
 0x379   : > { %4507 = vmatpush3.bf16.msra.mxu1 %v7018_v50  ;;  %4514 = vmatprep.subr.bf16.mxu0 %v6877_v3 }
 0x37a   : > { %4982 = vmatprep.subr.bf16.mxu1 %v5624_v41 }
 0x37b   : > { %4979 = vmatmul.mubr.bf16.vlgmr.msra.gmra.mrb[76].mxu0 %v5307_v46 }
 0x37c   : > { %2749 = vmatmul.mubr.bf16.vlgmr.msra.gmra.mrb[76].mxu1 %v6869_v44  ;;  %4515 = vmatpush3.bf16.msra.mxu0 %v6889_v54 }
 0x37d   : > { %2788 = vmatprep.mubr.bf16.mxu0 %v7023_v20  ;;  %4983 = vmatpush3.bf16.msra.mxu1 %v6549_v49 }
 0x37e   : > { %4516 = vmatprep.subr.bf16.mxu0 %v6896_v9  ;;  %4984 = vmatprep.subr.bf16.mxu1 %v5624_v41 }
 0x37f   : > { %4998 = vmatprep.mubr.msk.bf16.mxu1 %vm5627_vm8, %v5624_v41 }
 0x380   : > { %4517 = vmatpush3.bf16.msra.mxu0 %v6902_v11 }
 0x381   : > { %4985 = vmatpush3.bf16.msra.mxu1 %v6650_v22  ;;  %4518 = vmatprep.subr.bf16.mxu0 %v6906_v21 }
 0x382   : > { %4986 = vmatprep.subr.bf16.mxu1 %v5624_v41 }
 0x384   : > { %4519 = vmatpush3.bf16.msra.mxu0 %v6910_v12 }
 0x385   : > { %4987 = vmatpush3.bf16.msra.mxu1 %v6656_v23  ;;  %4520 = vmatprep.subr.bf16.mxu0 %v6914_v16 }
 0x386   : > { %4988 = vmatprep.subr.bf16.mxu1 %v5624_v41 }
 0x388   : > { %4521 = vmatpush3.bf16.msra.mxu0 %v6918_v42 }
 0x389   : > { %4989 = vmatpush3.bf16.msra.mxu1 %v6662_v25  ;;  %4522 = vmatprep.subr.bf16.mxu0 %v6922_v40 }
 0x38a   : > { %4990 = vmatprep.subr.bf16.mxu1 %v5624_v41 }
 0x38c   : > { %4523 = vmatpush3.bf16.msra.mxu0 %v6926_v13 }
 0x38d   : > { %4991 = vmatpush3.bf16.msra.mxu1 %v6672_v26  ;;  %4524 = vmatprep.subr.bf16.mxu0 %v6930_v17 }
 0x38e   : > { %v2120_v49 = vpop.f32.mrb[52].mxu0  ;;  %4992 = vmatprep.subr.bf16.mxu1 %v5624_v41 }
 0x38f   : > { %v2121_v44 = vadd.f32 %v2120_v49, %v2081_v52  ;;  %v4296_v61 = vpop.f32.mrb[52].mxu1  ;;  %v4900_v31 = vpop.f32.mrb[53].mxu0 }
 0x390   : > { %v4297_v33 = vpop.f32.mrb[53].mxu1  ;;  %v2123_v35 = vpop.f32.mrb[54].mxu0  ;;  %4525 = vmatpush3.bf16.msra.mxu0 %v6936_v38 }
 0x391   : > { %v7053_v37 = vmax.f32 %v1984_v15, %v2121_v44  ;;  %v4298_v1 = vadd.f32 %v4297_v33, %v4296_v61  ;;  %v4299_v7 = vpop.f32.mrb[54].mxu1  ;;  %4993 = vmatpush3.bf16.msra.mxu1 %v6678_v2  ;;  %v4901_v6 = vpop.f32.mrb[55].mxu0  ;;  %4526 = vmatprep.subr.bf16.mxu0 %v6941_v34  ;;  %v7067_v15 = vcombine.low %v2696_v19, %v2696_v19 }
 0x392   : > { %v4300_v24 = vpop.f32.mrb[55].mxu1  ;;  %4994 = vmatprep.subr.bf16.mxu1 %v5624_v41  ;;  %v7119_v6 = vld [vmem:[#allocation6 + $0x100] sm:$0xff]  }
 0x394   : > { %4527 = vmatpush3.bf16.msra.mxu0 %v6947_v36 }
 0x395   : > { %4995 = vmatpush3.bf16.msra.mxu1 %v6684_v51  ;;  %4528 = vmatprep.subr.bf16.mxu0 %v7060_v8 }
 0x396   : > { %4996 = vmatprep.subr.bf16.mxu1 %v5624_v41 }
 0x398   : > { %4529 = vmatpush3.bf16.msra.mxu0 %v7064_v14 }
 0x399   : > { %4997 = vmatpush3.bf16.msra.mxu1 %v6591_v55  ;;  %4545 = vmatprep.subr.bf16.mxu0 %v6872_v5 }
 0x39a   : > { %4567 = vmatprep.subr.bf16.mxu1 %v6877_v3 }
 0x39b   : > { %2789 = vmatmul.mubr.bf16.vlgmr.msra.gmra.mrb[80].mxu0 %v7067_v15 }
 0x39c   : > { %4999 = vmatmul.mubr.bf16.vlgmr.msra.gmra.mrb[80].mxu1 %v5310_v29  ;;  %4546 = vmatpush3.bf16.msra.mxu0 %v6881_v47 }
 0x39d   : > { %2890 = vmatprep.mubr.bf16.mxu0 %v6886_v48  ;;  %4568 = vmatpush3.bf16.msra.mxu1 %v6889_v54 }
 0x39e   : > { %2930 = vmatprep.mubr.bf16.mxu1 %v7074_v43  ;;  %4547 = vmatprep.subr.bf16.mxu0 %v6893_v56 }
 0x39f   : > { %4569 = vmatprep.subr.bf16.mxu1 %v6896_v9  ;;  %v524_v55 = vpop.permute.xlu0 %523 }
 0x3a0   : > { %4548 = vmatpush3.bf16.msra.mxu0 %v6899_v10  ;;  %vm525_vm5 = vcmp.eq.s32.totalorder %v6010_v45, %v524_v55 }
 0x3a1   : > { %4570 = vmatpush3.bf16.msra.mxu1 %v6902_v11  ;;  %4549 = vmatprep.subr.bf16.mxu0 %v6974_v59  ;;  %v3653_v63 = vsel %vm525_vm5, 1.0, %v5624_v41 }
 0x3a2   : > { %4571 = vmatprep.subr.bf16.mxu1 %v6906_v21  ;;  %v528_v46 = vpack.c.bf16 %v3653_v63, %v3653_v63  ;;  %v7152_v63 = vld [vmem:[#allocation6 + $0x138] sm:$0xff]  }
 0x3a4   : > { %4550 = vmatpush3.bf16.msra.mxu0 %v6978_v53  ;;  %529 = vst [vmem:[#allocation2 + $0x50] sm:$0xf] %v528_v46  ;;  %v7178_v46 = vld [vmem:[#allocation6 + $0x118] sm:$0xff]  }
 0x3a5   : > { %4572 = vmatpush3.bf16.msra.mxu1 %v6910_v12  ;;  %4551 = vmatprep.subr.bf16.mxu0 %v6982_v62 }
 0x3a6   : > { %4573 = vmatprep.subr.bf16.mxu1 %v6914_v16 }
 0x3a8   : > { %4552 = vmatpush3.bf16.msra.mxu0 %v6986_v4 }
 0x3a9   : > { %4574 = vmatpush3.bf16.msra.mxu1 %v6918_v42  ;;  %4553 = vmatprep.subr.bf16.mxu0 %v6990_v57 }
 0x3aa   : > { %4575 = vmatprep.subr.bf16.mxu1 %v6922_v40 }
 0x3ac   : > { %4554 = vmatpush3.bf16.msra.mxu0 %v6994_v30 }
 0x3ad   : > { %4576 = vmatpush3.bf16.msra.mxu1 %v6926_v13  ;;  %4555 = vmatprep.subr.bf16.mxu0 %v6998_v39 }
 0x3ae   : > { %v4318_v48 = vpop.f32.mrb[56].mxu0  ;;  %4577 = vmatprep.subr.bf16.mxu1 %v6930_v17 }
 0x3af   : > { %v4319_v0 = vpop.f32.mrb[57].mxu0  ;;  %v2262_v52 = vpop.f32.mrb[56].mxu1 }
 0x3b0   : > { %v4320_v19 = vadd.f32 %v4319_v0, %v4318_v48  ;;  %v4321_v49 = vpop.f32.mrb[58].mxu0  ;;  %4556 = vmatpush3.bf16.msra.mxu0 %v7002_v60  ;;  %v4920_v44 = vpop.f32.mrb[57].mxu1  ;;  %v2980_v0 = vld [vmem:[#allocation2 + $0x44] sm:$0xff] }
 0x3b1   : > { %4578 = vmatpush3.bf16.msra.mxu1 %v6936_v38  ;;  %v4322_v61 = vpop.f32.mrb[59].mxu0  ;;  %4557 = vmatprep.subr.bf16.mxu0 %v7006_v32  ;;  %v2265_v31 = vpop.f32.mrb[58].mxu1 }
 0x3b2   : > { %v2223_v45 = vadd.f32 %v4320_v19, %v4298_v1  ;;  %4579 = vmatprep.subr.bf16.mxu1 %v6941_v34  ;;  %v4921_v33 = vpop.f32.mrb[59].mxu1  ;;  %v7114_v1 = vcombine.low %v2838_v28, %v2838_v28  ;;  %v7184_v19 = vld [vmem:[#allocation6 + $0x120] sm:$0xff]  }
 0x3b4   : > { %v7103_v35 = vadd.f32 %v2262_v52, %v2223_v45  ;;  %4558 = vmatpush3.bf16.msra.mxu0 %v7010_v18  ;;  %v7166_v52 = vld [vmem:[#allocation6 + $0x108] sm:$0xff]  }
 0x3b5   : > { %4580 = vmatpush3.bf16.msra.mxu1 %v6947_v36  ;;  %4559 = vmatprep.subr.bf16.mxu0 %v7014_v27 }
 0x3b6   : > { %v2268_v7 = vmax.f32 %v7053_v37, %v7103_v35  ;;  %4581 = vmatprep.subr.bf16.mxu1 %v7060_v8  ;;  %v5316_v37 = vld [vmem:[#allocation2 + $0x4c] ss:$0 sps:$4 sm:$0xff]   ;;  %v3771_v35 = vcombine.low %v2980_v0, %v2980_v0 }
 0x3b8   : > { %4560 = vmatpush3.bf16.msra.mxu0 %v7018_v50 }
 0x3b9   : > { %4582 = vmatpush3.bf16.msra.mxu1 %v7064_v14  ;;  %5002 = vmatprep.subr.bf16.mxu0 %v5624_v41 }
 0x3ba   : > { %4598 = vmatprep.subr.bf16.mxu1 %v6872_v5 }
 0x3bb   : > { %2891 = vmatmul.mubr.bf16.vlgmr.msra.gmra.mrb[84].mxu0 %v6959_v58 }
 0x3bc   : > { %2931 = vmatmul.mubr.bf16.vlgmr.msra.gmra.mrb[84].mxu1 %v7114_v1  ;;  %5003 = vmatpush3.bf16.msra.mxu0 %v7119_v6 }
 0x3bd   : > { %4599 = vmatpush3.bf16.msra.mxu1 %v6881_v47  ;;  %3032 = vmatprep.mubr.bf16.mxu1 %v7023_v20 }
 0x3be   : > { %5004 = vmatprep.subr.bf16.mxu0 %v5624_v41  ;;  %4600 = vmatprep.subr.bf16.mxu1 %v6893_v56 }
 0x3bf   : > { %5018 = vmatprep.mubr.msk.bf16.mxu0 %vm5627_vm8, %v5624_v41 }
 0x3c0   : > { %5005 = vmatpush3.bf16.msra.mxu0 %v6650_v22 }
 0x3c1   : > { %4601 = vmatpush3.bf16.msra.mxu1 %v6899_v10  ;;  %5006 = vmatprep.subr.bf16.mxu0 %v5624_v41 }
 0x3c2   : > { %4602 = vmatprep.subr.bf16.mxu1 %v6974_v59 }
 0x3c4   : > { %5007 = vmatpush3.bf16.msra.mxu0 %v6656_v23 }
 0x3c5   : > { %4603 = vmatpush3.bf16.msra.mxu1 %v6978_v53  ;;  %5008 = vmatprep.subr.bf16.mxu0 %v5624_v41 }
 0x3c6   : > { %4604 = vmatprep.subr.bf16.mxu1 %v6982_v62 }
 0x3c8   : > { %5009 = vmatpush3.bf16.msra.mxu0 %v6662_v25 }
 0x3c9   : > { %4605 = vmatpush3.bf16.msra.mxu1 %v6986_v4  ;;  %5010 = vmatprep.subr.bf16.mxu0 %v5624_v41 }
 0x3ca   : > { %4606 = vmatprep.subr.bf16.mxu1 %v6990_v57 }
 0x3cc   : > { %5011 = vmatpush3.bf16.msra.mxu0 %v6672_v26 }
 0x3cd   : > { %4607 = vmatpush3.bf16.msra.mxu1 %v6994_v30  ;;  %5012 = vmatprep.subr.bf16.mxu0 %v5624_v41 }
 0x3ce   : > { %v4349_v22 = vpop.f32.mrb[60].mxu0  ;;  %4608 = vmatprep.subr.bf16.mxu1 %v6998_v39 }
 0x3cf   : > { %v4371_v23 = vpop.f32.mrb[60].mxu1  ;;  %v4350_v58 = vpop.f32.mrb[61].mxu0 }
 0x3d0   : > { %v4351_v20 = vadd.f32 %v4350_v58, %v4349_v22  ;;  %v4372_v24 = vpop.f32.mrb[61].mxu1  ;;  %v4352_v25 = vpop.f32.mrb[62].mxu0  ;;  %5013 = vmatpush3.bf16.msra.mxu0 %v6678_v2  ;;  %v5313_v2 = vld [vmem:[#allocation2 + $0x48] ss:$0 sps:$4 sm:$0xff]  }
 0x3d1   : > { %v4373_v29 = vadd.f32 %v4372_v24, %v4371_v23  ;;  %v4374_v28 = vpop.f32.mrb[62].mxu1  ;;  %4609 = vmatpush3.bf16.msra.mxu1 %v7002_v60  ;;  %v4353_v55 = vpop.f32.mrb[63].mxu0  ;;  %5014 = vmatprep.subr.bf16.mxu0 %v5624_v41 }
 0x3d2   : > { %v4375_v26 = vpop.f32.mrb[63].mxu1  ;;  %4610 = vmatprep.subr.bf16.mxu1 %v7006_v32 }
 0x3d3   : > { %v2365_v48 = vadd.f32 %v4373_v29, %v4351_v20  ;;  %v7195_v20 = vld [vmem:[#allocation6 + $0x128] sm:$0xff]   ;;  %v7201_v29 = vld [vmem:[#allocation6 + $0x130] sm:$0xff]  }
 0x3d4   : > { %5015 = vmatpush3.bf16.msra.mxu0 %v6684_v51  ;;  %v3772_v51 = vcombine.high %v2980_v0, %v2980_v0 }
 0x3d5   : > { %4611 = vmatpush3.bf16.msra.mxu1 %v7010_v18  ;;  %5016 = vmatprep.subr.bf16.mxu0 %v5624_v41 }
 0x3d6   : > { %4612 = vmatprep.subr.bf16.mxu1 %v7014_v27 }
 0x3d8   : > { %5017 = vmatpush3.bf16.msra.mxu0 %v7152_v63 }
 0x3d9   : > { %4613 = vmatpush3.bf16.msra.mxu1 %v7018_v50  ;;  %4620 = vmatprep.subr.bf16.mxu0 %v6877_v3 }
 0x3da   : > { %5022 = vmatprep.subr.bf16.mxu1 %v5624_v41 }
 0x3db   : > { %5019 = vmatmul.mubr.bf16.vlgmr.msra.gmra.mrb[88].mxu0 %v5313_v2 }
 0x3dc   : > { %3033 = vmatmul.mubr.bf16.vlgmr.msra.gmra.mrb[88].mxu1 %v7067_v15  ;;  %4621 = vmatpush3.bf16.msra.mxu0 %v6889_v54  ;;  %v7172_v15 = vld [vmem:[#allocation6 + $0x110] sm:$0xff]  }
 0x3dd   : > { %3072 = vmatprep.mubr.bf16.mxu0 %v3772_v51  ;;  %5023 = vmatpush3.bf16.msra.mxu1 %v7119_v6 }
 0x3de   : > { %4622 = vmatprep.subr.bf16.mxu0 %v6896_v9  ;;  %5024 = vmatprep.subr.bf16.mxu1 %v5624_v41 }
 0x3df   : > { %5038 = vmatprep.mubr.msk.bf16.mxu1 %vm5627_vm8, %v5624_v41 }
 0x3e0   : > { %4623 = vmatpush3.bf16.msra.mxu0 %v6902_v11 }
 0x3e1   : > { %5025 = vmatpush3.bf16.msra.mxu1 %v7166_v52  ;;  %4624 = vmatprep.subr.bf16.mxu0 %v6906_v21 }
 0x3e2   : > { %5026 = vmatprep.subr.bf16.mxu1 %v5624_v41 }
 0x3e4   : > { %4625 = vmatpush3.bf16.msra.mxu0 %v6910_v12 }
 0x3e5   : > { %5027 = vmatpush3.bf16.msra.mxu1 %v7172_v15  ;;  %4626 = vmatprep.subr.bf16.mxu0 %v6914_v16 }
 0x3e6   : > { %5028 = vmatprep.subr.bf16.mxu1 %v5624_v41 }
 0x3e8   : > { %4627 = vmatpush3.bf16.msra.mxu0 %v6918_v42 }
 0x3e9   : > { %5029 = vmatpush3.bf16.msra.mxu1 %v7178_v46  ;;  %4628 = vmatprep.subr.bf16.mxu0 %v6922_v40 }
 0x3ea   : > { %5030 = vmatprep.subr.bf16.mxu1 %v5624_v41 }
 0x3ec   : > { %4629 = vmatpush3.bf16.msra.mxu0 %v6926_v13 }
 0x3ed   : > { %5031 = vmatpush3.bf16.msra.mxu1 %v7184_v19  ;;  %4630 = vmatprep.subr.bf16.mxu0 %v6930_v17 }
 0x3ee   : > { %v2404_v49 = vpop.f32.mrb[64].mxu0  ;;  %5032 = vmatprep.subr.bf16.mxu1 %v5624_v41 }
 0x3ef   : > { %v2405_v44 = vadd.f32 %v2404_v49, %v2365_v48  ;;  %v4402_v61 = vpop.f32.mrb[64].mxu1  ;;  %v4940_v31 = vpop.f32.mrb[65].mxu0  ;;  %v5320_v49 = vld [vmem:[#allocation8] sm:$0xff]  }
 0x3f0   : > { %v4403_v45 = vpop.f32.mrb[65].mxu1  ;;  %v2407_v33 = vpop.f32.mrb[66].mxu0  ;;  %4631 = vmatpush3.bf16.msra.mxu0 %v6936_v38  ;;  %v5322_v31 = vld [vmem:[#allocation8 + $0x8] sm:$0xff]  }
 0x3f1   : > { %v7193_v22 = vmax.f32 %v2268_v7, %v2405_v44  ;;  %v4404_v23 = vadd.f32 %v4403_v45, %v4402_v61  ;;  %v4405_v58 = vpop.f32.mrb[66].mxu1  ;;  %5033 = vmatpush3.bf16.msra.mxu1 %v7195_v20  ;;  %v4941_v24 = vpop.f32.mrb[67].mxu0  ;;  %4632 = vmatprep.subr.bf16.mxu0 %v6941_v34  ;;  %v3122_v7 = vld [vmem:[#allocation2 + $0x48] sm:$0xff] }
 0x3f2   : > { %v4406_v25 = vpop.f32.mrb[67].mxu1  ;;  %5034 = vmatprep.subr.bf16.mxu1 %v5624_v41  ;;  %v3777_v28 = vcombine.high %v3122_v7, %v3122_v7  ;;  %v5321_v44 = vld [vmem:[#allocation9] sm:$0xff]   ;;  %v5323_v45 = vld [vmem:[#allocation9 + $0x8] sm:$0xff]   ;;  %v5326_v58 = vld [vmem:[#allocation8 + $0x18] sm:$0xff]  }
 0x3f3   : > { %v5328_v24 = vld [vmem:[#allocation8 + $0x20] sm:$0xff]  }
 0x3f4   : > { %4633 = vmatpush3.bf16.msra.mxu0 %v6947_v36  ;;  %v5329_v25 = vld [vmem:[#allocation9 + $0x20] sm:$0xff]  }
 0x3f5   : > { %5035 = vmatpush3.bf16.msra.mxu1 %v7201_v29  ;;  %4634 = vmatprep.subr.bf16.mxu0 %v7060_v8 }
 0x3f6   : > { %5036 = vmatprep.subr.bf16.mxu1 %v5624_v41 }
 0x3f8   : > { %4635 = vmatpush3.bf16.msra.mxu0 %v7064_v14 }
 0x3f9   : > { %5037 = vmatpush3.bf16.msra.mxu1 %v7152_v63  ;;  %4651 = vmatprep.subr.bf16.mxu0 %v6872_v5 }
 0x3fa   : > { %4673 = vmatprep.subr.bf16.mxu1 %v6877_v3 }
 0x3fb   : > { %3073 = vmatmul.mubr.bf16.vlgmr.msra.gmra.mrb[92].mxu0 %v3771_v35  ;;  %v5331_v35 = vld [vmem:[#allocation9 + $0x28] sm:$0xff]  }
 0x3fc   : > { %5039 = vmatmul.mubr.bf16.vlgmr.msra.gmra.mrb[92].mxu1 %v5316_v37  ;;  %4652 = vmatpush3.bf16.msra.mxu0 %v6881_v47  ;;  %v5330_v37 = vld [vmem:[#allocation8 + $0x28] sm:$0xff]  }
 0x3fd   : > { %3174 = vmatprep.mubr.bf16.mxu0 %v7074_v43  ;;  %4674 = vmatpush3.bf16.msra.mxu1 %v6889_v54 }
 0x3fe   : > { %3214 = vmatprep.mubr.bf16.mxu1 %v3777_v28  ;;  %4653 = vmatprep.subr.bf16.mxu0 %v6893_v56 }
 0x3ff   : > { %4675 = vmatprep.subr.bf16.mxu1 %v6896_v9 }
 0x400   : > { %4654 = vmatpush3.bf16.msra.mxu0 %v6899_v10 }
 0x401   : > { %4676 = vmatpush3.bf16.msra.mxu1 %v6902_v11  ;;  %4655 = vmatprep.subr.bf16.mxu0 %v6974_v59 }
 0x402   : > { %4677 = vmatprep.subr.bf16.mxu1 %v6906_v21 }
 0x404   : > { %4656 = vmatpush3.bf16.msra.mxu0 %v6978_v53 }
 0x405   : > { %4678 = vmatpush3.bf16.msra.mxu1 %v6910_v12  ;;  %4657 = vmatprep.subr.bf16.mxu0 %v6982_v62 }
 0x406   : > { %4679 = vmatprep.subr.bf16.mxu1 %v6914_v16 }
 0x408   : > { %4658 = vmatpush3.bf16.msra.mxu0 %v6986_v4 }
 0x409   : > { %4680 = vmatpush3.bf16.msra.mxu1 %v6918_v42  ;;  %4659 = vmatprep.subr.bf16.mxu0 %v6990_v57 }
 0x40a   : > { %4681 = vmatprep.subr.bf16.mxu1 %v6922_v40  ;;  %v3776_v40 = vcombine.low %v3122_v7, %v3122_v7 }
 0x40c   : > { %4660 = vmatpush3.bf16.msra.mxu0 %v6994_v30 }
 0x40d   : > { %4682 = vmatpush3.bf16.msra.mxu1 %v6926_v13  ;;  %4661 = vmatprep.subr.bf16.mxu0 %v6998_v39  ;;  %v5319_v39 = vld [vmem:[#allocation2 + $0x50] ss:$0 sps:$4 sm:$0xff]  }
 0x40e   : > { %v4424_v5 = vpop.f32.mrb[68].mxu0  ;;  %4683 = vmatprep.subr.bf16.mxu1 %v6930_v17 }
 0x40f   : > { %v4425_v3 = vpop.f32.mrb[69].mxu0  ;;  %v2546_v47 = vpop.f32.mrb[68].mxu1 }
 0x410   : > { %v4426_v54 = vadd.f32 %v4425_v3, %v4424_v5  ;;  %v4427_v56 = vpop.f32.mrb[70].mxu0  ;;  %4662 = vmatpush3.bf16.msra.mxu0 %v7002_v60  ;;  %v4960_v9 = vpop.f32.mrb[69].mxu1 }
 0x411   : > { %4684 = vmatpush3.bf16.msra.mxu1 %v6936_v38  ;;  %v4428_v10 = vpop.f32.mrb[71].mxu0  ;;  %4663 = vmatprep.subr.bf16.mxu0 %v7006_v32  ;;  %v2549_v11 = vpop.f32.mrb[70].mxu1 }
 0x412   : > { %v2507_v21 = vadd.f32 %v4426_v54, %v4404_v23  ;;  %4685 = vmatprep.subr.bf16.mxu1 %v6941_v34  ;;  %v4961_v12 = vpop.f32.mrb[71].mxu1  ;;  %v5325_v23 = vld [vmem:[#allocation9 + $0x10] sm:$0xff]  }
 0x413   : > { %v5332_v11 = vld [vmem:[#allocation8 + $0x30] sm:$0xff]  }
 0x414   : > { %v2547_v16 = vadd.f32 %v2546_v47, %v2507_v21  ;;  %4664 = vmatpush3.bf16.msra.mxu0 %v7010_v18  ;;  %v5333_v21 = vld [vmem:[#allocation9 + $0x30] sm:$0xff]  }
 0x415   : > { %4686 = vmatpush3.bf16.msra.mxu1 %v6947_v36  ;;  %4665 = vmatprep.subr.bf16.mxu0 %v7014_v27 }
 0x416   : > { %v2552_v42 = vmax.f32 %v7193_v22, %v2547_v16  ;;  %4687 = vmatprep.subr.bf16.mxu1 %v7060_v8  ;;  %v5324_v22 = vld [vmem:[#allocation8 + $0x10] sm:$0xff]   ;;  %v5334_v16 = vld [vmem:[#allocation8 + $0x38] sm:$0xff]  }
 0x418   : > { %4666 = vmatpush3.bf16.msra.mxu0 %v7018_v50 }
 0x419   : > { %4688 = vmatpush3.bf16.msra.mxu1 %v7064_v14  ;;  %5042 = vmatprep.subr.bf16.mxu0 %v5624_v41 }
 0x41a   : > { %5062 = vmatprep.subr.bf16.mxu1 %v5624_v41 }
 0x41b   : > { %3175 = vmatmul.mubr.bf16.vlgmr.msra.gmra.mrb[96].mxu0 %v7114_v1 }
 0x41c   : > { %3215 = vmatmul.mubr.bf16.vlgmr.msra.gmra.mrb[96].mxu1 %v3776_v40  ;;  %5043 = vmatpush3.bf16.msra.mxu0 %v7119_v6 }
 0x41d   : > { %5044 = vmatprep.subr.bf16.mxu0 %v5624_v41  ;;  %5058 = vmatprep.mubr.msk.bf16.mxu0 %vm5627_vm8, %v5624_v41 }
 0x41e   : > { %5078 = vmatprep.mubr.msk.bf16.mxu1 %vm5627_vm8, %v5624_v41  ;;  %5063 = vmatpush3.bf16.msra.mxu1 %v5320_v49 }
 0x41f   : > { %5064 = vmatprep.subr.bf16.mxu1 %v5624_v41 }
 0x420   : > { %5045 = vmatpush3.bf16.msra.mxu0 %v7166_v52 }
 0x421   : > { %5046 = vmatprep.subr.bf16.mxu0 %v5624_v41 }
 0x422   : > { %5065 = vmatpush3.bf16.msra.mxu1 %v5322_v31 }
 0x423   : > { %5066 = vmatprep.subr.bf16.mxu1 %v5624_v41 }
 0x424   : > { %5047 = vmatpush3.bf16.msra.mxu0 %v7172_v15 }
 0x425   : > { %5048 = vmatprep.subr.bf16.mxu0 %v5624_v41 }
 0x426   : > { %5067 = vmatpush3.bf16.msra.mxu1 %v5324_v22 }
 0x427   : > { %5068 = vmatprep.subr.bf16.mxu1 %v5624_v41 }
 0x428   : > { %5049 = vmatpush3.bf16.msra.mxu0 %v7178_v46 }
 0x429   : > { %5050 = vmatprep.subr.bf16.mxu0 %v5624_v41 }
 0x42a   : > { %5069 = vmatpush3.bf16.msra.mxu1 %v5326_v58 }
 0x42b   : > { %5070 = vmatprep.subr.bf16.mxu1 %v5624_v41 }
 0x42c   : > { %5051 = vmatpush3.bf16.msra.mxu0 %v7184_v19 }
 0x42d   : > { %5052 = vmatprep.subr.bf16.mxu0 %v5624_v41 }
 0x42e   : > { %v4455_v13 = vpop.f32.mrb[72].mxu0  ;;  %5071 = vmatpush3.bf16.msra.mxu1 %v5328_v24 }
 0x42f   : > { %v4477_v17 = vpop.f32.mrb[72].mxu1  ;;  %v4456_v38 = vpop.f32.mrb[73].mxu0  ;;  %5072 = vmatprep.subr.bf16.mxu1 %v5624_v41 }
 0x430   : > { %v4457_v34 = vadd.f32 %v4456_v38, %v4455_v13  ;;  %v4478_v36 = vpop.f32.mrb[73].mxu1  ;;  %v4458_v59 = vpop.f32.mrb[74].mxu0  ;;  %5053 = vmatpush3.bf16.msra.mxu0 %v7195_v20  ;;  %v5327_v20 = vld [vmem:[#allocation9 + $0x18] sm:$0xff]  }
 0x431   : > { %v4479_v53 = vadd.f32 %v4478_v36, %v4477_v17  ;;  %v4480_v62 = vpop.f32.mrb[74].mxu1  ;;  %v4459_v4 = vpop.f32.mrb[75].mxu0  ;;  %5054 = vmatprep.subr.bf16.mxu0 %v5624_v41 }
 0x432   : > { %v4481_v57 = vpop.f32.mrb[75].mxu1  ;;  %5073 = vmatpush3.bf16.msra.mxu1 %v5330_v37 }
 0x433   : > { %v2649_v30 = vadd.f32 %v4479_v53, %v4457_v34  ;;  %5074 = vmatprep.subr.bf16.mxu1 %v5624_v41 }
 0x434   : > { %5055 = vmatpush3.bf16.msra.mxu0 %v7201_v29 }
 0x435   : > { %5056 = vmatprep.subr.bf16.mxu0 %v5624_v41 }
 0x436   : > { %5075 = vmatpush3.bf16.msra.mxu1 %v5332_v11 }
 0x437   : > { %5076 = vmatprep.subr.bf16.mxu1 %v5624_v41 }
 0x438   : > { %5057 = vmatpush3.bf16.msra.mxu0 %v7152_v63 }
 0x439   : > { %5082 = vmatprep.subr.bf16.mxu0 %v5624_v41 }
 0x43a   : > { %5077 = vmatpush3.bf16.msra.mxu1 %v5334_v16 }
 0x43b   : > { %5059 = vmatmul.mubr.bf16.vlgmr.msra.gmra.mrb[100].mxu0 %v5319_v39 }
 0x43c   : > { %5098 = vmatprep.mubr.msk.bf16.mxu0 %vm5627_vm8, %v5624_v41  ;;  %5083 = vmatpush3.bf16.msra.mxu0 %v5321_v44 }
 0x43d   : > { %5084 = vmatprep.subr.bf16.mxu0 %v5624_v41 }
 0x440   : > { %5085 = vmatpush3.bf16.msra.mxu0 %v5323_v45 }
 0x441   : > { %5086 = vmatprep.subr.bf16.mxu0 %v5624_v41 }
 0x444   : > { %5087 = vmatpush3.bf16.msra.mxu0 %v5325_v23 }
 0x445   : > { %5088 = vmatprep.subr.bf16.mxu0 %v5624_v41 }
 0x448   : > { %5089 = vmatpush3.bf16.msra.mxu0 %v5327_v20  ;;  %v3789_v20 = vld [vmem:[%s7352_s6] ss:$0 sm:$0xff] }
 0x449   : > { %5090 = vmatprep.subr.bf16.mxu0 %v5624_v41 }
 0x44c   : > { %5091 = vmatpush3.bf16.msra.mxu0 %v5329_v25 }
 0x44d   : > { %5092 = vmatprep.subr.bf16.mxu0 %v5624_v41 }
 0x44e   : > { %v2688_v60 = vpop.f32.mrb[76].mxu0 }
 0x44f   : > { %v2689_v32 = vadd.f32 %v2688_v60, %v2649_v30  ;;  %v4508_v18 = vpop.f32.mrb[76].mxu1  ;;  %v4980_v27 = vpop.f32.mrb[77].mxu0 }
 0x450   : > { %v4509_v50 = vpop.f32.mrb[77].mxu1  ;;  %v2691_v8 = vpop.f32.mrb[78].mxu0  ;;  %5093 = vmatpush3.bf16.msra.mxu0 %v5331_v35 }
 0x451   : > { %v7267_v14 = vmax.f32 %v2552_v42, %v2689_v32  ;;  %v4510_v43 = vadd.f32 %v4509_v50, %v4508_v18  ;;  %v4511_v1 = vpop.f32.mrb[78].mxu1  ;;  %v4981_v6 = vpop.f32.mrb[79].mxu0  ;;  %5094 = vmatprep.subr.bf16.mxu0 %v5624_v41  ;;  %v5335_v42 = vld [vmem:[#allocation9 + $0x38] sm:$0xff]  }
 0x452   : > { %v4512_v55 = vpop.f32.mrb[79].mxu1 }
 0x454   : > { %5095 = vmatpush3.bf16.msra.mxu0 %v5333_v21 }
 0x455   : > { %5096 = vmatprep.subr.bf16.mxu0 %v5624_v41 }
 0x458   : > { %5097 = vmatpush3.bf16.msra.mxu0 %v5335_v42 }
 0x46e   : > { %v4530_v26 = vpop.f32.mrb[80].mxu0 }
 0x46f   : > { %v4531_v48 = vpop.f32.mrb[81].mxu0  ;;  %v2830_v2 = vpop.f32.mrb[80].mxu1 }
 0x470   : > { %v4532_v63 = vadd.f32 %v4531_v48, %v4530_v26  ;;  %v4533_v0 = vpop.f32.mrb[82].mxu0  ;;  %v5000_v51 = vpop.f32.mrb[81].mxu1 }
 0x471   : > { %v4534_v52 = vpop.f32.mrb[83].mxu0  ;;  %v2833_v15 = vpop.f32.mrb[82].mxu1 }
 0x472   : > { %v2791_v46 = vadd.f32 %v4532_v63, %v4510_v43  ;;  %v5001_v19 = vpop.f32.mrb[83].mxu1 }
 0x474   : > { %v7269_v61 = vadd.f32 %v2830_v2, %v2791_v46 }
 0x476   : > { %v2836_v33 = vmax.f32 %v7267_v14, %v7269_v61  ;;  %v3779_v61 = vld [vmem:[%s7348_s2] ss:$0 sm:$0xff] }
 0x48e   : > { %v4561_v29 = vpop.f32.mrb[84].mxu0 }
 0x48f   : > { %v4583_v7 = vpop.f32.mrb[84].mxu1  ;;  %v4562_v28 = vpop.f32.mrb[85].mxu0 }
 0x490   : > { %v4563_v5 = vadd.f32 %v4562_v28, %v4561_v29  ;;  %v4584_v3 = vpop.f32.mrb[85].mxu1  ;;  %v4564_v47 = vpop.f32.mrb[86].mxu0 }
 0x491   : > { %v4585_v54 = vadd.f32 %v4584_v3, %v4583_v7  ;;  %v4586_v56 = vpop.f32.mrb[86].mxu1  ;;  %v4565_v9 = vpop.f32.mrb[87].mxu0 }
 0x492   : > { %v4587_v10 = vpop.f32.mrb[87].mxu1  ;;  %v3780_v56 = vld [vmem:[%s7350_s4] ss:$0 sm:$0xff] }
 0x493   : > { %v2933_v12 = vadd.f32 %v4585_v54, %v4563_v5 }
 0x4ae   : > { %v2972_v40 = vpop.f32.mrb[88].mxu0 }
 0x4af   : > { %v2973_v13 = vadd.f32 %v2972_v40, %v2933_v12  ;;  %v4614_v17 = vpop.f32.mrb[88].mxu1  ;;  %v5020_v38 = vpop.f32.mrb[89].mxu0 }
 0x4b0   : > { %v4615_v34 = vpop.f32.mrb[89].mxu1  ;;  %v2975_v36 = vpop.f32.mrb[90].mxu0 }
 0x4b1   : > { %v2978_v59 = vmax.f32 %v2836_v33, %v2973_v13  ;;  %v4616_v53 = vadd.f32 %v4615_v34, %v4614_v17  ;;  %v4617_v62 = vpop.f32.mrb[90].mxu1  ;;  %v5021_v4 = vpop.f32.mrb[91].mxu0 }
 0x4b2   : > { %v4618_v57 = vpop.f32.mrb[91].mxu1 }
 0x4ce   : > { %v4636_v30 = vpop.f32.mrb[92].mxu0 }
 0x4cf   : > { %v4637_v39 = vpop.f32.mrb[93].mxu0  ;;  %v3114_v60 = vpop.f32.mrb[92].mxu1 }
 0x4d0   : > { %v4638_v32 = vadd.f32 %v4637_v39, %v4636_v30  ;;  %v4639_v41 = vpop.f32.mrb[94].mxu0  ;;  %v5040_v18 = vpop.f32.mrb[93].mxu1 }
 0x4d1   : > { %v4640_v27 = vpop.f32.mrb[95].mxu0  ;;  %v3117_v50 = vpop.f32.mrb[94].mxu1 }
 0x4d2   : > { %v3075_v8 = vadd.f32 %v4638_v32, %v4616_v53  ;;  %v5041_v14 = vpop.f32.mrb[95].mxu1 }
 0x4d4   : > { %v3115_v43 = vadd.f32 %v3114_v60, %v3075_v8 }
 0x4d6   : > { %v3120_v1 = vmax.f32 %v2978_v59, %v3115_v43 }
 0x4ee   : > { %v4667_v6 = vpop.f32.mrb[96].mxu0 }
 0x4ef   : > { %v4689_v55 = vpop.f32.mrb[96].mxu1  ;;  %v4668_v26 = vpop.f32.mrb[97].mxu0 }
 0x4f0   : > { %v4669_v48 = vadd.f32 %v4668_v26, %v4667_v6  ;;  %v4690_v2 = vpop.f32.mrb[97].mxu1  ;;  %v4670_v63 = vpop.f32.mrb[98].mxu0 }
 0x4f1   : > { %v4691_v0 = vadd.f32 %v4690_v2, %v4689_v55  ;;  %v4692_v51 = vpop.f32.mrb[98].mxu1  ;;  %v4671_v52 = vpop.f32.mrb[99].mxu0 }
 0x4f2   : > { %v4693_v15 = vpop.f32.mrb[99].mxu1 }
 0x4f3   : > { %v3217_v46 = vadd.f32 %v4691_v0, %v4669_v48 }
 0x50e   : > { %v3256_v19 = vpop.f32.mrb[100].mxu0 }
 0x50f   : > { %v3257_v49 = vadd.f32 %v3256_v19, %v3217_v46  ;;  %v5060_v44 = vpop.f32.mrb[101].mxu0 }
 0x510   : > { %v3259_v31 = vpop.f32.mrb[102].mxu0 }
 0x511   : > { %v3262_v45 = vmax.f32 %v3120_v1, %v3257_v49  ;;  %v5061_v33 = vpop.f32.mrb[103].mxu0 }
 0x513   : > { %v3270_v22 = vadd.f32 %v3779_v61, %v3262_v45 }
 0x515   : > { %v3271_v23 = vmax.f32 %v3270_v22, 0.0 }
 0x517   : > { %v3272_v58 = vpack.c.bf16 %v3271_v23, %v3271_v23 }
 0x519   : > { %5079 = vmatmul.mubr.bf16.vlgmr.msra.gmra.mrb[100].mxu1 %v3272_v58  ;;  %5099 = vmatmul.mubr.bf16.vlgmr.msra.gmra.mrb[104].mxu0 %v3272_v58 }
 0x5ec   : > { %v3378_v24 = vpop.f32.mrb[100].mxu1  ;;  %v3490_v25 = vpop.f32.mrb[104].mxu0 }
 0x5ed   : > { %v3491_v29 = vadd.f32 %v3789_v20, %v3490_v25  ;;  %v5080_v37 = vpop.f32.mrb[101].mxu1  ;;  %v5100_v35 = vpop.f32.mrb[105].mxu0  ;;  %v3379_v10 = vadd.f32 %v3780_v56, %v3378_v24 }
 0x5ee   : > { %v3381_v7 = vpop.f32.mrb[102].mxu1  ;;  %v3493_v28 = vpop.f32.mrb[106].mxu0 }
 0x5ef   : > { %v3798_v5 = vmul.f32 -1.442695, %v3491_v29  ;;  %v5081_v3 = vpop.f32.mrb[103].mxu1  ;;  %v5101_v47 = vpop.f32.mrb[107].mxu0  ;;  %v3384_v11 = vmax.f32 %v3379_v10, 0.0 }
 0x5f1   : > { %5336 = vpow2.f32 %v3798_v5  ;;  %v3502_v21 = vsub.f32 %v3384_v11, %v3271_v23 }
 0x5fb   : > { %v5337_v54 = vpop.eup %5336 }
 0x5fc   : > { %v3499_v9 = vadd.f32 1.0, %v5337_v54 }
 0x5fe   : > { %5338 = vrcp.f32 %v3499_v9 }
 0x608   : > { %v5339_v12 = vpop.eup %5338 }
 0x609   : > { %v3503_v16 = vmul.f32 %v5339_v12, %v3502_v21 }
 0x60b   : > { %v3504_v42 = vadd.f32 %v3503_v16, %v3271_v23 }
 0x60d   : > { %3505 = vst [vmem:[%s337_s20] sm:$0xff] %v3504_v42 }
 0x60e   : > { %5547 = shalt.err (!%p5544_p4)
}
 0x60f   : > { %s5548_s8 = scalar_lea.hbm %s7302_s21, 128  ;;  %s5552_s11 = scalar_lea.hbm %s7353_s7, 256 }
 0x610   : > { %p5549_p0 = scmp.ne.s32.totalorder %s7302_s21, %s5548_s8  ;;  %p5553_p8 = scmp.lt.u32.totalorder %s7302_s21, %s7353_s7 }
 0x611   : > { %p5554_p13 = scmp.lt.u32.totalorder %s5552_s11, %s5548_s8  ;;  %p5556_p10 = scmp.lt.u32.totalorder %s5548_s8, %s7302_s21 }
 0x612   : > { %p5550_p9 = pnand %p5549_p0, %p5834_p5 }
 0x613   : > { %p5555_p6 = por %p5554_p13, %p5553_p8 }
 0x614   : > { %p5551_p11 = pneg %p5550_p9 }
 0x615   : > { %p5557_p3 = por %p5556_p10, %p5555_p6 }
 0x617   : > { %p5558_p7 = pnand %p5557_p3, %p5551_p11 }
 0x619   : > { %5561 = shalt.err (!%p5558_p7)
}
 0x61a   : > { %5116 = dma.vmem_to_hbm [thread:$0]  (%p5834_p5), %s7304_s15, 128, %s7302_s21, %s3507_s16  }
 0x61b PF: > { %s7373_s20 = sld [smem:[#allocation16_spill]]  ;;  %s3532_s29 = sand.u32 1, %s5596_s24  }
 0x61c   : > { %p7375_p1 = scmp.ge.s32.totalorder %s5608_s27, 2  ;;  %s3533_s12 = scalar_lea.sflag [#allocation5], %s3532_s29 }
 0x621   : > { %p7374_p12 = scmp.ne.s32.totalorder %s7373_s20, 0 }
 0x623   : > { %p5133_p2 = pnand %p7375_p1, %p7374_p12 }
 0x625   : > { %5591 = dma.done.wait (!%p5133_p2), %s3533_s12, 128  }
 0x626   : > { %5593 = vsyncadd (!%p5133_p2), %s3533_s12, 4294967168  ;;  %p22_p4 = scmp.ge.s32.totalorder %s5820_s22, 4   ;;  %s7376_s24 = smov %s5600_s25 }
 0x627   : > { %s7377_s25 = smov %s5604_s26  ;;  %s7378_s26 = smov %s5830_s18 }
 0x628   : > { %s7379_s27 = smov %s5820_s22  ;;  %24 = sbr.rel (!%p22_p4) target bundleno = 7 (0x7), region = 105 }
 0x62f   :  { %3538 = vsyncpa [#allocation4], 1 }
 0x630   :  { %3540 = vsyncpa [#allocation4 + $0x1], 1 }
 0x631   :  { %3541 = vsyncpa [#allocation7], 1 }
 0x632   :  { %3542 = vsyncpa [#allocation10], 1 }
 0x633   :  { %3543 = vsyncpa [#allocation5], 1 }
 0x634   :  { %3545 = vsyncpa [#allocation5 + $0x1], 1 }

</bundles_post_ra>
